<compile_context>
chip_gen: v7x
topology: tpu7x:2x2x1
jax: 0.10.0
libtpu: 0.0.40
codegen_flags: <defaults>
</compile_context>

<pallas_src>
import math
import jax
import jax.numpy as jnp
from jax import lax
from jax.experimental import pallas as pl
from jax.experimental.pallas import tpu as pltpu

F32 = jnp.float32

# ------------------------- model configuration (synthetic) -------------------------
EMBED_DIM = 32
HEADS = 4
FFN_DIM = 64
NUM_LAYERS = 2
VOCAB = 8
PAD_IDX = 1
MASK_IDX = 7
GVP_S = 16           # gvp_node_hidden_dim_scalar
GVP_V = 8            # gvp_node_hidden_dim_vector
GVP_LAYERS = 2

# ------------------------------ in-kernel math helpers ------------------------------

def _ln(x, g, b, eps=1e-5):
    """torch.nn.LayerNorm (biased variance)."""
    mu = jnp.mean(x, axis=-1, keepdims=True)
    xc = x - mu
    var = jnp.mean(xc * xc, axis=-1, keepdims=True)
    return xc * lax.rsqrt(var + eps) * g + b


def _esm_normalize(x, g, b, eps=1e-6):
    """esm `Normalize`: unbiased variance, (sigma + eps) denominator."""
    d = x.shape[-1]
    mu = jnp.mean(x, axis=-1, keepdims=True)
    xc = x - mu
    var = jnp.sum(xc * xc, axis=-1, keepdims=True) / (d - 1)
    return g * xc / (jnp.sqrt(var + eps) + eps) + b


def _sigmoid(x):
    return 1.0 / (1.0 + jnp.exp(-x))

# -------------------------------- packing helpers -----------------------------------

def _pack_rows(entries, width, row_align=8):
    """Pack (name, 2-D array) entries into one (R, width) f32 slab, 8-row aligned.
    Returns (slab, layout) with layout[name] = (row_offset, rows, cols)."""
    mats, layout, off = [], {}, 0
    for name, m in entries:
        m = jnp.asarray(m, F32)
        if m.ndim == 1:
            m = m.reshape(1, -1)
        r, c = m.shape
        assert c <= width, (name, c, width)
        layout[name] = (off, r, c)
        rp = -(-r // row_align) * row_align
        mats.append(jnp.pad(m, ((0, rp - r), (0, width - c))))
        off += rp
    return jnp.concatenate(mats, axis=0), layout


def _pack_cols(entries, lane_align=8):
    """Pack per-row feature fields into one (N, C) slab, 8-lane aligned fields.
    Returns (slab, layout) with layout[name] = (col_offset, cols)."""
    cols, layout, off = [], {}, 0
    for name, m in entries:
        m = jnp.asarray(m, F32)
        c = m.shape[1]
        cp = -(-c // lane_align) * lane_align
        layout[name] = (off, c)
        cols.append(jnp.pad(m, ((0, 0), (0, cp - c))))
        off += cp
    return jnp.concatenate(cols, axis=1), layout

# -------------------- kernel 1: fused GVP encoder + embedding combine ---------------

def _make_embed_gvp_kernel(flay, play, N, D, gvp_layers):
    relu = lambda t: jnp.maximum(t, 0.0)

    def kernel(feat_ref, prm_ref, out_ref):
        f32 = jnp.float32

        def F(name):
            off, c = flay[name]
            return feat_ref[:, off:off + c].astype(f32)

        def P(name):
            off, r, c = play[name]
            return prm_ref[off:off + r, 0:c].astype(f32)

        def gvp(prefix, s, v3, scalar_act=None, vector_act=None):
            # vector-gated GVP; v3 = [vx; vy; vz] stacked on the sublane axis so
            # W_h and W_mu are ONE matmul each (xyz batched through the MXU).
            vh = jnp.dot(v3, P(prefix + '_wh'), preferred_element_type=f32)   # (3N, h)
            vhx, vhy, vhz = vh[:N], vh[N:2 * N], vh[2 * N:]
            vn = jnp.sqrt(jnp.maximum(vhx * vhx + vhy * vhy + vhz * vhz, 1e-8))
            s_out = (jnp.dot(s, P(prefix + '_ws_s'), preferred_element_type=f32)
                     + jnp.dot(vn, P(prefix + '_ws_v'), preferred_element_type=f32)
                     + P(prefix + '_bs'))
            vo = jnp.dot(vh, P(prefix + '_wv'), preferred_element_type=f32)   # (3N, vo)
            gate_in = vector_act(s_out) if vector_act is not None else s_out
            gate = _sigmoid(jnp.dot(gate_in, P(prefix + '_wg'),
                                    preferred_element_type=f32) + P(prefix + '_bg'))
            vo = vo * jnp.concatenate([gate, gate, gate], axis=0)
            if scalar_act is not None:
                s_out = scalar_act(s_out)
            return s_out, vo

        def gvp_ln(prefix, s, v3, eps=1e-4):
            s = _ln(s, P(prefix + '_g'), P(prefix + '_b'), eps=eps)
            vx, vy, vz = v3[:N], v3[N:2 * N], v3[2 * N:]
            vn = jnp.sqrt(jnp.mean(vx * vx + vy * vy + vz * vz,
                                   axis=-1, keepdims=True) + eps)
            inv = 1.0 / vn
            return s, v3 * jnp.concatenate([inv, inv, inv], axis=0)

        # ------------------ GVP node-embedding path ------------------
        s = F('ns')                                                  # (N, 7)
        v3 = jnp.concatenate([F('vx'), F('vy'), F('vz')], axis=0)    # (3N, 3)
        s, v3 = gvp('en', s, v3)
        s, v3 = gvp_ln('en_ln', s, v3)
        rbf_c = F('rbf')
        s = s + jnp.dot(rbf_c, P('conf_w'), preferred_element_type=f32) + P('conf_b')

        # node-wise GVP residual layers
        # TODO(synk): reference GVPEncoder also builds a kNN graph and runs
        # torch_geometric GVPConv message passing with edge RBF features; only the
        # node-wise GVP path is reproduced here.
        for i in range(gvp_layers):
            ds, dv = gvp(f'l{i}_g1', s, v3, scalar_act=relu, vector_act=_sigmoid)
            ds, dv = gvp(f'l{i}_g2', ds, dv)
            s, v3 = s + ds, v3 + dv
            s, v3 = gvp_ln(f'l{i}_ln', s, v3)

        # rotate GVP output vectors into local frames: out_i = sum_j v_j * R[i, j]
        # (== rotate(v, R^T) of the reference).
        rot = F('rot')                                               # (N, 9) row-major R
        vx, vy, vz = v3[:N], v3[N:2 * N], v3[2 * N:]
        rx = vx * rot[:, 0:1] + vy * rot[:, 1:2] + vz * rot[:, 2:3]
        ry = vx * rot[:, 3:4] + vy * rot[:, 4:5] + vz * rot[:, 5:6]
        rz = vx * rot[:, 6:7] + vy * rot[:, 7:8] + vz * rot[:, 8:9]
        # feature order for embed_gvp_output: [scalars, all-x, all-y, all-z]
        gvp_feats = jnp.concatenate([s, rx, ry, rz], axis=1)         # (N, S + 3V)

        # ------------------ fused embedding combine ------------------
        tok_c = F('tok') * math.sqrt(D)                              # embed_scale
        dih_c = _esm_normalize(
            jnp.dot(F('dih'), P('dih_w'), preferred_element_type=f32) + P('dih_b'),
            P('dih_g'), P('dih_nb'), eps=1e-6)
        gvp_c = jnp.dot(gvp_feats, P('go_w'), preferred_element_type=f32) + P('go_b')
        conf_c = jnp.dot(rbf_c, P('cf_w'), preferred_element_type=f32) + P('cf_b')
        in_c = jnp.dot(F('inf'), P('if_w'), preferred_element_type=f32) + P('if_b')
        embed = tok_c + dih_c + gvp_c + conf_c + in_c
        x = (embed + F('pos')) * F('keep')           # + positions, * (1 - padding)
        # single lane-dense packed output: [x | tok | dih | gvp_out | conf | in_feat]
        out_ref[...] = jnp.concatenate([x, tok_c, dih_c, gvp_c, conf_c, in_c],
                                       axis=1).astype(out_ref.dtype)

    return kernel


def _pack_gvp_embed_params(params):
    g = params['gvp']
    entries = []

    def add_gvp(prefix, gp, si):
        entries.extend([
            (prefix + '_wh', gp['wh']),
            (prefix + '_wv', gp['wv']),
            (prefix + '_ws_s', gp['ws'][:si]),
            (prefix + '_ws_v', gp['ws'][si:]),
            (prefix + '_bs', gp['bs']),
            (prefix + '_wg', gp['wsv']),
            (prefix + '_bg', gp['bsv']),
        ])

    add_gvp('en', g['embed_node'], 7)
    entries += [('en_ln_g', g['embed_node_ln']['g']),
                ('en_ln_b', g['embed_node_ln']['b']),
                ('conf_w', g['conf_w']), ('conf_b', g['conf_b'])]
    for i, lyr in enumerate(g['layers']):
        add_gvp(f'l{i}_g1', lyr['gvp1'], GVP_S)
        add_gvp(f'l{i}_g2', lyr['gvp2'], GVP_S)
        entries += [(f'l{i}_ln_g', lyr['ln']['g']), (f'l{i}_ln_b', lyr['ln']['b'])]
    pd = params['dihedral']
    entries += [
        ('dih_w', pd['w']), ('dih_b', pd['b']), ('dih_g', pd['g']), ('dih_nb', pd['nb']),
        ('go_w', params['embed_gvp_output']['w']),
        ('go_b', params['embed_gvp_output']['b']),
        ('cf_w', params['embed_confidence']['w']),
        ('cf_b', params['embed_confidence']['b']),
        ('if_w', params['embed_gvp_input_features']['w']),
        ('if_b', params['embed_gvp_input_features']['b']),
    ]
    return _pack_rows(entries, width=EMBED_DIM)

# -------------------- kernel 2: fused transformer encoder (all layers) --------------

def _make_encoder_stack_kernel(layout, D, Fdim, num_heads, num_layers, return_states):
    H = num_heads
    Dh = D // H
    scale = 1.0 / math.sqrt(Dh)

    def kernel(x_ref, bias_ref, prm_ref, o_ref, *state_refs):
        f32 = jnp.float32
        l = pl.program_id(0)

        def P(name):
            off, r, c = layout[name]
            return prm_ref[off:off + r, 0:c].astype(f32)

        # the output block is resident across all grid steps and carries x
        @pl.when(l == 0)
        def _():
            o_ref[...] = x_ref[...]

        x = o_ref[...].astype(f32)                    # (B*L, D)
        BL = x.shape[0]

        vecs = P('vecs')                              # (10, 3D) packed bias/gain rows
        bqkv = vecs[0:1, :]
        bo = vecs[1:2, 0:D]
        g1, b1 = vecs[2:3, 0:D], vecs[3:4, 0:D]
        bf1 = vecs[4:5, 0:Fdim]
        bf2 = vecs[5:6, 0:D]
        g2, b2 = vecs[6:7, 0:D], vecs[7:8, 0:D]
        fg, fb = vecs[8:9, 0:D], vecs[9:10, 0:D]      # final encoder layernorm

        # ---- self-attention: heads stacked along sublanes, everything 2-D ----
        qkv = jnp.dot(x, P('wqkv'), preferred_element_type=f32) + bqkv       # (BL, 3D)
        q = jnp.concatenate([qkv[:, h * Dh:(h + 1) * Dh] for h in range(H)],
                            axis=0) * scale                                  # (H*BL, Dh)
        k = jnp.concatenate([qkv[:, D + h * Dh:D + (h + 1) * Dh]
                             for h in range(H)], axis=0)
        v = jnp.concatenate([qkv[:, 2 * D + h * Dh:2 * D + (h + 1) * Dh]
                             for h in range(H)], axis=0)
        # (H*BL, H*BL) scores; bias masks cross-head, cross-batch and padded keys
        s = lax.dot_general(q, k, (((1,), (1,)), ((), ())),
                            preferred_element_type=f32) + bias_ref[...]
        m = jnp.max(s, axis=-1, keepdims=True)
        p = jnp.exp(s - m)
        p = p * pl.reciprocal(jnp.sum(p, axis=-1, keepdims=True), approx=True)
        ctx = jnp.dot(p, v, preferred_element_type=f32)                      # (H*BL, Dh)
        ctx = jnp.concatenate([ctx[h * BL:(h + 1) * BL, :] for h in range(H)],
                              axis=1)                                        # (BL, D)
        attn = jnp.dot(ctx, P('wo'), preferred_element_type=f32) + bo

        # ---- post-norm residual blocks (dropout = identity in eval mode) ----
        x = _ln(x + attn, g1, b1)
        hid = jnp.maximum(jnp.dot(x, P('w1'), preferred_element_type=f32) + bf1, 0.0)
        y = jnp.dot(hid, P('w2'), preferred_element_type=f32) + bf2
        x = _ln(x + y, g2, b2)

        if return_states:                             # per-layer hidden state (pre-LN)
            state_refs[0][...] = x.astype(state_refs[0].dtype)

        @pl.when(l < num_layers - 1)
        def _():
            o_ref[...] = x.astype(o_ref.dtype)

        @pl.when(l == num_layers - 1)
        def _():
            o_ref[...] = _ln(x, fg, fb).astype(o_ref.dtype)

    return kernel


def _pack_encoder_layer_slab(layers, final_ln, D):
    """Stack every layer's weights + biases into one (NL, R, 3D) slab."""
    W = 3 * D

    def row(vv):
        vv = jnp.asarray(vv, F32).reshape(1, -1)
        return jnp.pad(vv, ((0, 0), (0, W - vv.shape[1])))

    slabs, layout = [], None
    for lp in layers:
        vecs = jnp.concatenate([
            row(jnp.concatenate([lp['bq'], lp['bk'], lp['bv']])),   # 0: qkv bias
            row(lp['bo']),                                          # 1
            row(lp['ln1_g']), row(lp['ln1_b']),                     # 2, 3
            row(lp['b1']), row(lp['b2']),                           # 4, 5
            row(lp['ln2_g']), row(lp['ln2_b']),                     # 6, 7
            row(final_ln['g']), row(final_ln['b']),                 # 8, 9 (final LN)
        ], axis=0)
        wqkv = jnp.concatenate([lp['wq'], lp['wk'], lp['wv']], axis=1)
        slab, layout = _pack_rows(
            [('wqkv', wqkv), ('wo', lp['wo']), ('w1', lp['w1']),
             ('w2', lp['w2']), ('vecs', vecs)], width=W)
        slabs.append(slab)
    return jnp.stack(slabs, axis=0), layout


def build_attention_bias(padding_mask, num_heads):
    """(H*B*L, H*B*L) additive bias: 0 where same head, same batch and key not padded."""
    B, L = padding_mask.shape
    BL = B * L
    r = jnp.arange(num_heads * BL)
    head = r // BL
    pos = r % BL
    batch = pos // L
    key_ok = jnp.logical_not(padding_mask.reshape(BL))[pos]
    allowed = ((head[:, None] == head[None, :]) &
               (batch[:, None] == batch[None, :]) & key_ok[None, :])
    return jnp.where(allowed, 0.0, -1e9).astype(F32)


def transformer_encoder_stack(x_flat, attn_bias, params, *, num_heads=HEADS,
                              return_states=False):
    """One pallas_call running all encoder layers + final layernorm."""
    BL, D = x_flat.shape
    layers = params['layers']
    num_layers = len(layers)
    assert num_layers >= 1
    Fdim = layers[0]['w1'].shape[1]
    slab, layout = _pack_encoder_layer_slab(layers, params['final_ln'], D)
    _, R, W = slab.shape

    kernel = _make_encoder_stack_kernel(layout, D, Fdim, num_heads, num_layers,
                                        return_states)
    in_specs = [pl.BlockSpec((BL, D), lambda l: (0, 0)),
                pl.BlockSpec(attn_bias.shape, lambda l: (0, 0)),
                pl.BlockSpec((None, R, W), lambda l: (l, 0, 0))]
    out_shape = jax.ShapeDtypeStruct((BL, D), F32)
    out_specs = pl.BlockSpec((BL, D), lambda l: (0, 0))
    if return_states:
        out_shape = (out_shape, jax.ShapeDtypeStruct((num_layers, BL, D), F32))
        out_specs = (out_specs, pl.BlockSpec((None, BL, D), lambda l: (l, 0, 0)))

    return pl.pallas_call(
        kernel,
        out_shape=out_shape,
        grid=(num_layers,),
        in_specs=in_specs,
        out_specs=out_specs,
        compiler_params=pltpu.CompilerParams(dimension_semantics=("arbitrary",)),
    )(x_flat, attn_bias, slab)

# ------------------------------ geometry / featurizers ------------------------------

def _unit(x, axis=-1, eps=1e-8):
    n = jnp.sqrt(jnp.sum(x * x, axis=axis, keepdims=True))
    return x / jnp.maximum(n, eps)


def dihedrals(X, eps=1e-7):
    B, L = X.shape[0], X.shape[1]
    Xf = X[:, :, :3, :].reshape(B, 3 * L, 3)
    dX = Xf[:, 1:, :] - Xf[:, :-1, :]
    U = _unit(dX)
    u_2, u_1, u_0 = U[:, :-2], U[:, 1:-1], U[:, 2:]
    n_2 = _unit(jnp.cross(u_2, u_1))
    n_1 = _unit(jnp.cross(u_1, u_0))
    cosD = jnp.clip(jnp.sum(n_2 * n_1, -1), -1 + eps, 1 - eps)
    Dang = jnp.sign(jnp.sum(u_2 * n_1, -1)) * jnp.arccos(cosD)
    Dang = jnp.pad(Dang, ((0, 0), (1, 2)))
    Dang = Dang.reshape(B, L, 3)
    return jnp.concatenate([jnp.cos(Dang), jnp.sin(Dang)], axis=-1)     # (B, L, 6)


def orientations(X_ca):
    fwd = _unit(X_ca[:, 1:] - X_ca[:, :-1])
    bwd = _unit(X_ca[:, :-1] - X_ca[:, 1:])
    fwd = jnp.pad(fwd, ((0, 0), (0, 1), (0, 0)))
    bwd = jnp.pad(bwd, ((0, 0), (1, 0), (0, 0)))
    return jnp.concatenate([fwd[:, :, None, :], bwd[:, :, None, :]], axis=-2)


def sidechains(X):
    n, origin, c = X[:, :, 0], X[:, :, 1], X[:, :, 2]
    c, n = _unit(c - origin), _unit(n - origin)
    bisector = _unit(c + n)
    perp = _unit(jnp.cross(c, n))
    return -bisector * math.sqrt(1 / 3) - perp * math.sqrt(2 / 3)       # (B, L, 3)


def get_node_features(coords, coord_mask, with_coord_mask=False):
    node_scalar = dihedrals(coords)
    if with_coord_mask:
        node_scalar = jnp.concatenate(
            [node_scalar, coord_mask[..., None].astype(F32)], axis=-1)
    X_ca = coords[:, :, 1]
    node_vector = jnp.concatenate(
        [orientations(X_ca), sidechains(coords)[:, :, None, :]], axis=-2)  # (B,L,3,3)
    return node_scalar, node_vector


def get_rotation_frames(coords):
    v1 = coords[:, :, 2] - coords[:, :, 1]
    v2 = coords[:, :, 0] - coords[:, :, 1]
    e1 = _unit(v1)
    u2 = v2 - e1 * jnp.sum(e1 * v2, axis=-1, keepdims=True)
    e2 = _unit(u2)
    e3 = jnp.cross(e1, e2)
    return jnp.stack([e1, e2, e3], axis=-2)                             # (B, L, 3, 3)


def rotate(v, R):
    # v: (B, L, n, 3), R: (B, L, 3, 3); out_i = sum_j v_j R_ji (matches esm `rotate`)
    return jnp.einsum('blnj,blji->blni', v, R)


def rbf(values, v_min, v_max, n_bins=16):
    centers = jnp.linspace(v_min, v_max, n_bins)
    std = (v_max - v_min) / n_bins
    z = (values[..., None] - centers) / std
    return jnp.exp(-z * z)


def sinusoidal_positional_embedding(tokens, embed_dim, padding_idx):
    B, L = tokens.shape
    mask = (tokens != padding_idx).astype(jnp.int32)
    positions = jnp.cumsum(mask, axis=1) * mask + padding_idx
    num_emb = L + padding_idx + 2
    half = embed_dim // 2
    scale = math.log(10000) / (half - 1)
    freqs = jnp.exp(jnp.arange(half, dtype=F32) * -scale)
    ang = jnp.arange(num_emb, dtype=F32)[:, None] * freqs[None, :]
    table = jnp.concatenate([jnp.sin(ang), jnp.cos(ang)], axis=1)
    table = table.at[padding_idx].set(0.0)
    return table[positions]                                             # (B, L, D)

# --------------------------------- full forward --------------------------------------

def forward_embedding(coords, padding_mask, confidence, params):
    B, L = coords.shape[:2]
    D = EMBED_DIM
    N = B * L
    coord_mask = jnp.all(jnp.isfinite(coords), axis=(-2, -1))
    coords = jnp.where(jnp.isfinite(coords), coords, 0.0)               # nan_to_num
    mask_tokens = jnp.where(padding_mask, PAD_IDX, MASK_IDX).astype(jnp.int32)

    tok = params['tok_embed'][mask_tokens].reshape(N, D)
    rbf_c = rbf(confidence, 0.0, 1.0).reshape(N, 16)

    node_s, node_v = get_node_features(coords, coord_mask, with_coord_mask=True)
    dih = node_s[..., :6]                                               # (B, L, 6)
    R = get_rotation_frames(coords)
    Rt = jnp.swapaxes(R, -1, -2)
    in_feats = jnp.concatenate(
        [dih, rotate(node_v, Rt).reshape(B, L, -1)], axis=-1).reshape(N, 15)

    pos = sinusoidal_positional_embedding(mask_tokens, D, PAD_IDX).reshape(N, D)
    keep = (1.0 - padding_mask.astype(F32)).reshape(N, 1)

    # single feature slab; field order keeps every field inside one 128-lane tile
    feat_slab, flay = _pack_cols([
        ('tok', tok), ('pos', pos), ('rbf', rbf_c), ('inf', in_feats),
        ('rot', R.reshape(N, 9)), ('ns', node_s.reshape(N, -1)),
        ('dih', dih.reshape(N, 6)),
        ('vx', node_v[..., 0].reshape(N, -1)),
        ('vy', node_v[..., 1].reshape(N, -1)),
        ('vz', node_v[..., 2].reshape(N, -1)),
        ('keep', keep),
    ])
    prm_slab, play = _pack_gvp_embed_params(params)

    packed = pl.pallas_call(
        _make_embed_gvp_kernel(flay, play, N, D, GVP_LAYERS),
        out_shape=jax.ShapeDtypeStruct((N, 6 * D), F32),
    )(feat_slab, prm_slab)

    x = packed[:, 0:D].reshape(B, L, D)
    comp = lambda i: packed[:, i * D:(i + 1) * D].reshape(B, L, D)
    components = {'tokens': comp(1), 'diherals': comp(2), 'gvp_out': comp(3),
                  'confidence': comp(4), 'gvp_input_features': comp(5)}
    # NOTE: x already includes the positional embedding and the (1 - padding)
    # multiplier (fused into the kernel); dropout_module is identity in eval mode.
    return x, components


def gvp_transformer_encoder_forward(coords, encoder_padding_mask, confidence, params,
                                    return_all_hiddens=False):
    B, L = coords.shape[:2]
    D = EMBED_DIM
    x, encoder_embedding = forward_embedding(coords, encoder_padding_mask, confidence,
                                             params)
    x_flat = x.reshape(B * L, D)
    attn_bias = build_attention_bias(encoder_padding_mask, HEADS)

    res = transformer_encoder_stack(x_flat, attn_bias, params,
                                    return_states=return_all_hiddens)
    encoder_states = []
    if return_all_hiddens:
        x_out, states = res
        encoder_states.append(jnp.transpose(x, (1, 0, 2)))
        for i in range(len(params['layers'])):
            encoder_states.append(
                jnp.transpose(states[i].reshape(B, L, D), (1, 0, 2)))
    else:
        x_out = res

    x_out = jnp.transpose(x_out.reshape(B, L, D), (1, 0, 2))            # (L, B, D)
    return {'encoder_out': [x_out],
            'encoder_padding_mask': [encoder_padding_mask],
            'encoder_embedding': [encoder_embedding],
            'encoder_states': encoder_states}

# ------------------------------- parameter creation ----------------------------------

def init_params(key):
    ks = iter(jax.random.split(key, 128))

    def w(shape, scale=0.05):
        return scale * jax.random.normal(next(ks), shape, dtype=F32)

    def zeros(shape): return jnp.zeros(shape, F32)
    def ones(shape): return jnp.ones(shape, F32)

    D, F, S, V = EMBED_DIM, FFN_DIM, GVP_S, GVP_V

    tok = w((VOCAB, D))
    tok = tok.at[PAD_IDX].set(0.0)                 # nn.Embedding padding_idx row

    def gvp_p(si, vi, so, vo):
        h = max(vi, vo)
        return dict(wh=w((vi, h)), wv=w((h, vo)),
                    ws=w((si + h, so)), bs=zeros((so,)),
                    wsv=w((so, vo)), bsv=zeros((vo,)))

    gvp_layers = [dict(gvp1=gvp_p(S, V, S, V),
                       gvp2=gvp_p(S, V, S, V),
                       ln=dict(g=ones((S,)), b=zeros((S,))))
                  for _ in range(GVP_LAYERS)]

    layers = [dict(wq=w((D, D)), bq=zeros((D,)), wk=w((D, D)), bk=zeros((D,)),
                   wv=w((D, D)), bv=zeros((D,)), wo=w((D, D)), bo=zeros((D,)),
                   ln1_g=ones((D,)), ln1_b=zeros((D,)),
                   w1=w((D, F)), b1=zeros((F,)), w2=w((F, D)), b2=zeros((D,)),
                   ln2_g=ones((D,)), ln2_b=zeros((D,)))
              for _ in range(NUM_LAYERS)]

    return dict(
        tok_embed=tok,
        dihedral=dict(w=w((6, D)), b=zeros((D,)), g=ones((D,)), nb=zeros((D,))),
        gvp=dict(embed_node=gvp_p(7, 3, S, V),
                 embed_node_ln=dict(g=ones((S,)), b=zeros((S,))),
                 conf_w=w((16, S)), conf_b=zeros((S,)),
                 layers=gvp_layers),
        # row order of embed_gvp_output: [scalars(S), all-x(V), all-y(V), all-z(V)]
        embed_gvp_output=dict(w=w((S + 3 * V, D)), b=zeros((D,))),
        embed_confidence=dict(w=w((16, D)), b=zeros((D,))),
        embed_gvp_input_features=dict(w=w((15, D)), b=zeros((D,))),
        layers=layers,
        final_ln=dict(g=ones((D,)), b=zeros((D,))),
    )

# --------------------------------------- main ---------------------------------------

if __name__ == "__main__":
    key = jax.random.PRNGKey(0)
    k_coords, k_conf, k_params = jax.random.split(key, 3)

    B, L = 2, 8
    coords = jax.random.normal(k_coords, (B, L, 3, 3), dtype=F32) * 3.0
    padding_mask = jnp.zeros((B, L), dtype=bool).at[1, -1].set(True)
    coords = coords.at[1, -1].set(jnp.nan)          # missing coords at padded residue
    confidence = jax.random.uniform(k_conf, (B, L), dtype=F32)
    confidence = jnp.where(padding_mask, -1.0, confidence)

    params = init_params(k_params)

    fwd = jax.jit(gvp_transformer_encoder_forward)
    out = fwd(coords, padding_mask, confidence, params)
    enc = jax.block_until_ready(out['encoder_out'][0])

    assert enc.shape == (L, B, EMBED_DIM)
    assert bool(jnp.all(jnp.isfinite(enc)))
    print("KERNEL_OK")
</pallas_src>

<mosaic_0001>
module attributes {stable_mosaic.version = 11 : i64} {
  func.func @kernel(%arg0: memref<16x160xf32, #tpu.memory_space<vmem>>, %arg1: memref<552x32xf32, #tpu.memory_space<vmem>>, %arg2: memref<16x192xf32, #tpu.memory_space<vmem>>) attributes {dimension_semantics = [], scalar_prefetch = 0 : i64, scratch_operands = 0 : i64, tpu.core_type = #tpu.core_type<tc>} {
    %c0 = arith.constant 0 : index
    %c112 = arith.constant 112 : index
    %0 = vector.load %arg0[%c0, %c112] : memref<16x160xf32, #tpu.memory_space<vmem>>, vector<16x7xf32>
    %c0_0 = arith.constant 0 : index
    %c128 = arith.constant 128 : index
    %1 = vector.load %arg0[%c0_0, %c128] : memref<16x160xf32, #tpu.memory_space<vmem>>, vector<16x3xf32>
    %c0_1 = arith.constant 0 : index
    %c136 = arith.constant 136 : index
    %2 = vector.load %arg0[%c0_1, %c136] : memref<16x160xf32, #tpu.memory_space<vmem>>, vector<16x3xf32>
    %c0_2 = arith.constant 0 : index
    %c144 = arith.constant 144 : index
    %3 = vector.load %arg0[%c0_2, %c144] : memref<16x160xf32, #tpu.memory_space<vmem>>, vector<16x3xf32>
    %4 = tpu.concatenate %1, %2, %3 in 0 : vector<16x3xf32>, vector<16x3xf32>, vector<16x3xf32> -> vector<48x3xf32>
    %c0_3 = arith.constant 0 : index
    %c0_4 = arith.constant 0 : index
    %5 = vector.load %arg1[%c0_3, %c0_4] : memref<552x32xf32, #tpu.memory_space<vmem>>, vector<3x8xf32>
    %cst = arith.constant dense<0.000000e+00> : vector<48x8xf32>
    %6 = tpu.matmul %4, %5, %cst {dimension_numbers = #tpu.dot_dimension_numbers<[1], [0], [0], [1], [0, 0, 1, 1], [], []>} : vector<48x3xf32>, vector<3x8xf32>, vector<48x8xf32> -> vector<48x8xf32>
    %7 = vector.extract_strided_slice %6 {offsets = [0, 0], sizes = [16, 8], strides = [1, 1]} : vector<48x8xf32> to vector<16x8xf32>
    %8 = vector.extract_strided_slice %6 {offsets = [16, 0], sizes = [16, 8], strides = [1, 1]} : vector<48x8xf32> to vector<16x8xf32>
    %9 = vector.extract_strided_slice %6 {offsets = [32, 0], sizes = [16, 8], strides = [1, 1]} : vector<48x8xf32> to vector<16x8xf32>
    %10 = arith.mulf %7, %7 : vector<16x8xf32>
    %11 = arith.mulf %8, %8 : vector<16x8xf32>
    %12 = arith.addf %10, %11 : vector<16x8xf32>
    %13 = arith.mulf %9, %9 : vector<16x8xf32>
    %14 = arith.addf %12, %13 : vector<16x8xf32>
    %cst_5 = arith.constant 9.99999993E-9 : f32
    %15 = vector.broadcast %cst_5 : f32 to vector<16x8xf32>
    %16 = arith.maximumf %14, %15 : vector<16x8xf32>
    %17 = math.sqrt %16 : vector<16x8xf32>
    %c16 = arith.constant 16 : index
    %c0_6 = arith.constant 0 : index
    %18 = vector.load %arg1[%c16, %c0_6] : memref<552x32xf32, #tpu.memory_space<vmem>>, vector<7x16xf32>
    %cst_7 = arith.constant dense<0.000000e+00> : vector<16x16xf32>
    %19 = tpu.matmul %0, %18, %cst_7 {dimension_numbers = #tpu.dot_dimension_numbers<[1], [0], [0], [1], [0, 0, 1, 1], [], []>} : vector<16x7xf32>, vector<7x16xf32>, vector<16x16xf32> -> vector<16x16xf32>
    %c24 = arith.constant 24 : index
    %c0_8 = arith.constant 0 : index
    %20 = vector.load %arg1[%c24, %c0_8] : memref<552x32xf32, #tpu.memory_space<vmem>>, vector<8x16xf32>
    %cst_9 = arith.constant dense<0.000000e+00> : vector<16x16xf32>
    %21 = tpu.matmul %17, %20, %cst_9 {dimension_numbers = #tpu.dot_dimension_numbers<[1], [0], [0], [1], [0, 0, 1, 1], [], []>} : vector<16x8xf32>, vector<8x16xf32>, vector<16x16xf32> -> vector<16x16xf32>
    %22 = arith.addf %19, %21 : vector<16x16xf32>
    %c32 = arith.constant 32 : index
    %c0_10 = arith.constant 0 : index
    %23 = vector.load %arg1[%c32, %c0_10] : memref<552x32xf32, #tpu.memory_space<vmem>>, vector<1x16xf32>
    %24 = vector.broadcast %23 : vector<1x16xf32> to vector<16x16xf32>
    %25 = arith.addf %22, %24 : vector<16x16xf32>
    %c8 = arith.constant 8 : index
    %c0_11 = arith.constant 0 : index
    %26 = vector.load %arg1[%c8, %c0_11] : memref<552x32xf32, #tpu.memory_space<vmem>>, vector<8x8xf32>
    %cst_12 = arith.constant dense<0.000000e+00> : vector<48x8xf32>
    %27 = tpu.matmul %6, %26, %cst_12 {dimension_numbers = #tpu.dot_dimension_numbers<[1], [0], [0], [1], [0, 0, 1, 1], [], []>} : vector<48x8xf32>, vector<8x8xf32>, vector<48x8xf32> -> vector<48x8xf32>
    %c40 = arith.constant 40 : index
    %c0_13 = arith.constant 0 : index
    %28 = vector.load %arg1[%c40, %c0_13] : memref<552x32xf32, #tpu.memory_space<vmem>>, vector<16x8xf32>
    %cst_14 = arith.constant dense<0.000000e+00> : vector<16x8xf32>
    %29 = tpu.matmul %25, %28, %cst_14 {dimension_numbers = #tpu.dot_dimension_numbers<[1], [0], [0], [1], [0, 0, 1, 1], [], []>} : vector<16x16xf32>, vector<16x8xf32>, vector<16x8xf32> -> vector<16x8xf32>
    %c56 = arith.constant 56 : index
    %c0_15 = arith.constant 0 : index
    %30 = vector.load %arg1[%c56, %c0_15] : memref<552x32xf32, #tpu.memory_space<vmem>>, vector<1x8xf32>
    %31 = vector.broadcast %30 : vector<1x8xf32> to vector<16x8xf32>
    %32 = arith.addf %29, %31 : vector<16x8xf32>
    %cst_16 = arith.constant 0.000000e+00 : f32
    %33 = vector.broadcast %cst_16 : f32 to vector<16x8xf32>
    %34 = arith.subf %33, %32 : vector<16x8xf32>
    %35 = math.exp %34 : vector<16x8xf32>
    %cst_17 = arith.constant 1.000000e+00 : f32
    %36 = vector.broadcast %cst_17 : f32 to vector<16x8xf32>
    %37 = arith.addf %36, %35 : vector<16x8xf32>
    %cst_18 = arith.constant 1.000000e+00 : f32
    %38 = vector.broadcast %cst_18 : f32 to vector<16x8xf32>
    %39 = arith.divf %38, %37 : vector<16x8xf32>
    %40 = tpu.concatenate %39, %39, %39 in 0 : vector<16x8xf32>, vector<16x8xf32>, vector<16x8xf32> -> vector<48x8xf32>
    %41 = arith.mulf %27, %40 : vector<48x8xf32>
    %c64 = arith.constant 64 : index
    %c0_19 = arith.constant 0 : index
    %42 = vector.load %arg1[%c64, %c0_19] : memref<552x32xf32, #tpu.memory_space<vmem>>, vector<1x16xf32>
    %c72 = arith.constant 72 : index
    %c0_20 = arith.constant 0 : index
    %43 = vector.load %arg1[%c72, %c0_20] : memref<552x32xf32, #tpu.memory_space<vmem>>, vector<1x16xf32>
    %cst_21 = arith.constant dense<0.000000e+00> : vector<16xf32>
    %44 = vector.multi_reduction <add>, %25, %cst_21 [1] : vector<16x16xf32> to vector<16xf32>
    %45 = vector.shape_cast %44 : vector<16xf32> to vector<16x1xf32>
    %cst_22 = arith.constant 1.600000e+01 : f32
    %46 = vector.broadcast %cst_22 : f32 to vector<16x1xf32>
    %47 = arith.divf %45, %46 : vector<16x1xf32>
    %48 = vector.broadcast %47 : vector<16x1xf32> to vector<16x16xf32>
    %49 = arith.subf %25, %48 : vector<16x16xf32>
    %50 = arith.mulf %49, %49 : vector<16x16xf32>
    %cst_23 = arith.constant dense<0.000000e+00> : vector<16xf32>
    %51 = vector.multi_reduction <add>, %50, %cst_23 [1] : vector<16x16xf32> to vector<16xf32>
    %52 = vector.shape_cast %51 : vector<16xf32> to vector<16x1xf32>
    %cst_24 = arith.constant 1.600000e+01 : f32
    %53 = vector.broadcast %cst_24 : f32 to vector<16x1xf32>
    %54 = arith.divf %52, %53 : vector<16x1xf32>
    %cst_25 = arith.constant 9.99999974E-5 : f32
    %55 = vector.broadcast %cst_25 : f32 to vector<16x1xf32>
    %56 = arith.addf %54, %55 : vector<16x1xf32>
    %57 = math.rsqrt %56 : vector<16x1xf32>
    %58 = vector.broadcast %57 : vector<16x1xf32> to vector<16x16xf32>
    %59 = arith.mulf %49, %58 : vector<16x16xf32>
    %60 = vector.broadcast %42 : vector<1x16xf32> to vector<16x16xf32>
    %61 = arith.mulf %59, %60 : vector<16x16xf32>
    %62 = vector.broadcast %43 : vector<1x16xf32> to vector<16x16xf32>
    %63 = arith.addf %61, %62 : vector<16x16xf32>
    %64 = vector.extract_strided_slice %41 {offsets = [0, 0], sizes = [16, 8], strides = [1, 1]} : vector<48x8xf32> to vector<16x8xf32>
    %65 = vector.extract_strided_slice %41 {offsets = [16, 0], sizes = [16, 8], strides = [1, 1]} : vector<48x8xf32> to vector<16x8xf32>
    %66 = vector.extract_strided_slice %41 {offsets = [32, 0], sizes = [16, 8], strides = [1, 1]} : vector<48x8xf32> to vector<16x8xf32>
    %67 = arith.mulf %64, %64 : vector<16x8xf32>
    %68 = arith.mulf %65, %65 : vector<16x8xf32>
    %69 = arith.addf %67, %68 : vector<16x8xf32>
    %70 = arith.mulf %66, %66 : vector<16x8xf32>
    %71 = arith.addf %69, %70 : vector<16x8xf32>
    %cst_26 = arith.constant dense<0.000000e+00> : vector<16xf32>
    %72 = vector.multi_reduction <add>, %71, %cst_26 [1] : vector<16x8xf32> to vector<16xf32>
    %73 = vector.shape_cast %72 : vector<16xf32> to vector<16x1xf32>
    %cst_27 = arith.constant 8.000000e+00 : f32
    %74 = vector.broadcast %cst_27 : f32 to vector<16x1xf32>
    %75 = arith.divf %73, %74 : vector<16x1xf32>
    %cst_28 = arith.constant 9.99999974E-5 : f32
    %76 = vector.broadcast %cst_28 : f32 to vector<16x1xf32>
    %77 = arith.addf %75, %76 : vector<16x1xf32>
    %78 = math.sqrt %77 : vector<16x1xf32>
    %cst_29 = arith.constant 1.000000e+00 : f32
    %79 = vector.broadcast %cst_29 : f32 to vector<16x1xf32>
    %80 = arith.divf %79, %78 : vector<16x1xf32>
    %81 = tpu.concatenate %80, %80, %80 in 0 : vector<16x1xf32>, vector<16x1xf32>, vector<16x1xf32> -> vector<48x1xf32>
    %82 = vector.broadcast %81 : vector<48x1xf32> to vector<48x8xf32>
    %83 = arith.mulf %41, %82 : vector<48x8xf32>
    %c0_30 = arith.constant 0 : index
    %c64_31 = arith.constant 64 : index
    %84 = vector.load %arg0[%c0_30, %c64_31] : memref<16x160xf32, #tpu.memory_space<vmem>>, vector<16x16xf32>
    %c80 = arith.constant 80 : index
    %c0_32 = arith.constant 0 : index
    %85 = vector.load %arg1[%c80, %c0_32] : memref<552x32xf32, #tpu.memory_space<vmem>>, vector<16x16xf32>
    %cst_33 = arith.constant dense<0.000000e+00> : vector<16x16xf32>
    %86 = tpu.matmul %84, %85, %cst_33 {dimension_numbers = #tpu.dot_dimension_numbers<[1], [0], [0], [1], [0, 0, 1, 1], [], []>} : vector<16x16xf32>, vector<16x16xf32>, vector<16x16xf32> -> vector<16x16xf32>
    %87 = arith.addf %63, %86 : vector<16x16xf32>
    %c96 = arith.constant 96 : index
    %c0_34 = arith.constant 0 : index
    %88 = vector.load %arg1[%c96, %c0_34] : memref<552x32xf32, #tpu.memory_space<vmem>>, vector<1x16xf32>
    %89 = vector.broadcast %88 : vector<1x16xf32> to vector<16x16xf32>
    %90 = arith.addf %87, %89 : vector<16x16xf32>
    %c104 = arith.constant 104 : index
    %c0_35 = arith.constant 0 : index
    %91 = vector.load %arg1[%c104, %c0_35] : memref<552x32xf32, #tpu.memory_space<vmem>>, vector<8x8xf32>
    %cst_36 = arith.constant dense<0.000000e+00> : vector<48x8xf32>
    %92 = tpu.matmul %83, %91, %cst_36 {dimension_numbers = #tpu.dot_dimension_numbers<[1], [0], [0], [1], [0, 0, 1, 1], [], []>} : vector<48x8xf32>, vector<8x8xf32>, vector<48x8xf32> -> vector<48x8xf32>
    %93 = vector.extract_strided_slice %92 {offsets = [0, 0], sizes = [16, 8], strides = [1, 1]} : vector<48x8xf32> to vector<16x8xf32>
    %94 = vector.extract_strided_slice %92 {offsets = [16, 0], sizes = [16, 8], strides = [1, 1]} : vector<48x8xf32> to vector<16x8xf32>
    %95 = vector.extract_strided_slice %92 {offsets = [32, 0], sizes = [16, 8], strides = [1, 1]} : vector<48x8xf32> to vector<16x8xf32>
    %96 = arith.mulf %93, %93 : vector<16x8xf32>
    %97 = arith.mulf %94, %94 : vector<16x8xf32>
    %98 = arith.addf %96, %97 : vector<16x8xf32>
    %99 = arith.mulf %95, %95 : vector<16x8xf32>
    %100 = arith.addf %98, %99 : vector<16x8xf32>
    %cst_37 = arith.constant 9.99999993E-9 : f32
    %101 = vector.broadcast %cst_37 : f32 to vector<16x8xf32>
    %102 = arith.maximumf %100, %101 : vector<16x8xf32>
    %103 = math.sqrt %102 : vector<16x8xf32>
    %c120 = arith.constant 120 : index
    %c0_38 = arith.constant 0 : index
    %104 = vector.load %arg1[%c120, %c0_38] : memref<552x32xf32, #tpu.memory_space<vmem>>, vector<16x16xf32>
    %cst_39 = arith.constant dense<0.000000e+00> : vector<16x16xf32>
    %105 = tpu.matmul %90, %104, %cst_39 {dimension_numbers = #tpu.dot_dimension_numbers<[1], [0], [0], [1], [0, 0, 1, 1], [], []>} : vector<16x16xf32>, vector<16x16xf32>, vector<16x16xf32> -> vector<16x16xf32>
    %c136_40 = arith.constant 136 : index
    %c0_41 = arith.constant 0 : index
    %106 = vector.load %arg1[%c136_40, %c0_41] : memref<552x32xf32, #tpu.memory_space<vmem>>, vector<8x16xf32>
    %cst_42 = arith.constant dense<0.000000e+00> : vector<16x16xf32>
    %107 = tpu.matmul %103, %106, %cst_42 {dimension_numbers = #tpu.dot_dimension_numbers<[1], [0], [0], [1], [0, 0, 1, 1], [], []>} : vector<16x8xf32>, vector<8x16xf32>, vector<16x16xf32> -> vector<16x16xf32>
    %108 = arith.addf %105, %107 : vector<16x16xf32>
    %c144_43 = arith.constant 144 : index
    %c0_44 = arith.constant 0 : index
    %109 = vector.load %arg1[%c144_43, %c0_44] : memref<552x32xf32, #tpu.memory_space<vmem>>, vector<1x16xf32>
    %110 = vector.broadcast %109 : vector<1x16xf32> to vector<16x16xf32>
    %111 = arith.addf %108, %110 : vector<16x16xf32>
    %c112_45 = arith.constant 112 : index
    %c0_46 = arith.constant 0 : index
    %112 = vector.load %arg1[%c112_45, %c0_46] : memref<552x32xf32, #tpu.memory_space<vmem>>, vector<8x8xf32>
    %cst_47 = arith.constant dense<0.000000e+00> : vector<48x8xf32>
    %113 = tpu.matmul %92, %112, %cst_47 {dimension_numbers = #tpu.dot_dimension_numbers<[1], [0], [0], [1], [0, 0, 1, 1], [], []>} : vector<48x8xf32>, vector<8x8xf32>, vector<48x8xf32> -> vector<48x8xf32>
    %cst_48 = arith.constant 0.000000e+00 : f32
    %114 = vector.broadcast %cst_48 : f32 to vector<16x16xf32>
    %115 = arith.subf %114, %111 : vector<16x16xf32>
    %116 = math.exp %115 : vector<16x16xf32>
    %cst_49 = arith.constant 1.000000e+00 : f32
    %117 = vector.broadcast %cst_49 : f32 to vector<16x16xf32>
    %118 = arith.addf %117, %116 : vector<16x16xf32>
    %cst_50 = arith.constant 1.000000e+00 : f32
    %119 = vector.broadcast %cst_50 : f32 to vector<16x16xf32>
    %120 = arith.divf %119, %118 : vector<16x16xf32>
    %c152 = arith.constant 152 : index
    %c0_51 = arith.constant 0 : index
    %121 = vector.load %arg1[%c152, %c0_51] : memref<552x32xf32, #tpu.memory_space<vmem>>, vector<16x8xf32>
    %cst_52 = arith.constant dense<0.000000e+00> : vector<16x8xf32>
    %122 = tpu.matmul %120, %121, %cst_52 {dimension_numbers = #tpu.dot_dimension_numbers<[1], [0], [0], [1], [0, 0, 1, 1], [], []>} : vector<16x16xf32>, vector<16x8xf32>, vector<16x8xf32> -> vector<16x8xf32>
    %c168 = arith.constant 168 : index
    %c0_53 = arith.constant 0 : index
    %123 = vector.load %arg1[%c168, %c0_53] : memref<552x32xf32, #tpu.memory_space<vmem>>, vector<1x8xf32>
    %124 = vector.broadcast %123 : vector<1x8xf32> to vector<16x8xf32>
    %125 = arith.addf %122, %124 : vector<16x8xf32>
    %cst_54 = arith.constant 0.000000e+00 : f32
    %126 = vector.broadcast %cst_54 : f32 to vector<16x8xf32>
    %127 = arith.subf %126, %125 : vector<16x8xf32>
    %128 = math.exp %127 : vector<16x8xf32>
    %cst_55 = arith.constant 1.000000e+00 : f32
    %129 = vector.broadcast %cst_55 : f32 to vector<16x8xf32>
    %130 = arith.addf %129, %128 : vector<16x8xf32>
    %cst_56 = arith.constant 1.000000e+00 : f32
    %131 = vector.broadcast %cst_56 : f32 to vector<16x8xf32>
    %132 = arith.divf %131, %130 : vector<16x8xf32>
    %133 = tpu.concatenate %132, %132, %132 in 0 : vector<16x8xf32>, vector<16x8xf32>, vector<16x8xf32> -> vector<48x8xf32>
    %134 = arith.mulf %113, %133 : vector<48x8xf32>
    %cst_57 = arith.constant 0.000000e+00 : f32
    %135 = vector.broadcast %cst_57 : f32 to vector<16x16xf32>
    %136 = arith.maximumf %111, %135 : vector<16x16xf32>
    %c176 = arith.constant 176 : index
    %c0_58 = arith.constant 0 : index
    %137 = vector.load %arg1[%c176, %c0_58] : memref<552x32xf32, #tpu.memory_space<vmem>>, vector<8x8xf32>
    %cst_59 = arith.constant dense<0.000000e+00> : vector<48x8xf32>
    %138 = tpu.matmul %134, %137, %cst_59 {dimension_numbers = #tpu.dot_dimension_numbers<[1], [0], [0], [1], [0, 0, 1, 1], [], []>} : vector<48x8xf32>, vector<8x8xf32>, vector<48x8xf32> -> vector<48x8xf32>
    %139 = vector.extract_strided_slice %138 {offsets = [0, 0], sizes = [16, 8], strides = [1, 1]} : vector<48x8xf32> to vector<16x8xf32>
    %140 = vector.extract_strided_slice %138 {offsets = [16, 0], sizes = [16, 8], strides = [1, 1]} : vector<48x8xf32> to vector<16x8xf32>
    %141 = vector.extract_strided_slice %138 {offsets = [32, 0], sizes = [16, 8], strides = [1, 1]} : vector<48x8xf32> to vector<16x8xf32>
    %142 = arith.mulf %139, %139 : vector<16x8xf32>
    %143 = arith.mulf %140, %140 : vector<16x8xf32>
    %144 = arith.addf %142, %143 : vector<16x8xf32>
    %145 = arith.mulf %141, %141 : vector<16x8xf32>
    %146 = arith.addf %144, %145 : vector<16x8xf32>
    %cst_60 = arith.constant 9.99999993E-9 : f32
    %147 = vector.broadcast %cst_60 : f32 to vector<16x8xf32>
    %148 = arith.maximumf %146, %147 : vector<16x8xf32>
    %149 = math.sqrt %148 : vector<16x8xf32>
    %c192 = arith.constant 192 : index
    %c0_61 = arith.constant 0 : index
    %150 = vector.load %arg1[%c192, %c0_61] : memref<552x32xf32, #tpu.memory_space<vmem>>, vector<16x16xf32>
    %cst_62 = arith.constant dense<0.000000e+00> : vector<16x16xf32>
    %151 = tpu.matmul %136, %150, %cst_62 {dimension_numbers = #tpu.dot_dimension_numbers<[1], [0], [0], [1], [0, 0, 1, 1], [], []>} : vector<16x16xf32>, vector<16x16xf32>, vector<16x16xf32> -> vector<16x16xf32>
    %c208 = arith.constant 208 : index
    %c0_63 = arith.constant 0 : index
    %152 = vector.load %arg1[%c208, %c0_63] : memref<552x32xf32, #tpu.memory_space<vmem>>, vector<8x16xf32>
    %cst_64 = arith.constant dense<0.000000e+00> : vector<16x16xf32>
    %153 = tpu.matmul %149, %152, %cst_64 {dimension_numbers = #tpu.dot_dimension_numbers<[1], [0], [0], [1], [0, 0, 1, 1], [], []>} : vector<16x8xf32>, vector<8x16xf32>, vector<16x16xf32> -> vector<16x16xf32>
    %154 = arith.addf %151, %153 : vector<16x16xf32>
    %c216 = arith.constant 216 : index
    %c0_65 = arith.constant 0 : index
    %155 = vector.load %arg1[%c216, %c0_65] : memref<552x32xf32, #tpu.memory_space<vmem>>, vector<1x16xf32>
    %156 = vector.broadcast %155 : vector<1x16xf32> to vector<16x16xf32>
    %157 = arith.addf %154, %156 : vector<16x16xf32>
    %c184 = arith.constant 184 : index
    %c0_66 = arith.constant 0 : index
    %158 = vector.load %arg1[%c184, %c0_66] : memref<552x32xf32, #tpu.memory_space<vmem>>, vector<8x8xf32>
    %cst_67 = arith.constant dense<0.000000e+00> : vector<48x8xf32>
    %159 = tpu.matmul %138, %158, %cst_67 {dimension_numbers = #tpu.dot_dimension_numbers<[1], [0], [0], [1], [0, 0, 1, 1], [], []>} : vector<48x8xf32>, vector<8x8xf32>, vector<48x8xf32> -> vector<48x8xf32>
    %c224 = arith.constant 224 : index
    %c0_68 = arith.constant 0 : index
    %160 = vector.load %arg1[%c224, %c0_68] : memref<552x32xf32, #tpu.memory_space<vmem>>, vector<16x8xf32>
    %cst_69 = arith.constant dense<0.000000e+00> : vector<16x8xf32>
    %161 = tpu.matmul %157, %160, %cst_69 {dimension_numbers = #tpu.dot_dimension_numbers<[1], [0], [0], [1], [0, 0, 1, 1], [], []>} : vector<16x16xf32>, vector<16x8xf32>, vector<16x8xf32> -> vector<16x8xf32>
    %c240 = arith.constant 240 : index
    %c0_70 = arith.constant 0 : index
    %162 = vector.load %arg1[%c240, %c0_70] : memref<552x32xf32, #tpu.memory_space<vmem>>, vector<1x8xf32>
    %163 = vector.broadcast %162 : vector<1x8xf32> to vector<16x8xf32>
    %164 = arith.addf %161, %163 : vector<16x8xf32>
    %cst_71 = arith.constant 0.000000e+00 : f32
    %165 = vector.broadcast %cst_71 : f32 to vector<16x8xf32>
    %166 = arith.subf %165, %164 : vector<16x8xf32>
    %167 = math.exp %166 : vector<16x8xf32>
    %cst_72 = arith.constant 1.000000e+00 : f32
    %168 = vector.broadcast %cst_72 : f32 to vector<16x8xf32>
    %169 = arith.addf %168, %167 : vector<16x8xf32>
    %cst_73 = arith.constant 1.000000e+00 : f32
    %170 = vector.broadcast %cst_73 : f32 to vector<16x8xf32>
    %171 = arith.divf %170, %169 : vector<16x8xf32>
    %172 = tpu.concatenate %171, %171, %171 in 0 : vector<16x8xf32>, vector<16x8xf32>, vector<16x8xf32> -> vector<48x8xf32>
    %173 = arith.mulf %159, %172 : vector<48x8xf32>
    %174 = arith.addf %90, %157 : vector<16x16xf32>
    %175 = arith.addf %83, %173 : vector<48x8xf32>
    %c248 = arith.constant 248 : index
    %c0_74 = arith.constant 0 : index
    %176 = vector.load %arg1[%c248, %c0_74] : memref<552x32xf32, #tpu.memory_space<vmem>>, vector<1x16xf32>
    %c256 = arith.constant 256 : index
    %c0_75 = arith.constant 0 : index
    %177 = vector.load %arg1[%c256, %c0_75] : memref<552x32xf32, #tpu.memory_space<vmem>>, vector<1x16xf32>
    %cst_76 = arith.constant dense<0.000000e+00> : vector<16xf32>
    %178 = vector.multi_reduction <add>, %174, %cst_76 [1] : vector<16x16xf32> to vector<16xf32>
    %179 = vector.shape_cast %178 : vector<16xf32> to vector<16x1xf32>
    %cst_77 = arith.constant 1.600000e+01 : f32
    %180 = vector.broadcast %cst_77 : f32 to vector<16x1xf32>
    %181 = arith.divf %179, %180 : vector<16x1xf32>
    %182 = vector.broadcast %181 : vector<16x1xf32> to vector<16x16xf32>
    %183 = arith.subf %174, %182 : vector<16x16xf32>
    %184 = arith.mulf %183, %183 : vector<16x16xf32>
    %cst_78 = arith.constant dense<0.000000e+00> : vector<16xf32>
    %185 = vector.multi_reduction <add>, %184, %cst_78 [1] : vector<16x16xf32> to vector<16xf32>
    %186 = vector.shape_cast %185 : vector<16xf32> to vector<16x1xf32>
    %cst_79 = arith.constant 1.600000e+01 : f32
    %187 = vector.broadcast %cst_79 : f32 to vector<16x1xf32>
    %188 = arith.divf %186, %187 : vector<16x1xf32>
    %cst_80 = arith.constant 9.99999974E-5 : f32
    %189 = vector.broadcast %cst_80 : f32 to vector<16x1xf32>
    %190 = arith.addf %188, %189 : vector<16x1xf32>
    %191 = math.rsqrt %190 : vector<16x1xf32>
    %192 = vector.broadcast %191 : vector<16x1xf32> to vector<16x16xf32>
    %193 = arith.mulf %183, %192 : vector<16x16xf32>
    %194 = vector.broadcast %176 : vector<1x16xf32> to vector<16x16xf32>
    %195 = arith.mulf %193, %194 : vector<16x16xf32>
    %196 = vector.broadcast %177 : vector<1x16xf32> to vector<16x16xf32>
    %197 = arith.addf %195, %196 : vector<16x16xf32>
    %198 = vector.extract_strided_slice %175 {offsets = [0, 0], sizes = [16, 8], strides = [1, 1]} : vector<48x8xf32> to vector<16x8xf32>
    %199 = vector.extract_strided_slice %175 {offsets = [16, 0], sizes = [16, 8], strides = [1, 1]} : vector<48x8xf32> to vector<16x8xf32>
    %200 = vector.extract_strided_slice %175 {offsets = [32, 0], sizes = [16, 8], strides = [1, 1]} : vector<48x8xf32> to vector<16x8xf32>
    %201 = arith.mulf %198, %198 : vector<16x8xf32>
    %202 = arith.mulf %199, %199 : vector<16x8xf32>
    %203 = arith.addf %201, %202 : vector<16x8xf32>
    %204 = arith.mulf %200, %200 : vector<16x8xf32>
    %205 = arith.addf %203, %204 : vector<16x8xf32>
    %cst_81 = arith.constant dense<0.000000e+00> : vector<16xf32>
    %206 = vector.multi_reduction <add>, %205, %cst_81 [1] : vector<16x8xf32> to vector<16xf32>
    %207 = vector.shape_cast %206 : vector<16xf32> to vector<16x1xf32>
    %cst_82 = arith.constant 8.000000e+00 : f32
    %208 = vector.broadcast %cst_82 : f32 to vector<16x1xf32>
    %209 = arith.divf %207, %208 : vector<16x1xf32>
    %cst_83 = arith.constant 9.99999974E-5 : f32
    %210 = vector.broadcast %cst_83 : f32 to vector<16x1xf32>
    %211 = arith.addf %209, %210 : vector<16x1xf32>
    %212 = math.sqrt %211 : vector<16x1xf32>
    %cst_84 = arith.constant 1.000000e+00 : f32
    %213 = vector.broadcast %cst_84 : f32 to vector<16x1xf32>
    %214 = arith.divf %213, %212 : vector<16x1xf32>
    %215 = tpu.concatenate %214, %214, %214 in 0 : vector<16x1xf32>, vector<16x1xf32>, vector<16x1xf32> -> vector<48x1xf32>
    %216 = vector.broadcast %215 : vector<48x1xf32> to vector<48x8xf32>
    %217 = arith.mulf %175, %216 : vector<48x8xf32>
    %c264 = arith.constant 264 : index
    %c0_85 = arith.constant 0 : index
    %218 = vector.load %arg1[%c264, %c0_85] : memref<552x32xf32, #tpu.memory_space<vmem>>, vector<8x8xf32>
    %cst_86 = arith.constant dense<0.000000e+00> : vector<48x8xf32>
    %219 = tpu.matmul %217, %218, %cst_86 {dimension_numbers = #tpu.dot_dimension_numbers<[1], [0], [0], [1], [0, 0, 1, 1], [], []>} : vector<48x8xf32>, vector<8x8xf32>, vector<48x8xf32> -> vector<48x8xf32>
    %220 = vector.extract_strided_slice %219 {offsets = [0, 0], sizes = [16, 8], strides = [1, 1]} : vector<48x8xf32> to vector<16x8xf32>
    %221 = vector.extract_strided_slice %219 {offsets = [16, 0], sizes = [16, 8], strides = [1, 1]} : vector<48x8xf32> to vector<16x8xf32>
    %222 = vector.extract_strided_slice %219 {offsets = [32, 0], sizes = [16, 8], strides = [1, 1]} : vector<48x8xf32> to vector<16x8xf32>
    %223 = arith.mulf %220, %220 : vector<16x8xf32>
    %224 = arith.mulf %221, %221 : vector<16x8xf32>
    %225 = arith.addf %223, %224 : vector<16x8xf32>
    %226 = arith.mulf %222, %222 : vector<16x8xf32>
    %227 = arith.addf %225, %226 : vector<16x8xf32>
    %cst_87 = arith.constant 9.99999993E-9 : f32
    %228 = vector.broadcast %cst_87 : f32 to vector<16x8xf32>
    %229 = arith.maximumf %227, %228 : vector<16x8xf32>
    %230 = math.sqrt %229 : vector<16x8xf32>
    %c280 = arith.constant 280 : index
    %c0_88 = arith.constant 0 : index
    %231 = vector.load %arg1[%c280, %c0_88] : memref<552x32xf32, #tpu.memory_space<vmem>>, vector<16x16xf32>
    %cst_89 = arith.constant dense<0.000000e+00> : vector<16x16xf32>
    %232 = tpu.matmul %197, %231, %cst_89 {dimension_numbers = #tpu.dot_dimension_numbers<[1], [0], [0], [1], [0, 0, 1, 1], [], []>} : vector<16x16xf32>, vector<16x16xf32>, vector<16x16xf32> -> vector<16x16xf32>
    %c296 = arith.constant 296 : index
    %c0_90 = arith.constant 0 : index
    %233 = vector.load %arg1[%c296, %c0_90] : memref<552x32xf32, #tpu.memory_space<vmem>>, vector<8x16xf32>
    %cst_91 = arith.constant dense<0.000000e+00> : vector<16x16xf32>
    %234 = tpu.matmul %230, %233, %cst_91 {dimension_numbers = #tpu.dot_dimension_numbers<[1], [0], [0], [1], [0, 0, 1, 1], [], []>} : vector<16x8xf32>, vector<8x16xf32>, vector<16x16xf32> -> vector<16x16xf32>
    %235 = arith.addf %232, %234 : vector<16x16xf32>
    %c304 = arith.constant 304 : index
    %c0_92 = arith.constant 0 : index
    %236 = vector.load %arg1[%c304, %c0_92] : memref<552x32xf32, #tpu.memory_space<vmem>>, vector<1x16xf32>
    %237 = vector.broadcast %236 : vector<1x16xf32> to vector<16x16xf32>
    %238 = arith.addf %235, %237 : vector<16x16xf32>
    %c272 = arith.constant 272 : index
    %c0_93 = arith.constant 0 : index
    %239 = vector.load %arg1[%c272, %c0_93] : memref<552x32xf32, #tpu.memory_space<vmem>>, vector<8x8xf32>
    %cst_94 = arith.constant dense<0.000000e+00> : vector<48x8xf32>
    %240 = tpu.matmul %219, %239, %cst_94 {dimension_numbers = #tpu.dot_dimension_numbers<[1], [0], [0], [1], [0, 0, 1, 1], [], []>} : vector<48x8xf32>, vector<8x8xf32>, vector<48x8xf32> -> vector<48x8xf32>
    %cst_95 = arith.constant 0.000000e+00 : f32
    %241 = vector.broadcast %cst_95 : f32 to vector<16x16xf32>
    %242 = arith.subf %241, %238 : vector<16x16xf32>
    %243 = math.exp %242 : vector<16x16xf32>
    %cst_96 = arith.constant 1.000000e+00 : f32
    %244 = vector.broadcast %cst_96 : f32 to vector<16x16xf32>
    %245 = arith.addf %244, %243 : vector<16x16xf32>
    %cst_97 = arith.constant 1.000000e+00 : f32
    %246 = vector.broadcast %cst_97 : f32 to vector<16x16xf32>
    %247 = arith.divf %246, %245 : vector<16x16xf32>
    %c312 = arith.constant 312 : index
    %c0_98 = arith.constant 0 : index
    %248 = vector.load %arg1[%c312, %c0_98] : memref<552x32xf32, #tpu.memory_space<vmem>>, vector<16x8xf32>
    %cst_99 = arith.constant dense<0.000000e+00> : vector<16x8xf32>
    %249 = tpu.matmul %247, %248, %cst_99 {dimension_numbers = #tpu.dot_dimension_numbers<[1], [0], [0], [1], [0, 0, 1, 1], [], []>} : vector<16x16xf32>, vector<16x8xf32>, vector<16x8xf32> -> vector<16x8xf32>
    %c328 = arith.constant 328 : index
    %c0_100 = arith.constant 0 : index
    %250 = vector.load %arg1[%c328, %c0_100] : memref<552x32xf32, #tpu.memory_space<vmem>>, vector<1x8xf32>
    %251 = vector.broadcast %250 : vector<1x8xf32> to vector<16x8xf32>
    %252 = arith.addf %249, %251 : vector<16x8xf32>
    %cst_101 = arith.constant 0.000000e+00 : f32
    %253 = vector.broadcast %cst_101 : f32 to vector<16x8xf32>
    %254 = arith.subf %253, %252 : vector<16x8xf32>
    %255 = math.exp %254 : vector<16x8xf32>
    %cst_102 = arith.constant 1.000000e+00 : f32
    %256 = vector.broadcast %cst_102 : f32 to vector<16x8xf32>
    %257 = arith.addf %256, %255 : vector<16x8xf32>
    %cst_103 = arith.constant 1.000000e+00 : f32
    %258 = vector.broadcast %cst_103 : f32 to vector<16x8xf32>
    %259 = arith.divf %258, %257 : vector<16x8xf32>
    %260 = tpu.concatenate %259, %259, %259 in 0 : vector<16x8xf32>, vector<16x8xf32>, vector<16x8xf32> -> vector<48x8xf32>
    %261 = arith.mulf %240, %260 : vector<48x8xf32>
    %cst_104 = arith.constant 0.000000e+00 : f32
    %262 = vector.broadcast %cst_104 : f32 to vector<16x16xf32>
    %263 = arith.maximumf %238, %262 : vector<16x16xf32>
    %c336 = arith.constant 336 : index
    %c0_105 = arith.constant 0 : index
    %264 = vector.load %arg1[%c336, %c0_105] : memref<552x32xf32, #tpu.memory_space<vmem>>, vector<8x8xf32>
    %cst_106 = arith.constant dense<0.000000e+00> : vector<48x8xf32>
    %265 = tpu.matmul %261, %264, %cst_106 {dimension_numbers = #tpu.dot_dimension_numbers<[1], [0], [0], [1], [0, 0, 1, 1], [], []>} : vector<48x8xf32>, vector<8x8xf32>, vector<48x8xf32> -> vector<48x8xf32>
    %266 = vector.extract_strided_slice %265 {offsets = [0, 0], sizes = [16, 8], strides = [1, 1]} : vector<48x8xf32> to vector<16x8xf32>
    %267 = vector.extract_strided_slice %265 {offsets = [16, 0], sizes = [16, 8], strides = [1, 1]} : vector<48x8xf32> to vector<16x8xf32>
    %268 = vector.extract_strided_slice %265 {offsets = [32, 0], sizes = [16, 8], strides = [1, 1]} : vector<48x8xf32> to vector<16x8xf32>
    %269 = arith.mulf %266, %266 : vector<16x8xf32>
    %270 = arith.mulf %267, %267 : vector<16x8xf32>
    %271 = arith.addf %269, %270 : vector<16x8xf32>
    %272 = arith.mulf %268, %268 : vector<16x8xf32>
    %273 = arith.addf %271, %272 : vector<16x8xf32>
    %cst_107 = arith.constant 9.99999993E-9 : f32
    %274 = vector.broadcast %cst_107 : f32 to vector<16x8xf32>
    %275 = arith.maximumf %273, %274 : vector<16x8xf32>
    %276 = math.sqrt %275 : vector<16x8xf32>
    %c352 = arith.constant 352 : index
    %c0_108 = arith.constant 0 : index
    %277 = vector.load %arg1[%c352, %c0_108] : memref<552x32xf32, #tpu.memory_space<vmem>>, vector<16x16xf32>
    %cst_109 = arith.constant dense<0.000000e+00> : vector<16x16xf32>
    %278 = tpu.matmul %263, %277, %cst_109 {dimension_numbers = #tpu.dot_dimension_numbers<[1], [0], [0], [1], [0, 0, 1, 1], [], []>} : vector<16x16xf32>, vector<16x16xf32>, vector<16x16xf32> -> vector<16x16xf32>
    %c368 = arith.constant 368 : index
    %c0_110 = arith.constant 0 : index
    %279 = vector.load %arg1[%c368, %c0_110] : memref<552x32xf32, #tpu.memory_space<vmem>>, vector<8x16xf32>
    %cst_111 = arith.constant dense<0.000000e+00> : vector<16x16xf32>
    %280 = tpu.matmul %276, %279, %cst_111 {dimension_numbers = #tpu.dot_dimension_numbers<[1], [0], [0], [1], [0, 0, 1, 1], [], []>} : vector<16x8xf32>, vector<8x16xf32>, vector<16x16xf32> -> vector<16x16xf32>
    %281 = arith.addf %278, %280 : vector<16x16xf32>
    %c376 = arith.constant 376 : index
    %c0_112 = arith.constant 0 : index
    %282 = vector.load %arg1[%c376, %c0_112] : memref<552x32xf32, #tpu.memory_space<vmem>>, vector<1x16xf32>
    %283 = vector.broadcast %282 : vector<1x16xf32> to vector<16x16xf32>
    %284 = arith.addf %281, %283 : vector<16x16xf32>
    %c344 = arith.constant 344 : index
    %c0_113 = arith.constant 0 : index
    %285 = vector.load %arg1[%c344, %c0_113] : memref<552x32xf32, #tpu.memory_space<vmem>>, vector<8x8xf32>
    %cst_114 = arith.constant dense<0.000000e+00> : vector<48x8xf32>
    %286 = tpu.matmul %265, %285, %cst_114 {dimension_numbers = #tpu.dot_dimension_numbers<[1], [0], [0], [1], [0, 0, 1, 1], [], []>} : vector<48x8xf32>, vector<8x8xf32>, vector<48x8xf32> -> vector<48x8xf32>
    %c384 = arith.constant 384 : index
    %c0_115 = arith.constant 0 : index
    %287 = vector.load %arg1[%c384, %c0_115] : memref<552x32xf32, #tpu.memory_space<vmem>>, vector<16x8xf32>
    %cst_116 = arith.constant dense<0.000000e+00> : vector<16x8xf32>
    %288 = tpu.matmul %284, %287, %cst_116 {dimension_numbers = #tpu.dot_dimension_numbers<[1], [0], [0], [1], [0, 0, 1, 1], [], []>} : vector<16x16xf32>, vector<16x8xf32>, vector<16x8xf32> -> vector<16x8xf32>
    %c400 = arith.constant 400 : index
    %c0_117 = arith.constant 0 : index
    %289 = vector.load %arg1[%c400, %c0_117] : memref<552x32xf32, #tpu.memory_space<vmem>>, vector<1x8xf32>
    %290 = vector.broadcast %289 : vector<1x8xf32> to vector<16x8xf32>
    %291 = arith.addf %288, %290 : vector<16x8xf32>
    %cst_118 = arith.constant 0.000000e+00 : f32
    %292 = vector.broadcast %cst_118 : f32 to vector<16x8xf32>
    %293 = arith.subf %292, %291 : vector<16x8xf32>
    %294 = math.exp %293 : vector<16x8xf32>
    %cst_119 = arith.constant 1.000000e+00 : f32
    %295 = vector.broadcast %cst_119 : f32 to vector<16x8xf32>
    %296 = arith.addf %295, %294 : vector<16x8xf32>
    %cst_120 = arith.constant 1.000000e+00 : f32
    %297 = vector.broadcast %cst_120 : f32 to vector<16x8xf32>
    %298 = arith.divf %297, %296 : vector<16x8xf32>
    %299 = tpu.concatenate %298, %298, %298 in 0 : vector<16x8xf32>, vector<16x8xf32>, vector<16x8xf32> -> vector<48x8xf32>
    %300 = arith.mulf %286, %299 : vector<48x8xf32>
    %301 = arith.addf %197, %284 : vector<16x16xf32>
    %302 = arith.addf %217, %300 : vector<48x8xf32>
    %c408 = arith.constant 408 : index
    %c0_121 = arith.constant 0 : index
    %303 = vector.load %arg1[%c408, %c0_121] : memref<552x32xf32, #tpu.memory_space<vmem>>, vector<1x16xf32>
    %c416 = arith.constant 416 : index
    %c0_122 = arith.constant 0 : index
    %304 = vector.load %arg1[%c416, %c0_122] : memref<552x32xf32, #tpu.memory_space<vmem>>, vector<1x16xf32>
    %cst_123 = arith.constant dense<0.000000e+00> : vector<16xf32>
    %305 = vector.multi_reduction <add>, %301, %cst_123 [1] : vector<16x16xf32> to vector<16xf32>
    %306 = vector.shape_cast %305 : vector<16xf32> to vector<16x1xf32>
    %cst_124 = arith.constant 1.600000e+01 : f32
    %307 = vector.broadcast %cst_124 : f32 to vector<16x1xf32>
    %308 = arith.divf %306, %307 : vector<16x1xf32>
    %309 = vector.broadcast %308 : vector<16x1xf32> to vector<16x16xf32>
    %310 = arith.subf %301, %309 : vector<16x16xf32>
    %311 = arith.mulf %310, %310 : vector<16x16xf32>
    %cst_125 = arith.constant dense<0.000000e+00> : vector<16xf32>
    %312 = vector.multi_reduction <add>, %311, %cst_125 [1] : vector<16x16xf32> to vector<16xf32>
    %313 = vector.shape_cast %312 : vector<16xf32> to vector<16x1xf32>
    %cst_126 = arith.constant 1.600000e+01 : f32
    %314 = vector.broadcast %cst_126 : f32 to vector<16x1xf32>
    %315 = arith.divf %313, %314 : vector<16x1xf32>
    %cst_127 = arith.constant 9.99999974E-5 : f32
    %316 = vector.broadcast %cst_127 : f32 to vector<16x1xf32>
    %317 = arith.addf %315, %316 : vector<16x1xf32>
    %318 = math.rsqrt %317 : vector<16x1xf32>
    %319 = vector.broadcast %318 : vector<16x1xf32> to vector<16x16xf32>
    %320 = arith.mulf %310, %319 : vector<16x16xf32>
    %321 = vector.broadcast %303 : vector<1x16xf32> to vector<16x16xf32>
    %322 = arith.mulf %320, %321 : vector<16x16xf32>
    %323 = vector.broadcast %304 : vector<1x16xf32> to vector<16x16xf32>
    %324 = arith.addf %322, %323 : vector<16x16xf32>
    %325 = vector.extract_strided_slice %302 {offsets = [0, 0], sizes = [16, 8], strides = [1, 1]} : vector<48x8xf32> to vector<16x8xf32>
    %326 = vector.extract_strided_slice %302 {offsets = [16, 0], sizes = [16, 8], strides = [1, 1]} : vector<48x8xf32> to vector<16x8xf32>
    %327 = vector.extract_strided_slice %302 {offsets = [32, 0], sizes = [16, 8], strides = [1, 1]} : vector<48x8xf32> to vector<16x8xf32>
    %328 = arith.mulf %325, %325 : vector<16x8xf32>
    %329 = arith.mulf %326, %326 : vector<16x8xf32>
    %330 = arith.addf %328, %329 : vector<16x8xf32>
    %331 = arith.mulf %327, %327 : vector<16x8xf32>
    %332 = arith.addf %330, %331 : vector<16x8xf32>
    %cst_128 = arith.constant dense<0.000000e+00> : vector<16xf32>
    %333 = vector.multi_reduction <add>, %332, %cst_128 [1] : vector<16x8xf32> to vector<16xf32>
    %334 = vector.shape_cast %333 : vector<16xf32> to vector<16x1xf32>
    %cst_129 = arith.constant 8.000000e+00 : f32
    %335 = vector.broadcast %cst_129 : f32 to vector<16x1xf32>
    %336 = arith.divf %334, %335 : vector<16x1xf32>
    %cst_130 = arith.constant 9.99999974E-5 : f32
    %337 = vector.broadcast %cst_130 : f32 to vector<16x1xf32>
    %338 = arith.addf %336, %337 : vector<16x1xf32>
    %339 = math.sqrt %338 : vector<16x1xf32>
    %cst_131 = arith.constant 1.000000e+00 : f32
    %340 = vector.broadcast %cst_131 : f32 to vector<16x1xf32>
    %341 = arith.divf %340, %339 : vector<16x1xf32>
    %342 = tpu.concatenate %341, %341, %341 in 0 : vector<16x1xf32>, vector<16x1xf32>, vector<16x1xf32> -> vector<48x1xf32>
    %343 = vector.broadcast %342 : vector<48x1xf32> to vector<48x8xf32>
    %344 = arith.mulf %302, %343 : vector<48x8xf32>
    %c0_132 = arith.constant 0 : index
    %c96_133 = arith.constant 96 : index
    %345 = vector.load %arg0[%c0_132, %c96_133] : memref<16x160xf32, #tpu.memory_space<vmem>>, vector<16x9xf32>
    %346 = vector.extract_strided_slice %344 {offsets = [0, 0], sizes = [16, 8], strides = [1, 1]} : vector<48x8xf32> to vector<16x8xf32>
    %347 = vector.extract_strided_slice %344 {offsets = [16, 0], sizes = [16, 8], strides = [1, 1]} : vector<48x8xf32> to vector<16x8xf32>
    %348 = vector.extract_strided_slice %344 {offsets = [32, 0], sizes = [16, 8], strides = [1, 1]} : vector<48x8xf32> to vector<16x8xf32>
    %349 = vector.extract_strided_slice %345 {offsets = [0, 0], sizes = [16, 1], strides = [1, 1]} : vector<16x9xf32> to vector<16x1xf32>
    %350 = vector.broadcast %349 : vector<16x1xf32> to vector<16x8xf32>
    %351 = arith.mulf %346, %350 : vector<16x8xf32>
    %352 = vector.extract_strided_slice %345 {offsets = [0, 1], sizes = [16, 1], strides = [1, 1]} : vector<16x9xf32> to vector<16x1xf32>
    %353 = vector.broadcast %352 : vector<16x1xf32> to vector<16x8xf32>
    %354 = arith.mulf %347, %353 : vector<16x8xf32>
    %355 = arith.addf %351, %354 : vector<16x8xf32>
    %356 = vector.extract_strided_slice %345 {offsets = [0, 2], sizes = [16, 1], strides = [1, 1]} : vector<16x9xf32> to vector<16x1xf32>
    %357 = vector.broadcast %356 : vector<16x1xf32> to vector<16x8xf32>
    %358 = arith.mulf %348, %357 : vector<16x8xf32>
    %359 = arith.addf %355, %358 : vector<16x8xf32>
    %360 = vector.extract_strided_slice %345 {offsets = [0, 3], sizes = [16, 1], strides = [1, 1]} : vector<16x9xf32> to vector<16x1xf32>
    %361 = vector.broadcast %360 : vector<16x1xf32> to vector<16x8xf32>
    %362 = arith.mulf %346, %361 : vector<16x8xf32>
    %363 = vector.extract_strided_slice %345 {offsets = [0, 4], sizes = [16, 1], strides = [1, 1]} : vector<16x9xf32> to vector<16x1xf32>
    %364 = vector.broadcast %363 : vector<16x1xf32> to vector<16x8xf32>
    %365 = arith.mulf %347, %364 : vector<16x8xf32>
    %366 = arith.addf %362, %365 : vector<16x8xf32>
    %367 = vector.extract_strided_slice %345 {offsets = [0, 5], sizes = [16, 1], strides = [1, 1]} : vector<16x9xf32> to vector<16x1xf32>
    %368 = vector.broadcast %367 : vector<16x1xf32> to vector<16x8xf32>
    %369 = arith.mulf %348, %368 : vector<16x8xf32>
    %370 = arith.addf %366, %369 : vector<16x8xf32>
    %371 = vector.extract_strided_slice %345 {offsets = [0, 6], sizes = [16, 1], strides = [1, 1]} : vector<16x9xf32> to vector<16x1xf32>
    %372 = vector.broadcast %371 : vector<16x1xf32> to vector<16x8xf32>
    %373 = arith.mulf %346, %372 : vector<16x8xf32>
    %374 = vector.extract_strided_slice %345 {offsets = [0, 7], sizes = [16, 1], strides = [1, 1]} : vector<16x9xf32> to vector<16x1xf32>
    %375 = vector.broadcast %374 : vector<16x1xf32> to vector<16x8xf32>
    %376 = arith.mulf %347, %375 : vector<16x8xf32>
    %377 = arith.addf %373, %376 : vector<16x8xf32>
    %378 = vector.extract_strided_slice %345 {offsets = [0, 8], sizes = [16, 1], strides = [1, 1]} : vector<16x9xf32> to vector<16x1xf32>
    %379 = vector.broadcast %378 : vector<16x1xf32> to vector<16x8xf32>
    %380 = arith.mulf %348, %379 : vector<16x8xf32>
    %381 = arith.addf %377, %380 : vector<16x8xf32>
    %382 = tpu.concatenate %324, %359, %370, %381 in 1 : vector<16x16xf32>, vector<16x8xf32>, vector<16x8xf32>, vector<16x8xf32> -> vector<16x40xf32>
    %c0_134 = arith.constant 0 : index
    %c0_135 = arith.constant 0 : index
    %383 = vector.load %arg0[%c0_134, %c0_135] : memref<16x160xf32, #tpu.memory_space<vmem>>, vector<16x32xf32>
    %cst_136 = arith.constant 5.65685415 : f32
    %384 = vector.broadcast %cst_136 : f32 to vector<16x32xf32>
    %385 = arith.mulf %383, %384 : vector<16x32xf32>
    %c0_137 = arith.constant 0 : index
    %c120_138 = arith.constant 120 : index
    %386 = vector.load %arg0[%c0_137, %c120_138] : memref<16x160xf32, #tpu.memory_space<vmem>>, vector<16x6xf32>
    %c424 = arith.constant 424 : index
    %c0_139 = arith.constant 0 : index
    %387 = vector.load %arg1[%c424, %c0_139] : memref<552x32xf32, #tpu.memory_space<vmem>>, vector<6x32xf32>
    %cst_140 = arith.constant dense<0.000000e+00> : vector<16x32xf32>
    %388 = tpu.matmul %386, %387, %cst_140 {dimension_numbers = #tpu.dot_dimension_numbers<[1], [0], [0], [1], [0, 0, 1, 1], [], []>} : vector<16x6xf32>, vector<6x32xf32>, vector<16x32xf32> -> vector<16x32xf32>
    %c432 = arith.constant 432 : index
    %c0_141 = arith.constant 0 : index
    %389 = vector.load %arg1[%c432, %c0_141] : memref<552x32xf32, #tpu.memory_space<vmem>>, vector<1x32xf32>
    %390 = vector.broadcast %389 : vector<1x32xf32> to vector<16x32xf32>
    %391 = arith.addf %388, %390 : vector<16x32xf32>
    %c440 = arith.constant 440 : index
    %c0_142 = arith.constant 0 : index
    %392 = vector.load %arg1[%c440, %c0_142] : memref<552x32xf32, #tpu.memory_space<vmem>>, vector<1x32xf32>
    %c448 = arith.constant 448 : index
    %c0_143 = arith.constant 0 : index
    %393 = vector.load %arg1[%c448, %c0_143] : memref<552x32xf32, #tpu.memory_space<vmem>>, vector<1x32xf32>
    %cst_144 = arith.constant dense<0.000000e+00> : vector<16xf32>
    %394 = vector.multi_reduction <add>, %391, %cst_144 [1] : vector<16x32xf32> to vector<16xf32>
    %395 = vector.shape_cast %394 : vector<16xf32> to vector<16x1xf32>
    %cst_145 = arith.constant 3.200000e+01 : f32
    %396 = vector.broadcast %cst_145 : f32 to vector<16x1xf32>
    %397 = arith.divf %395, %396 : vector<16x1xf32>
    %398 = vector.broadcast %397 : vector<16x1xf32> to vector<16x32xf32>
    %399 = arith.subf %391, %398 : vector<16x32xf32>
    %400 = arith.mulf %399, %399 : vector<16x32xf32>
    %cst_146 = arith.constant dense<0.000000e+00> : vector<16xf32>
    %401 = vector.multi_reduction <add>, %400, %cst_146 [1] : vector<16x32xf32> to vector<16xf32>
    %402 = vector.shape_cast %401 : vector<16xf32> to vector<16x1xf32>
    %cst_147 = arith.constant 3.100000e+01 : f32
    %403 = vector.broadcast %cst_147 : f32 to vector<16x1xf32>
    %404 = arith.divf %402, %403 : vector<16x1xf32>
    %405 = vector.broadcast %392 : vector<1x32xf32> to vector<16x32xf32>
    %406 = arith.mulf %405, %399 : vector<16x32xf32>
    %cst_148 = arith.constant 9.99999997E-7 : f32
    %407 = vector.broadcast %cst_148 : f32 to vector<16x1xf32>
    %408 = arith.addf %404, %407 : vector<16x1xf32>
    %409 = math.sqrt %408 : vector<16x1xf32>
    %cst_149 = arith.constant 9.99999997E-7 : f32
    %410 = vector.broadcast %cst_149 : f32 to vector<16x1xf32>
    %411 = arith.addf %409, %410 : vector<16x1xf32>
    %412 = vector.broadcast %411 : vector<16x1xf32> to vector<16x32xf32>
    %413 = arith.divf %406, %412 : vector<16x32xf32>
    %414 = vector.broadcast %393 : vector<1x32xf32> to vector<16x32xf32>
    %415 = arith.addf %413, %414 : vector<16x32xf32>
    %c456 = arith.constant 456 : index
    %c0_150 = arith.constant 0 : index
    %416 = vector.load %arg1[%c456, %c0_150] : memref<552x32xf32, #tpu.memory_space<vmem>>, vector<40x32xf32>
    %cst_151 = arith.constant dense<0.000000e+00> : vector<16x32xf32>
    %417 = tpu.matmul %382, %416, %cst_151 {dimension_numbers = #tpu.dot_dimension_numbers<[1], [0], [0], [1], [0, 0, 1, 1], [], []>} : vector<16x40xf32>, vector<40x32xf32>, vector<16x32xf32> -> vector<16x32xf32>
    %c496 = arith.constant 496 : index
    %c0_152 = arith.constant 0 : index
    %418 = vector.load %arg1[%c496, %c0_152] : memref<552x32xf32, #tpu.memory_space<vmem>>, vector<1x32xf32>
    %419 = vector.broadcast %418 : vector<1x32xf32> to vector<16x32xf32>
    %420 = arith.addf %417, %419 : vector<16x32xf32>
    %c504 = arith.constant 504 : index
    %c0_153 = arith.constant 0 : index
    %421 = vector.load %arg1[%c504, %c0_153] : memref<552x32xf32, #tpu.memory_space<vmem>>, vector<16x32xf32>
    %cst_154 = arith.constant dense<0.000000e+00> : vector<16x32xf32>
    %422 = tpu.matmul %84, %421, %cst_154 {dimension_numbers = #tpu.dot_dimension_numbers<[1], [0], [0], [1], [0, 0, 1, 1], [], []>} : vector<16x16xf32>, vector<16x32xf32>, vector<16x32xf32> -> vector<16x32xf32>
    %c520 = arith.constant 520 : index
    %c0_155 = arith.constant 0 : index
    %423 = vector.load %arg1[%c520, %c0_155] : memref<552x32xf32, #tpu.memory_space<vmem>>, vector<1x32xf32>
    %424 = vector.broadcast %423 : vector<1x32xf32> to vector<16x32xf32>
    %425 = arith.addf %422, %424 : vector<16x32xf32>
    %c0_156 = arith.constant 0 : index
    %c80_157 = arith.constant 80 : index
    %426 = vector.load %arg0[%c0_156, %c80_157] : memref<16x160xf32, #tpu.memory_space<vmem>>, vector<16x15xf32>
    %c528 = arith.constant 528 : index
    %c0_158 = arith.constant 0 : index
    %427 = vector.load %arg1[%c528, %c0_158] : memref<552x32xf32, #tpu.memory_space<vmem>>, vector<15x32xf32>
    %cst_159 = arith.constant dense<0.000000e+00> : vector<16x32xf32>
    %428 = tpu.matmul %426, %427, %cst_159 {dimension_numbers = #tpu.dot_dimension_numbers<[1], [0], [0], [1], [0, 0, 1, 1], [], []>} : vector<16x15xf32>, vector<15x32xf32>, vector<16x32xf32> -> vector<16x32xf32>
    %c544 = arith.constant 544 : index
    %c0_160 = arith.constant 0 : index
    %429 = vector.load %arg1[%c544, %c0_160] : memref<552x32xf32, #tpu.memory_space<vmem>>, vector<1x32xf32>
    %430 = vector.broadcast %429 : vector<1x32xf32> to vector<16x32xf32>
    %431 = arith.addf %428, %430 : vector<16x32xf32>
    %432 = arith.addf %385, %415 : vector<16x32xf32>
    %433 = arith.addf %432, %420 : vector<16x32xf32>
    %434 = arith.addf %433, %425 : vector<16x32xf32>
    %435 = arith.addf %434, %431 : vector<16x32xf32>
    %c0_161 = arith.constant 0 : index
    %c32_162 = arith.constant 32 : index
    %436 = vector.load %arg0[%c0_161, %c32_162] : memref<16x160xf32, #tpu.memory_space<vmem>>, vector<16x32xf32>
    %437 = arith.addf %435, %436 : vector<16x32xf32>
    %c0_163 = arith.constant 0 : index
    %c152_164 = arith.constant 152 : index
    %438 = vector.load %arg0[%c0_163, %c152_164] : memref<16x160xf32, #tpu.memory_space<vmem>>, vector<16x1xf32>
    %439 = vector.broadcast %438 : vector<16x1xf32> to vector<16x32xf32>
    %440 = arith.mulf %437, %439 : vector<16x32xf32>
    %441 = tpu.concatenate %440, %385, %415, %420, %425, %431 in 1 : vector<16x32xf32>, vector<16x32xf32>, vector<16x32xf32>, vector<16x32xf32>, vector<16x32xf32>, vector<16x32xf32> -> vector<16x192xf32>
    %c0_165 = arith.constant 0 : index
    %c0_166 = arith.constant 0 : index
    %442 = vector.load %arg2[%c0_165, %c0_166] : memref<16x192xf32, #tpu.memory_space<vmem>>, vector<16x192xf32>
    tpu.vector_store %arg2[%c0_165, %c0_166], %441 {strides = array<i32>} : memref<16x192xf32, #tpu.memory_space<vmem>>, vector<16x192xf32>,
    return
  }
}

module attributes {stable_mosaic.version = 11 : i64} {
  func.func @kernel(%arg0: i32, %arg1: memref<16x32xf32, #tpu.memory_space<vmem>>, %arg2: memref<64x64xf32, #tpu.memory_space<vmem>>, %arg3: memref<1x176x96xf32, #tpu.memory_space<vmem>>, %arg4: memref<16x32xf32, #tpu.memory_space<vmem>>) attributes {dimension_semantics = [#tpu.dimension_semantics<arbitrary>], iteration_bounds = array<i64: 2>, scalar_prefetch = 0 : i64, scratch_operands = 0 : i64, tpu.core_type = #tpu.core_type<tc>, window_params = [{pipeline_mode = #tpu.pipeline_mode<synchronous>, transform_indices = @transform_0, window_bounds = array<i64: 16, 32>}, {pipeline_mode = #tpu.pipeline_mode<synchronous>, transform_indices = @transform_1, window_bounds = array<i64: 64, 64>}, {transform_indices = @transform_2, window_bounds = array<i64: 1, 176, 96>}, {pipeline_mode = #tpu.pipeline_mode<synchronous>, transform_indices = @transform_3, window_bounds = array<i64: 16, 32>}]} {
    %c0_i32 = arith.constant 0 : i32
    %0 = arith.cmpi eq, %arg0, %c0_i32 : i32
    %1 = arith.extui %0 : i1 to i32
    %c0_i32_0 = arith.constant 0 : i32
    %2 = arith.cmpi ne, %1, %c0_i32_0 : i32
    scf.if %2 {
      %c0_37 = arith.constant 0 : index
      %c0_38 = arith.constant 0 : index
      %122 = vector.load %arg1[%c0_37, %c0_38] : memref<16x32xf32, #tpu.memory_space<vmem>>, vector<16x32xf32>
      %c0_39 = arith.constant 0 : index
      %c0_40 = arith.constant 0 : index
      %123 = vector.load %arg4[%c0_39, %c0_40] : memref<16x32xf32, #tpu.memory_space<vmem>>, vector<16x32xf32>
      tpu.vector_store %arg4[%c0_39, %c0_40], %122 {strides = array<i32>} : memref<16x32xf32, #tpu.memory_space<vmem>>, vector<16x32xf32>,
    } else {
    }
    %c0 = arith.constant 0 : index
    %c0_1 = arith.constant 0 : index
    %3 = vector.load %arg4[%c0, %c0_1] : memref<16x32xf32, #tpu.memory_space<vmem>>, vector<16x32xf32>
    %c0_2 = arith.constant 0 : index
    %c160 = arith.constant 160 : index
    %c0_3 = arith.constant 0 : index
    %4 = vector.load %arg3[%c0_2, %c160, %c0_3] : memref<1x176x96xf32, #tpu.memory_space<vmem>>, vector<1x10x96xf32>
    %5 = vector.shape_cast %4 : vector<1x10x96xf32> to vector<10x96xf32>
    %6 = vector.extract_strided_slice %5 {offsets = [0, 0], sizes = [1, 96], strides = [1, 1]} : vector<10x96xf32> to vector<1x96xf32>
    %7 = vector.extract_strided_slice %5 {offsets = [1, 0], sizes = [1, 32], strides = [1, 1]} : vector<10x96xf32> to vector<1x32xf32>
    %8 = vector.extract_strided_slice %5 {offsets = [2, 0], sizes = [1, 32], strides = [1, 1]} : vector<10x96xf32> to vector<1x32xf32>
    %9 = vector.extract_strided_slice %5 {offsets = [3, 0], sizes = [1, 32], strides = [1, 1]} : vector<10x96xf32> to vector<1x32xf32>
    %10 = vector.extract_strided_slice %5 {offsets = [4, 0], sizes = [1, 64], strides = [1, 1]} : vector<10x96xf32> to vector<1x64xf32>
    %11 = vector.extract_strided_slice %5 {offsets = [5, 0], sizes = [1, 32], strides = [1, 1]} : vector<10x96xf32> to vector<1x32xf32>
    %12 = vector.extract_strided_slice %5 {offsets = [6, 0], sizes = [1, 32], strides = [1, 1]} : vector<10x96xf32> to vector<1x32xf32>
    %13 = vector.extract_strided_slice %5 {offsets = [7, 0], sizes = [1, 32], strides = [1, 1]} : vector<10x96xf32> to vector<1x32xf32>
    %14 = vector.extract_strided_slice %5 {offsets = [8, 0], sizes = [1, 32], strides = [1, 1]} : vector<10x96xf32> to vector<1x32xf32>
    %15 = vector.extract_strided_slice %5 {offsets = [9, 0], sizes = [1, 32], strides = [1, 1]} : vector<10x96xf32> to vector<1x32xf32>
    %c0_4 = arith.constant 0 : index
    %c0_5 = arith.constant 0 : index
    %c0_6 = arith.constant 0 : index
    %16 = vector.load %arg3[%c0_4, %c0_5, %c0_6] : memref<1x176x96xf32, #tpu.memory_space<vmem>>, vector<1x32x96xf32>
    %17 = vector.shape_cast %16 : vector<1x32x96xf32> to vector<32x96xf32>
    %cst = arith.constant dense<0.000000e+00> : vector<16x96xf32>
    %18 = tpu.matmul %3, %17, %cst {dimension_numbers = #tpu.dot_dimension_numbers<[1], [0], [0], [1], [0, 0, 1, 1], [], []>} : vector<16x32xf32>, vector<32x96xf32>, vector<16x96xf32> -> vector<16x96xf32>
    %19 = vector.broadcast %6 : vector<1x96xf32> to vector<16x96xf32>
    %20 = arith.addf %18, %19 : vector<16x96xf32>
    %21 = vector.extract_strided_slice %20 {offsets = [0, 0], sizes = [16, 8], strides = [1, 1]} : vector<16x96xf32> to vector<16x8xf32>
    %22 = vector.extract_strided_slice %20 {offsets = [0, 8], sizes = [16, 8], strides = [1, 1]} : vector<16x96xf32> to vector<16x8xf32>
    %23 = vector.extract_strided_slice %20 {offsets = [0, 16], sizes = [16, 8], strides = [1, 1]} : vector<16x96xf32> to vector<16x8xf32>
    %24 = vector.extract_strided_slice %20 {offsets = [0, 24], sizes = [16, 8], strides = [1, 1]} : vector<16x96xf32> to vector<16x8xf32>
    %25 = tpu.concatenate %21, %22, %23, %24 in 0 : vector<16x8xf32>, vector<16x8xf32>, vector<16x8xf32>, vector<16x8xf32> -> vector<64x8xf32>
    %cst_7 = arith.constant 0.353553385 : f32
    %26 = vector.broadcast %cst_7 : f32 to vector<64x8xf32>
    %27 = arith.mulf %25, %26 : vector<64x8xf32>
    %28 = vector.extract_strided_slice %20 {offsets = [0, 32], sizes = [16, 8], strides = [1, 1]} : vector<16x96xf32> to vector<16x8xf32>
    %29 = vector.extract_strided_slice %20 {offsets = [0, 40], sizes = [16, 8], strides = [1, 1]} : vector<16x96xf32> to vector<16x8xf32>
    %30 = vector.extract_strided_slice %20 {offsets = [0, 48], sizes = [16, 8], strides = [1, 1]} : vector<16x96xf32> to vector<16x8xf32>
    %31 = vector.extract_strided_slice %20 {offsets = [0, 56], sizes = [16, 8], strides = [1, 1]} : vector<16x96xf32> to vector<16x8xf32>
    %32 = tpu.concatenate %28, %29, %30, %31 in 0 : vector<16x8xf32>, vector<16x8xf32>, vector<16x8xf32>, vector<16x8xf32> -> vector<64x8xf32>
    %33 = vector.extract_strided_slice %20 {offsets = [0, 64], sizes = [16, 8], strides = [1, 1]} : vector<16x96xf32> to vector<16x8xf32>
    %34 = vector.extract_strided_slice %20 {offsets = [0, 72], sizes = [16, 8], strides = [1, 1]} : vector<16x96xf32> to vector<16x8xf32>
    %35 = vector.extract_strided_slice %20 {offsets = [0, 80], sizes = [16, 8], strides = [1, 1]} : vector<16x96xf32> to vector<16x8xf32>
    %36 = vector.extract_strided_slice %20 {offsets = [0, 88], sizes = [16, 8], strides = [1, 1]} : vector<16x96xf32> to vector<16x8xf32>
    %37 = tpu.concatenate %33, %34, %35, %36 in 0 : vector<16x8xf32>, vector<16x8xf32>, vector<16x8xf32>, vector<16x8xf32> -> vector<64x8xf32>
    %cst_8 = arith.constant dense<0.000000e+00> : vector<64x64xf32>
    %38 = tpu.matmul %27, %32, %cst_8 {dimension_numbers = #tpu.dot_dimension_numbers<[1], [1], [0], [0], [0, 0, 1, 0], [], []>} : vector<64x8xf32>, vector<64x8xf32>, vector<64x64xf32> -> vector<64x64xf32>
    %c0_9 = arith.constant 0 : index
    %c0_10 = arith.constant 0 : index
    %39 = vector.load %arg2[%c0_9, %c0_10] : memref<64x64xf32, #tpu.memory_space<vmem>>, vector<64x64xf32>
    %40 = arith.addf %38, %39 : vector<64x64xf32>
    %cst_11 = arith.constant dense<0xFF800000> : vector<64xf32>
    %41 = vector.multi_reduction <maximumf>, %40, %cst_11 [1] : vector<64x64xf32> to vector<64xf32>
    %42 = vector.shape_cast %41 : vector<64xf32> to vector<64x1xf32>
    %43 = vector.broadcast %42 : vector<64x1xf32> to vector<64x64xf32>
    %44 = arith.subf %40, %43 : vector<64x64xf32>
    %45 = math.exp %44 : vector<64x64xf32>
    %cst_12 = arith.constant dense<0.000000e+00> : vector<64xf32>
    %46 = vector.multi_reduction <add>, %45, %cst_12 [1] : vector<64x64xf32> to vector<64xf32>
    %47 = vector.shape_cast %46 : vector<64xf32> to vector<64x1xf32>
    %48 = tpu.reciprocal %47 {approx = true} : vector<64x1xf32> -> vector<64x1xf32>
    %49 = vector.broadcast %48 : vector<64x1xf32> to vector<64x64xf32>
    %50 = arith.mulf %45, %49 : vector<64x64xf32>
    %cst_13 = arith.constant dense<0.000000e+00> : vector<64x8xf32>
    %51 = tpu.matmul %50, %37, %cst_13 {dimension_numbers = #tpu.dot_dimension_numbers<[1], [0], [0], [1], [0, 0, 1, 1], [], []>} : vector<64x64xf32>, vector<64x8xf32>, vector<64x8xf32> -> vector<64x8xf32>
    %52 = vector.extract_strided_slice %51 {offsets = [0, 0], sizes = [16, 8], strides = [1, 1]} : vector<64x8xf32> to vector<16x8xf32>
    %53 = vector.extract_strided_slice %51 {offsets = [16, 0], sizes = [16, 8], strides = [1, 1]} : vector<64x8xf32> to vector<16x8xf32>
    %54 = vector.extract_strided_slice %51 {offsets = [32, 0], sizes = [16, 8], strides = [1, 1]} : vector<64x8xf32> to vector<16x8xf32>
    %55 = vector.extract_strided_slice %51 {offsets = [48, 0], sizes = [16, 8], strides = [1, 1]} : vector<64x8xf32> to vector<16x8xf32>
    %56 = tpu.concatenate %52, %53, %54, %55 in 1 : vector<16x8xf32>, vector<16x8xf32>, vector<16x8xf32>, vector<16x8xf32> -> vector<16x32xf32>
    %c0_14 = arith.constant 0 : index
    %c32 = arith.constant 32 : index
    %c0_15 = arith.constant 0 : index
    %57 = vector.load %arg3[%c0_14, %c32, %c0_15] : memref<1x176x96xf32, #tpu.memory_space<vmem>>, vector<1x32x32xf32>
    %58 = vector.shape_cast %57 : vector<1x32x32xf32> to vector<32x32xf32>
    %cst_16 = arith.constant dense<0.000000e+00> : vector<16x32xf32>
    %59 = tpu.matmul %56, %58, %cst_16 {dimension_numbers = #tpu.dot_dimension_numbers<[1], [0], [0], [1], [0, 0, 1, 1], [], []>} : vector<16x32xf32>, vector<32x32xf32>, vector<16x32xf32> -> vector<16x32xf32>
    %60 = vector.broadcast %7 : vector<1x32xf32> to vector<16x32xf32>
    %61 = arith.addf %59, %60 : vector<16x32xf32>
    %62 = arith.addf %3, %61 : vector<16x32xf32>
    %cst_17 = arith.constant dense<0.000000e+00> : vector<16xf32>
    %63 = vector.multi_reduction <add>, %62, %cst_17 [1] : vector<16x32xf32> to vector<16xf32>
    %64 = vector.shape_cast %63 : vector<16xf32> to vector<16x1xf32>
    %cst_18 = arith.constant 3.200000e+01 : f32
    %65 = vector.broadcast %cst_18 : f32 to vector<16x1xf32>
    %66 = arith.divf %64, %65 : vector<16x1xf32>
    %67 = vector.broadcast %66 : vector<16x1xf32> to vector<16x32xf32>
    %68 = arith.subf %62, %67 : vector<16x32xf32>
    %69 = arith.mulf %68, %68 : vector<16x32xf32>
    %cst_19 = arith.constant dense<0.000000e+00> : vector<16xf32>
    %70 = vector.multi_reduction <add>, %69, %cst_19 [1] : vector<16x32xf32> to vector<16xf32>
    %71 = vector.shape_cast %70 : vector<16xf32> to vector<16x1xf32>
    %cst_20 = arith.constant 3.200000e+01 : f32
    %72 = vector.broadcast %cst_20 : f32 to vector<16x1xf32>
    %73 = arith.divf %71, %72 : vector<16x1xf32>
    %cst_21 = arith.constant 9.99999974E-6 : f32
    %74 = vector.broadcast %cst_21 : f32 to vector<16x1xf32>
    %75 = arith.addf %73, %74 : vector<16x1xf32>
    %76 = math.rsqrt %75 : vector<16x1xf32>
    %77 = vector.broadcast %76 : vector<16x1xf32> to vector<16x32xf32>
    %78 = arith.mulf %68, %77 : vector<16x32xf32>
    %79 = vector.broadcast %8 : vector<1x32xf32> to vector<16x32xf32>
    %80 = arith.mulf %78, %79 : vector<16x32xf32>
    %81 = vector.broadcast %9 : vector<1x32xf32> to vector<16x32xf32>
    %82 = arith.addf %80, %81 : vector<16x32xf32>
    %c0_22 = arith.constant 0 : index
    %c64 = arith.constant 64 : index
    %c0_23 = arith.constant 0 : index
    %83 = vector.load %arg3[%c0_22, %c64, %c0_23] : memref<1x176x96xf32, #tpu.memory_space<vmem>>, vector<1x32x64xf32>
    %84 = vector.shape_cast %83 : vector<1x32x64xf32> to vector<32x64xf32>
    %cst_24 = arith.constant dense<0.000000e+00> : vector<16x64xf32>
    %85 = tpu.matmul %82, %84, %cst_24 {dimension_numbers = #tpu.dot_dimension_numbers<[1], [0], [0], [1], [0, 0, 1, 1], [], []>} : vector<16x32xf32>, vector<32x64xf32>, vector<16x64xf32> -> vector<16x64xf32>
    %86 = vector.broadcast %10 : vector<1x64xf32> to vector<16x64xf32>
    %87 = arith.addf %85, %86 : vector<16x64xf32>
    %cst_25 = arith.constant 0.000000e+00 : f32
    %88 = vector.broadcast %cst_25 : f32 to vector<16x64xf32>
    %89 = arith.maximumf %87, %88 : vector<16x64xf32>
    %c0_26 = arith.constant 0 : index
    %c96 = arith.constant 96 : index
    %c0_27 = arith.constant 0 : index
    %90 = vector.load %arg3[%c0_26, %c96, %c0_27] : memref<1x176x96xf32, #tpu.memory_space<vmem>>, vector<1x64x32xf32>
    %91 = vector.shape_cast %90 : vector<1x64x32xf32> to vector<64x32xf32>
    %cst_28 = arith.constant dense<0.000000e+00> : vector<16x32xf32>
    %92 = tpu.matmul %89, %91, %cst_28 {dimension_numbers = #tpu.dot_dimension_numbers<[1], [0], [0], [1], [0, 0, 1, 1], [], []>} : vector<16x64xf32>, vector<64x32xf32>, vector<16x32xf32> -> vector<16x32xf32>
    %93 = vector.broadcast %11 : vector<1x32xf32> to vector<16x32xf32>
    %94 = arith.addf %92, %93 : vector<16x32xf32>
    %95 = arith.addf %82, %94 : vector<16x32xf32>
    %cst_29 = arith.constant dense<0.000000e+00> : vector<16xf32>
    %96 = vector.multi_reduction <add>, %95, %cst_29 [1] : vector<16x32xf32> to vector<16xf32>
    %97 = vector.shape_cast %96 : vector<16xf32> to vector<16x1xf32>
    %cst_30 = arith.constant 3.200000e+01 : f32
    %98 = vector.broadcast %cst_30 : f32 to vector<16x1xf32>
    %99 = arith.divf %97, %98 : vector<16x1xf32>
    %100 = vector.broadcast %99 : vector<16x1xf32> to vector<16x32xf32>
    %101 = arith.subf %95, %100 : vector<16x32xf32>
    %102 = arith.mulf %101, %101 : vector<16x32xf32>
    %cst_31 = arith.constant dense<0.000000e+00> : vector<16xf32>
    %103 = vector.multi_reduction <add>, %102, %cst_31 [1] : vector<16x32xf32> to vector<16xf32>
    %104 = vector.shape_cast %103 : vector<16xf32> to vector<16x1xf32>
    %cst_32 = arith.constant 3.200000e+01 : f32
    %105 = vector.broadcast %cst_32 : f32 to vector<16x1xf32>
    %106 = arith.divf %104, %105 : vector<16x1xf32>
    %cst_33 = arith.constant 9.99999974E-6 : f32
    %107 = vector.broadcast %cst_33 : f32 to vector<16x1xf32>
    %108 = arith.addf %106, %107 : vector<16x1xf32>
    %109 = math.rsqrt %108 : vector<16x1xf32>
    %110 = vector.broadcast %109 : vector<16x1xf32> to vector<16x32xf32>
    %111 = arith.mulf %101, %110 : vector<16x32xf32>
    %112 = vector.broadcast %12 : vector<1x32xf32> to vector<16x32xf32>
    %113 = arith.mulf %111, %112 : vector<16x32xf32>
    %114 = vector.broadcast %13 : vector<1x32xf32> to vector<16x32xf32>
    %115 = arith.addf %113, %114 : vector<16x32xf32>
    %c1_i32 = arith.constant 1 : i32
    %116 = arith.cmpi slt, %arg0, %c1_i32 : i32
    %117 = arith.extui %116 : i1 to i32
    %c0_i32_34 = arith.constant 0 : i32
    %118 = arith.cmpi ne, %117, %c0_i32_34 : i32
    scf.if %118 {
      %c0_37 = arith.constant 0 : index
      %c0_38 = arith.constant 0 : index
      %122 = vector.load %arg4[%c0_37, %c0_38] : memref<16x32xf32, #tpu.memory_space<vmem>>, vector<16x32xf32>
      tpu.vector_store %arg4[%c0_37, %c0_38], %115 {strides = array<i32>} : memref<16x32xf32, #tpu.memory_space<vmem>>, vector<16x32xf32>,
    } else {
    }
    %c1_i32_35 = arith.constant 1 : i32
    %119 = arith.cmpi eq, %arg0, %c1_i32_35 : i32
    %120 = arith.extui %119 : i1 to i32
    %c0_i32_36 = arith.constant 0 : i32
    %121 = arith.cmpi ne, %120, %c0_i32_36 : i32
    scf.if %121 {
      %cst_37 = arith.constant dense<0.000000e+00> : vector<16xf32>
      %122 = vector.multi_reduction <add>, %115, %cst_37 [1] : vector<16x32xf32> to vector<16xf32>
      %123 = vector.shape_cast %122 : vector<16xf32> to vector<16x1xf32>
      %cst_38 = arith.constant 3.200000e+01 : f32
      %124 = vector.broadcast %cst_38 : f32 to vector<16x1xf32>
      %125 = arith.divf %123, %124 : vector<16x1xf32>
      %126 = vector.broadcast %125 : vector<16x1xf32> to vector<16x32xf32>
      %127 = arith.subf %115, %126 : vector<16x32xf32>
      %128 = arith.mulf %127, %127 : vector<16x32xf32>
      %cst_39 = arith.constant dense<0.000000e+00> : vector<16xf32>
      %129 = vector.multi_reduction <add>, %128, %cst_39 [1] : vector<16x32xf32> to vector<16xf32>
      %130 = vector.shape_cast %129 : vector<16xf32> to vector<16x1xf32>
      %cst_40 = arith.constant 3.200000e+01 : f32
      %131 = vector.broadcast %cst_40 : f32 to vector<16x1xf32>
      %132 = arith.divf %130, %131 : vector<16x1xf32>
      %cst_41 = arith.constant 9.99999974E-6 : f32
      %133 = vector.broadcast %cst_41 : f32 to vector<16x1xf32>
      %134 = arith.addf %132, %133 : vector<16x1xf32>
      %135 = math.rsqrt %134 : vector<16x1xf32>
      %136 = vector.broadcast %135 : vector<16x1xf32> to vector<16x32xf32>
      %137 = arith.mulf %127, %136 : vector<16x32xf32>
      %138 = vector.broadcast %14 : vector<1x32xf32> to vector<16x32xf32>
      %139 = arith.mulf %137, %138 : vector<16x32xf32>
      %140 = vector.broadcast %15 : vector<1x32xf32> to vector<16x32xf32>
      %141 = arith.addf %139, %140 : vector<16x32xf32>
      %c0_42 = arith.constant 0 : index
      %c0_43 = arith.constant 0 : index
      %142 = vector.load %arg4[%c0_42, %c0_43] : memref<16x32xf32, #tpu.memory_space<vmem>>, vector<16x32xf32>
      tpu.vector_store %arg4[%c0_42, %c0_43], %141 {strides = array<i32>} : memref<16x32xf32, #tpu.memory_space<vmem>>, vector<16x32xf32>,
    } else {
    }
    return
  }
  func.func @transform_0(%arg0: i32) -> (i32, i32) {
    %c0_i32 = arith.constant 0 : i32
    %c0_i32_0 = arith.constant 0 : i32
    %c0_i32_1 = arith.constant 0 : i32
    return %c0_i32, %c0_i32_0 : i32, i32
  }
  func.func @transform_1(%arg0: i32) -> (i32, i32) {
    %c0_i32 = arith.constant 0 : i32
    %c0_i32_0 = arith.constant 0 : i32
    %c0_i32_1 = arith.constant 0 : i32
    return %c0_i32, %c0_i32_0 : i32, i32
  }
  func.func @transform_2(%arg0: i32) -> (i32, i32, i32) {
    %c0_i32 = arith.constant 0 : i32
    %c0_i32_0 = arith.constant 0 : i32
    %c0_i32_1 = arith.constant 0 : i32
    return %arg0, %c0_i32, %c0_i32_0 : i32, i32, i32
  }
  func.func @transform_3(%arg0: i32) -> (i32, i32) {
    %c0_i32 = arith.constant 0 : i32
    %c0_i32_0 = arith.constant 0 : i32
    %c0_i32_1 = arith.constant 0 : i32
    return %c0_i32, %c0_i32_0 : i32, i32
  }
}

</mosaic_0001>

<bundles_post_ra>
// kernel: gvp_transformer_encoder_forward.3
= control target key start
LH: loop header
LB: loop body
LE: loop exit
PB: predicated region body
PF: predicated region fallthrough
CT: control target
= control target key end

     0   :  { %s1590_s12 = smov 0   ;;  %s1853_s0 = inlined_call_operand.vmem [shape: f32[16,32], index: 0, kind: input, shape index: {}]   ;;  %s1854_s1 = inlined_call_operand.vmem [shape: f32[64,64], index: 1, kind: input, shape index: {}]   ;;  %s1855_s2 = inlined_call_operand.vmem [shape: f32[2,176,96], index: 2, kind: input, shape index: {}]   ;;  %s1856_s3 = inlined_call_operand.vmem [shape: f32[16,32], index: 3, kind: output, shape index: {}]  }
   0x1 LB: > { %s1596_s13 = sadd.s32 4294967295, %s1560_s12   ;;  %p1166_p0 = scmp.ge.s32.totalorder %s1560_s12, 1  ;;  %s1560_s12 = sphi %s1590_s12, %s13_s12  }
   0x2   : > { %p132_p1 = scmp.lt.s32.totalorder %s1560_s12, 3 }
   0x4   : > { %p133_p2 = pnand %p1166_p0, %p132_p1 }
   0x5   : > { %p151_p3 = scmp.lt.s32.totalorder (!%p133_p2), %s1596_s13, 1  ;;  %p1168_p4 = scmp.ne.s32.totalorder (!%p133_p2), %s1596_s13, 0 }
   0x6   : > { %136 = sbr.rel (%p133_p2) target bundleno = 3015 (0xbc7), region = 32 }
   0xd   : > { %s152_s14 = scalar_select %p151_p3, %s1596_s13, 1 }
   0xe   : > { %159 = sbr.rel (%p1168_p4) target bundleno = 21 (0x15), region = 36  ;;  %v160_v0 = vld [vmem:[%s1853_s0] sm:$0xff] (!%p1168_p4)  ;;  %vm162_vm0 = vcmask (!%p1168_p4), 261120   ;;  %v161_v1 = vld [vmem:[%s1853_s0 + $0x8] sm:$0xff] (!%p1168_p4) }
   0xf   : > { %s1453_s15 = smul.u32 176, %s152_s14  ;;  %163 = vst.msk [vmem:[%s1856_s3] sm:$0xff] (!%p1168_p4), %vm162_vm0, %v160_v0  ;;  %164 = vst.msk [vmem:[%s1856_s3 + $0x8] sm:$0xff] (!%p1168_p4), %vm162_vm0, %v161_v1 }
  0x11   : > { %s1605_s18 = scalar_lea.vmem %s1855_s2, %s1453_s15 }
  0x15 PF: > { %v1621_v2 = vld [vmem:[%s1605_s18 + $0xa8] sm:$0x3]  ;;  %v169_v3 = vld [vmem:[%s1605_s18] sm:$0xff]  ;;  %vm177_vm1 = vcmask 261120   ;;  %v171_v6 = vld [vmem:[%s1605_s18 + $0x10] sm:$0xff]  ;;  %v173_v11 = vlaneseq  ;;  %vm311_vm2 = vcmask 64512  }
  0x16   : > { %v170_v4 = vld [vmem:[%s1605_s18 + $0x8] sm:$0xff]  ;;  %v172_v7 = vld [vmem:[%s1605_s18 + $0x18] sm:$0xff]  ;;  %v1630_v8 = vld [vmem:[%s1856_s3] sm:$0xff]  ;;  %s1562_s4 = smov 112   ;;  %s1563_s5 = smov 120   ;;  %vm457_vm4 = vcmask 523264  }
  0x17   : > { %v1373_v5 = vpack.c.bf16 %v170_v4, %v169_v3  ;;  %v1377_v9 = vpack.c.bf16 %v172_v7, %v171_v6  ;;  %1273 = vmatprep.mubr.msk.f32.mxu0 %vm177_vm1, %v1630_v8  ;;  %v1637_v10 = vld [vmem:[%s1856_s3 + $0x8] sm:$0xff]  ;;  %v1641_v12 = vshrl.u32 %v173_v11, 7  ;;  %v1645_v14 = vld [vmem:[%s1605_s18 + $0xa0] sm:$0xff]  ;;  %s1564_s6 = smov 104   ;;  %s1565_s7 = smov 96   ;;  %vm1665_vm3 = vmpackc.low %vm311_vm2, %vm311_vm2  ;;  %vm725_vm5 = vcmask 130048  }
  0x18   : > { %v288_v55 = vld [vmem:[%s1854_s1 + $0x8] sm:$0xff]  ;;  %v287_v56 = vld [vmem:[%s1854_s1] sm:$0xff]  ;;  %v289_v62 = vld [vmem:[%s1854_s1 + $0x10] sm:$0xff]  ;;  %s1566_s27 = smov 64   ;;  %s1567_s28 = smov 8   ;;  %vm728_vm6 = vcmask 195584  }
  0x19   : > { %1374 = vmatprep.subr.bf16.mxu0 %v1373_v5  ;;  %v175_v13 = vsub.s32 0, %v1641_v12  ;;  %v290_v1 = vld [vmem:[%s1854_s1 + $0x18] sm:$0xff]  ;;  %v292_v11 = vld [vmem:[%s1854_s1 + $0x28] sm:$0xff]  ;;  %s1568_s29 = smov 16   ;;  %s1569_s30 = smov 24  }
  0x1a   : > { %1376 = vmatpush3.bf16.msra.mxu0 %v1373_v5  ;;  %v291_v5 = vld [vmem:[%s1854_s1 + $0x20] sm:$0xff]  ;;  %p1201_p5 = scmp.ge.s32.totalorder %s1596_s13, 1 }
  0x1b   : > { %1378 = vmatprep.subr.bf16.mxu0 %v1377_v9  ;;  %v176_v15 = vrot.slane %v1645_v14, %v175_v13 }
  0x1e   : > { %1380 = vmatpush3.bf16.msra.mxu0 %v1377_v9 }
  0x21   : > { %1274 = vmatmul.mubr.msk.f32.vlgmr.msra.gmra.mrb[0].mxu0 %vm177_vm1, %v1637_v10 }
  0xf4   : > { %v1275_v16 = vpop.f32.mrb[0].mxu0 }
  0xf5   : > { %v256_v17 = vadd.f32 %v1275_v16, %v176_v15  ;;  %v250_v18 = vpop.f32.mrb[1].mxu0 }
  0xf6   : > { %v251_v19 = vadd.f32 %v250_v18, %v176_v15 }
  0xf7   : > { %v280_v48 = vmul.f32 0.35355338, %v256_v17 }
  0xf8   : > { %267 = vrot.lane.b32.xlu1 %v251_v19, %s1562_s4  ;;  %261 = vrot.lane.b32.xlu0 %v251_v19, %s1563_s5  ;;  %v279_v20 = vmul.f32 0.35355338, %v251_v19  ;;  %v1650_v21 = vpack.i.bf16 %v256_v17, %v251_v19 }
  0xfa   : > { %1292 = vmatprep.mubr.msk.f32.mxu1 %vm311_vm2, %v279_v20 }
  0xfc   : > { %269 = vrot.lane.b32.xlu1 %v256_v17, %s1562_s4  ;;  %263 = vrot.lane.b32.xlu0 %v256_v17, %s1563_s5 }
 0x100   : > { %275 = vrot.lane.b32.xlu1 %v256_v17, %s1564_s6  ;;  %273 = vrot.lane.b32.xlu0 %v251_v19, %s1564_s6  ;;  %v293_v17 = vld [vmem:[%s1854_s1 + $0x30] sm:$0xff] }
 0x104   : > { %1471 = vrot.lane.b32.xlu0 %v1650_v21, %s1565_s7 }
 0x16a   : > { %v268_v22 = vpop.permute.xlu1 %267  ;;  %v262_v23 = vpop.permute.xlu0 %261 }
 0x16b   : > { %v281_v49 = vmul.f32 0.35355338, %v262_v23  ;;  %v283_v51 = vmul.f32 0.35355338, %v268_v22 }
 0x16e   : > { %v270_v24 = vpop.permute.xlu1 %269  ;;  %v264_v25 = vpop.permute.xlu0 %263 }
 0x16f   : > { %v1654_v26 = vpack.i.bf16 %v270_v24, %v268_v22  ;;  %v1656_v27 = vpack.i.bf16 %v264_v25, %v262_v23  ;;  %v282_v50 = vmul.f32 0.35355338, %v264_v25  ;;  %v284_v52 = vmul.f32 0.35355338, %v270_v24  ;;  %v294_v23 = vld [vmem:[%s1854_s1 + $0x38] sm:$0xff] }
 0x171   : > { %1481 = vrot.lane.b32.xlu0 %v1654_v26, %s1565_s7  ;;  %1476 = vrot.lane.b32.xlu1 %v1656_v27, %s1565_s7 }
 0x172   : > { %v276_v28 = vpop.permute.xlu1 %275  ;;  %v274_v29 = vpop.permute.xlu0 %273 }
 0x173   : > { %v1660_v30 = vpack.i.bf16 %v276_v28, %v274_v29  ;;  %v285_v53 = vmul.f32 0.35355338, %v274_v29  ;;  %v286_v54 = vmul.f32 0.35355338, %v276_v28 }
 0x175   : > { %1486 = vrot.lane.b32.xlu1 %v1660_v30, %s1565_s7 }
 0x176   : > { %v1472_v31 = vpop.permute.xlu0 %1471 }
 0x177   : > { %v1474_v32 = vunpack.i.h.bf16 %v1472_v31  ;;  %v1473_v33 = vunpack.i.l.bf16 %v1472_v31 }
 0x179   : > { %v1381_v35 = vpack.c.bf16 %v1474_v32, %v1473_v33 }
 0x17b   : > { %1383 = vmatprep.subr.msk.bf16.mxu1 %vm1665_vm3, %v1381_v35 }
 0x17c   : > { %1386 = vmatpush3.bf16.xpose.msk.msra.mxu1 %vm1665_vm3, %v1381_v35 }
 0x1e3   : > { %v1482_v36 = vpop.permute.xlu0 %1481  ;;  %v1477_v37 = vpop.permute.xlu1 %1476 }
 0x1e4   : > { %v1479_v38 = vunpack.i.h.bf16 %v1477_v37  ;;  %v1478_v39 = vunpack.i.l.bf16 %v1477_v37  ;;  %v1484_v40 = vunpack.i.h.bf16 %v1482_v36  ;;  %v1483_v41 = vunpack.i.l.bf16 %v1482_v36 }
 0x1e6   : > { %v1387_v42 = vpack.c.bf16 %v1479_v38, %v1478_v39  ;;  %v1393_v43 = vpack.c.bf16 %v1484_v40, %v1483_v41 }
 0x1e7   : > { %v1487_v44 = vpop.permute.xlu1 %1486 }
 0x1e8   : > { %1389 = vmatprep.subr.msk.bf16.mxu1 %vm1665_vm3, %v1387_v42  ;;  %v1489_v45 = vunpack.i.h.bf16 %v1487_v44  ;;  %v1488_v46 = vunpack.i.l.bf16 %v1487_v44 }
 0x1e9   : > { %1392 = vmatpush3.bf16.xpose.msk.msra.mxu1 %vm1665_vm3, %v1387_v42 }
 0x1ea   : > { %1395 = vmatprep.subr.msk.bf16.mxu1 %vm1665_vm3, %v1393_v43  ;;  %v1399_v47 = vpack.c.bf16 %v1489_v45, %v1488_v46 }
 0x1f1   : > { %1398 = vmatpush3.bf16.xpose.msk.msra.mxu1 %vm1665_vm3, %v1393_v43 }
 0x1f2   : > { %1401 = vmatprep.subr.msk.bf16.mxu1 %vm1665_vm3, %v1399_v47 }
 0x1f9   : > { %1404 = vmatpush3.bf16.xpose.msk.msra.mxu1 %vm1665_vm3, %v1399_v47 }
 0x200   : > { %1293 = vmatmul.mubr.msk.f32.vlgmr.msra.gmra.mrb[0].mxu1 %vm311_vm2, %v280_v48 }
 0x201   : > { %1295 = vmatprep.mubr.msk.f32.mxu1 %vm311_vm2, %v281_v49 }
 0x204   : > { %1296 = vmatmul.mubr.msk.f32.gmra.mrb[2].mxu1 %vm311_vm2, %v282_v50 }
 0x205   : > { %1298 = vmatprep.mubr.msk.f32.mxu1 %vm311_vm2, %v283_v51 }
 0x208   : > { %1299 = vmatmul.mubr.msk.f32.gmra.mrb[4].mxu1 %vm311_vm2, %v284_v52 }
 0x209   : > { %1301 = vmatprep.mubr.msk.f32.mxu1 %vm311_vm2, %v285_v53 }
 0x20c   : > { %1302 = vmatmul.mubr.msk.f32.gmra.mrb[6].mxu1 %vm311_vm2, %v286_v54 }
 0x2d3   : > { %v1294_v57 = vpop.f32.mrb[0].mxu1 }
 0x2d4   : > { %v424_v58 = vadd.f32 %v1294_v57, %v288_v55  ;;  %v418_v59 = vpop.f32.mrb[1].mxu1 }
 0x2d5   : > { %v419_v60 = vadd.f32 %v418_v59, %v287_v56 }
 0x2d6   : > { %v461_v61 = vsel %vm457_vm4, %v424_v58, -inf }
 0x2d7   : > { %462 = vmax.xlane.f32.xlu1 %v461_v61  ;;  %v1297_v63 = vpop.f32.mrb[2].mxu1  ;;  %v458_v0 = vsel %vm457_vm4, %v419_v60, -inf }
 0x2d8   : > { %v428_v3 = vpop.f32.mrb[3].mxu1  ;;  %459 = vmax.xlane.f32.xlu0 %v458_v0  ;;  %v434_v6 = vadd.f32 %v1297_v63, %v290_v1 }
 0x2d9   : > { %v429_v4 = vadd.f32 %v428_v3, %v289_v62 }
 0x2da   : > { %v467_v22 = vsel %vm457_vm4, %v434_v6, -inf }
 0x2db   : > { %v1300_v7 = vpop.f32.mrb[4].mxu1  ;;  %v464_v9 = vsel %vm457_vm4, %v429_v4, -inf }
 0x2dc   : > { %v438_v15 = vpop.f32.mrb[5].mxu1  ;;  %465 = vmax.xlane.f32.xlu0 %v464_v9  ;;  %v444_v18 = vadd.f32 %v1300_v7, %v292_v11 }
 0x2dd   : > { %v439_v16 = vadd.f32 %v438_v15, %v291_v5 }
 0x2de   : > { %v473_v31 = vsel %vm457_vm4, %v444_v18, -inf }
 0x2df   : > { %v1303_v19 = vpop.f32.mrb[6].mxu1  ;;  %v470_v20 = vsel %vm457_vm4, %v439_v16, -inf }
 0x2e0   : > { %v448_v24 = vpop.f32.mrb[7].mxu1  ;;  %471 = vmax.xlane.f32.xlu1 %v470_v20  ;;  %468 = vmax.xlane.f32.xlu0 %v467_v22  ;;  %v454_v28 = vadd.f32 %v1303_v19, %v294_v23 }
 0x2e1   : > { %v449_v25 = vadd.f32 %v448_v24, %v293_v17 }
 0x2e2   : > { %v479_v32 = vsel %vm457_vm4, %v454_v28, -inf }
 0x2e3   : > { %v476_v29 = vsel %vm457_vm4, %v449_v25, -inf }
 0x2e4   : > { %477 = vmax.xlane.f32.xlu1 %v476_v29  ;;  %474 = vmax.xlane.f32.xlu0 %v473_v31 }
 0x2e8   : > { %480 = vmax.xlane.f32.xlu0 %v479_v32 }
 0x2f5   : > { %1491 = vrot.lane.b32.xlu1 %v1650_v21, %s1566_s27 }
 0x364   : > { %v463_v33 = vpop.xlane.xlu1 %462 }
 0x365   : > { %v483_v34 = vsub.f32 %v424_v58, %v463_v33  ;;  %v460_v35 = vpop.xlane.xlu0 %459 }
 0x366   : > { %v482_v36 = vsub.f32 %v419_v60, %v460_v35 }
 0x367   : > { %v492_v37 = vmul.f32 1.442695, %v483_v34 }
 0x368   : > { %v490_v38 = vmul.f32 1.442695, %v482_v36 }
 0x369   : > { %1510 = vpow2.f32 %v492_v37  ;;  %v466_v39 = vpop.xlane.xlu0 %465 }
 0x36a   : > { %1512 = vpow2.f32 %v490_v38  ;;  %v484_v40 = vsub.f32 %v429_v4, %v466_v39 }
 0x36c   : > { %v494_v41 = vmul.f32 1.442695, %v484_v40 }
 0x36d   : > { %v472_v42 = vpop.xlane.xlu1 %471  ;;  %v469_v43 = vpop.xlane.xlu0 %468 }
 0x36e   : > { %1514 = vpow2.f32 %v494_v41  ;;  %v486_v44 = vsub.f32 %v439_v16, %v472_v42  ;;  %v485_v45 = vsub.f32 %v434_v6, %v469_v43 }
 0x370   : > { %v498_v46 = vmul.f32 1.442695, %v486_v44  ;;  %v496_v47 = vmul.f32 1.442695, %v485_v45 }
 0x371   : > { %v478_v48 = vpop.xlane.xlu1 %477  ;;  %v475_v21 = vpop.xlane.xlu0 %474 }
 0x372   : > { %1516 = vpow2.f32 %v498_v46  ;;  %v487_v49 = vsub.f32 %v444_v18, %v475_v21  ;;  %v488_v54 = vsub.f32 %v449_v25, %v478_v48 }
 0x373   : > { %v1726_v50 = vpop.eup %1510  ;;  %1518 = vpow2.f32 %v496_v47 }
 0x374   : > { %v1513_v51 = vpop.eup %1512  ;;  %v500_v52 = vmul.f32 1.442695, %v487_v49  ;;  %v509_v53 = vsel %vm457_vm4, %v1726_v50, 0.0  ;;  %v502_v0 = vmul.f32 1.442695, %v488_v54  ;;  %v731_v54 = vld [vmem:[%s1605_s18 + $0x20] sm:$0xff] }
 0x375   : > { %v1492_v55 = vpop.permute.xlu1 %1491  ;;  %510 = vadd.xlane.f32.xlu0 %v509_v53  ;;  %v481_v56 = vpop.xlane.xlu0 %480  ;;  %v506_v57 = vsel %vm457_vm4, %v1513_v51, 0.0 }
 0x376   : > { %v1494_v58 = vunpack.i.h.bf16 %v1492_v55  ;;  %v1493_v59 = vunpack.i.l.bf16 %v1492_v55  ;;  %v489_v60 = vsub.f32 %v454_v28, %v481_v56  ;;  %507 = vadd.xlane.f32.xlu1 %v506_v57  ;;  %1520 = vpow2.f32 %v500_v52  ;;  %v732_v55 = vld [vmem:[%s1605_s18 + $0x28] sm:$0xff]  ;;  %v733_v57 = vld [vmem:[%s1605_s18 + $0x30] sm:$0xff] }
 0x377   : > { %v1421_v56 = vpack.c.bf16 %v732_v55, %v731_v54 }
 0x378   : > { %v1731_v61 = vpop.eup %1514  ;;  %v1405_v62 = vpack.c.bf16 %v1494_v58, %v1493_v59  ;;  %v504_v63 = vmul.f32 1.442695, %v489_v60  ;;  %v734_v58 = vld [vmem:[%s1605_s18 + $0x38] sm:$0xff] }
 0x379   : > { %v512_v1 = vsel %vm457_vm4, %v1731_v61, 0.0  ;;  %v1425_v59 = vpack.c.bf16 %v734_v58, %v733_v57 }
 0x37a   : > { %1522 = vpow2.f32 %v504_v63  ;;  %1406 = vmatprep.subr.bf16.mxu0 %v1405_v62  ;;  %513 = vadd.xlane.f32.xlu1 %v512_v1 }
 0x37b   : > { %1408 = vmatpush3.bf16.msra.mxu0 %v1405_v62  ;;  %1524 = vpow2.f32 %v502_v0 }
 0x37c   : > { %v1735_v3 = vpop.eup %1516 }
 0x37d   : > { %v1737_v4 = vpop.eup %1518  ;;  %v518_v5 = vsel %vm457_vm4, %v1735_v3, 0.0 }
 0x37e   : > { %519 = vadd.xlane.f32.xlu1 %v518_v5  ;;  %v515_v6 = vsel %vm457_vm4, %v1737_v4, 0.0 }
 0x37f   : > { %516 = vadd.xlane.f32.xlu0 %v515_v6 }
 0x380   : > { %v1743_v7 = vpop.eup %1520 }
 0x381   : > { %v521_v9 = vsel %vm457_vm4, %v1743_v7, 0.0 }
 0x383   : > { %522 = vadd.xlane.f32.xlu0 %v521_v9 }
 0x384   : > { %v1747_v11 = vpop.eup %1522 }
 0x385   : > { %v527_v15 = vsel %vm457_vm4, %v1747_v11, 0.0  ;;  %v1525_v16 = vpop.eup %1524 }
 0x386   : > { %v524_v17 = vsel %vm457_vm4, %v1525_v16, 0.0 }
 0x387   : > { %528 = vadd.xlane.f32.xlu0 %v527_v15 }
 0x38b   : > { %525 = vadd.xlane.f32.xlu0 %v524_v17 }
 0x38f   : > { %1501 = vrot.lane.b32.xlu1 %v1654_v26, %s1566_s27 }
 0x393   : > { %1506 = vrot.lane.b32.xlu1 %v1660_v30, %s1566_s27 }
 0x3a1   : > { %1496 = vrot.lane.b32.xlu0 %v1656_v27, %s1566_s27 }
 0x402   : > { %v511_v19 = vpop.xlane.xlu0 %510 }
 0x403   : > { %v508_v18 = vpop.xlane.xlu1 %507 }
 0x404   : > { %1526 = vrcp.f32 %v508_v18 }
 0x405   : > { %1528 = vrcp.f32 %v511_v19 }
 0x407   : > { %v514_v20 = vpop.xlane.xlu1 %513 }
 0x408   : > { %1530 = vrcp.f32 %v514_v20 }
 0x40b   : > { %v520_v28 = vpop.xlane.xlu1 %519 }
 0x40c   : > { %v517_v22 = vpop.xlane.xlu0 %516 }
 0x40d   : > { %1532 = vrcp.f32 %v517_v22 }
 0x40e   : > { %v1527_v23 = vpop.eup %1526  ;;  %1534 = vrcp.f32 %v520_v28 }
 0x40f   : > { %v538_v24 = vmul.f32 %v1527_v23, %v1513_v51  ;;  %v1502_v31 = vpop.permute.xlu1 %1501  ;;  %v1529_v41 = vpop.eup %1528  ;;  %v737_v23 = vsub.s32 1, %v1641_v12 }
 0x410   : > { %v523_v25 = vpop.xlane.xlu0 %522  ;;  %v1504_v33 = vunpack.i.h.bf16 %v1502_v31  ;;  %v1503_v30 = vunpack.i.l.bf16 %v1502_v31  ;;  %v539_v43 = vmul.f32 %v1529_v41, %v1726_v50  ;;  %v861_v41 = vld [vmem:[%s1605_s18 + $0x40] sm:$0xff] }
 0x411   : > { %1320 = vmatprep.mubr.msk.f32.mxu0 %vm457_vm4, %v538_v24  ;;  %1536 = vrcp.f32 %v523_v25  ;;  %v738_v24 = vrot.slane %v1645_v14, %v737_v23 }
 0x412   : > { %v1413_v37 = vpack.c.bf16 %v1504_v33, %v1503_v30  ;;  %v1531_v42 = vpop.eup %1530 }
 0x413   : > { %v1507_v27 = vpop.permute.xlu1 %1506  ;;  %v540_v45 = vmul.f32 %v1531_v42, %v1731_v61  ;;  %v862_v42 = vld [vmem:[%s1605_s18 + $0x48] sm:$0xff] }
 0x414   : > { %v529_v29 = vpop.xlane.xlu0 %528  ;;  %v1509_v38 = vunpack.i.h.bf16 %v1507_v27  ;;  %v1508_v39 = vunpack.i.l.bf16 %v1507_v27 }
 0x416   : > { %v1417_v40 = vpack.c.bf16 %v1509_v38, %v1508_v39 }
 0x417   : > { %v1533_v44 = vpop.eup %1532 }
 0x418   : > { %v526_v26 = vpop.xlane.xlu0 %525  ;;  %v1535_v46 = vpop.eup %1534  ;;  %v541_v47 = vmul.f32 %v1533_v44, %v1737_v4  ;;  %v863_v44 = vld [vmem:[%s1605_s18 + $0x50] sm:$0xff] }
 0x419   : > { %1538 = vrcp.f32 %v526_v26  ;;  %v542_v21 = vmul.f32 %v1535_v46, %v1735_v3 }
 0x41a   : > { %1540 = vrcp.f32 %v529_v29 }
 0x41b   : > { %v1537_v48 = vpop.eup %1536 }
 0x41c   : > { %v1497_v32 = vpop.permute.xlu0 %1496  ;;  %v543_v50 = vmul.f32 %v1537_v48, %v1743_v7  ;;  %v953_v48 = vld [vmem:[%s1605_s18 + $0x68] sm:$0xff] }
 0x41d   : > { %v1499_v34 = vunpack.i.h.bf16 %v1497_v32  ;;  %v1498_v35 = vunpack.i.l.bf16 %v1497_v32 }
 0x41f   : > { %v1409_v36 = vpack.c.bf16 %v1499_v34, %v1498_v35 }
 0x421   : > { %1410 = vmatprep.subr.bf16.mxu0 %v1409_v36 }
 0x422   : > { %1412 = vmatpush3.bf16.msra.mxu0 %v1409_v36 }
 0x423   : > { %1414 = vmatprep.subr.bf16.mxu0 %v1413_v37  ;;  %v1539_v49 = vpop.eup %1538 }
 0x424   : > { %v1541_v51 = vpop.eup %1540  ;;  %v544_v52 = vmul.f32 %v1539_v49, %v1525_v16 }
 0x425   : > { %v545_v53 = vmul.f32 %v1541_v51, %v1747_v11 }
 0x426   : > { %1416 = vmatpush3.bf16.msra.mxu0 %v1413_v37 }
 0x427   : > { %1418 = vmatprep.subr.bf16.mxu0 %v1417_v40 }
 0x42a   : > { %1420 = vmatpush3.bf16.msra.mxu0 %v1417_v40 }
 0x42b   : > { %1422 = vmatprep.subr.bf16.mxu0 %v1421_v56 }
 0x42d   : > { %1321 = vmatmul.mubr.msk.f32.vlgmr.msra.gmra.mrb[2].mxu0 %vm457_vm4, %v539_v43  ;;  %v1429_v43 = vpack.c.bf16 %v862_v42, %v861_v41 }
 0x42e   : > { %1323 = vmatprep.mubr.msk.f32.mxu0 %vm457_vm4, %v540_v45  ;;  %1424 = vmatpush3.bf16.msra.mxu0 %v1421_v56  ;;  %v864_v45 = vld [vmem:[%s1605_s18 + $0x58] sm:$0xff] }
 0x42f   : > { %1426 = vmatprep.subr.bf16.mxu0 %v1425_v59  ;;  %v1433_v46 = vpack.c.bf16 %v864_v45, %v863_v44 }
 0x431   : > { %1324 = vmatmul.mubr.msk.f32.gmra.mrb[4].mxu0 %vm457_vm4, %v541_v47  ;;  %v952_v47 = vld [vmem:[%s1605_s18 + $0x60] sm:$0xff] }
 0x432   : > { %1326 = vmatprep.mubr.msk.f32.mxu0 %vm457_vm4, %v542_v21  ;;  %1428 = vmatpush3.bf16.msra.mxu0 %v1425_v59  ;;  %v954_v21 = vld [vmem:[%s1605_s18 + $0x70] sm:$0xff]  ;;  %v1437_v49 = vpack.c.bf16 %v953_v48, %v952_v47 }
 0x433   : > { %1430 = vmatprep.subr.bf16.mxu0 %v1429_v43 }
 0x434   : > { %1438 = vmatprep.subr.bf16.mxu1 %v1437_v49 }
 0x435   : > { %1327 = vmatmul.mubr.msk.f32.gmra.mrb[6].mxu0 %vm457_vm4, %v543_v50  ;;  %v955_v50 = vld [vmem:[%s1605_s18 + $0x78] sm:$0xff]  ;;  %1440 = vmatpush3.bf16.msra.mxu1 %v1437_v49 }
 0x436   : > { %1329 = vmatprep.mubr.msk.f32.mxu0 %vm457_vm4, %v544_v52  ;;  %v1441_v51 = vpack.c.bf16 %v955_v50, %v954_v21  ;;  %v956_v52 = vld [vmem:[%s1605_s18 + $0x80] sm:$0xff] }
 0x438   : > { %1442 = vmatprep.subr.bf16.mxu1 %v1441_v51 }
 0x439   : > { %1330 = vmatmul.mubr.msk.f32.gmra.mrb[8].mxu0 %vm457_vm4, %v545_v53  ;;  %v957_v53 = vld [vmem:[%s1605_s18 + $0x88] sm:$0xff]  ;;  %1444 = vmatpush3.bf16.msra.mxu1 %v1441_v51  ;;  %v1075_v51 = vsub.s32 6, %v1641_v12 }
 0x43a   : > { %v1445_v54 = vpack.c.bf16 %v957_v53, %v956_v52  ;;  %v1081_v52 = vsub.s32 7, %v1641_v12 }
 0x43b   : > { %v1076_v53 = vrot.slane %v1645_v14, %v1075_v51 }
 0x43c   : > { %1446 = vmatprep.subr.bf16.mxu1 %v1445_v54 }
 0x43d   : > { %1448 = vmatpush3.bf16.msra.mxu1 %v1445_v54 }
 0x500   : > { %v1322_v60 = vpop.f32.mrb[2].mxu0 }
 0x501   : > { %v660_v61 = vpop.f32.mrb[3].mxu0 }
 0x504   : > { %v1325_v62 = vpop.f32.mrb[4].mxu0 }
 0x505   : > { %703 = vrot.lane.b32.xlu1 %v1325_v62, %s1567_s28  ;;  %v670_v63 = vpop.f32.mrb[5].mxu0  ;;  %v857_v62 = vsub.s32 3, %v1641_v12 }
 0x508   : > { %v1328_v0 = vpop.f32.mrb[6].mxu0 }
 0x509   : > { %701 = vrot.lane.b32.xlu1 %v670_v63, %s1567_s28  ;;  %v680_v1 = vpop.f32.mrb[7].mxu0 }
 0x50a   : > { %709 = vrot.lane.b32.xlu0 %v680_v1, %s1568_s29 }
 0x50c   : > { %v1331_v3 = vpop.f32.mrb[8].mxu0 }
 0x50d   : > { %711 = vrot.lane.b32.xlu1 %v1328_v0, %s1568_s29  ;;  %v690_v4 = vpop.f32.mrb[9].mxu0 }
 0x50e   : > { %717 = vrot.lane.b32.xlu0 %v690_v4, %s1569_s30 }
 0x511   : > { %719 = vrot.lane.b32.xlu1 %v1331_v3, %s1569_s30  ;;  %v858_v3 = vrot.slane %v1645_v14, %v857_v62 }
 0x577   : > { %v704_v5 = vpop.permute.xlu1 %703 }
 0x578   : > { %v724_v18 = vsel %vm311_vm2, %v1322_v60, %v704_v5 }
 0x57b   : > { %v702_v6 = vpop.permute.xlu1 %701 }
 0x57c   : > { %v710_v7 = vpop.permute.xlu0 %709  ;;  %v723_v9 = vsel %vm311_vm2, %v660_v61, %v702_v6  ;;  %v851_v61 = vsub.s32 2, %v1641_v12 }
 0x57d   : > { %v726_v15 = vsel %vm725_vm5, %v723_v9, %v710_v7 }
 0x57e   : > { %v852_v63 = vrot.slane %v1645_v14, %v851_v61 }
 0x57f   : > { %v712_v11 = vpop.permute.xlu1 %711 }
 0x580   : > { %v718_v16 = vpop.permute.xlu0 %717  ;;  %v727_v19 = vsel %vm725_vm5, %v724_v18, %v712_v11  ;;  %v867_v18 = vsub.s32 4, %v1641_v12 }
 0x581   : > { %v729_v17 = vsel %vm728_vm6, %v726_v15, %v718_v16  ;;  %v958_v15 = vld [vmem:[%s1605_s18 + $0x90] sm:$0xff]  ;;  %v959_v16 = vld [vmem:[%s1605_s18 + $0x98] sm:$0xff] }
 0x582   : > { %1340 = vmatprep.mubr.msk.f32.mxu0 %vm177_vm1, %v729_v17  ;;  %v1449_v17 = vpack.c.bf16 %v959_v16, %v958_v15 }
 0x583   : > { %v720_v20 = vpop.permute.xlu1 %719 }
 0x584   : > { %v730_v22 = vsel %vm728_vm6, %v727_v19, %v720_v20  ;;  %1450 = vmatprep.subr.bf16.mxu1 %v1449_v17  ;;  %v868_v19 = vrot.slane %v1645_v14, %v867_v18 }
 0x585   : > { %1341 = vmatmul.mubr.msk.f32.vlgmr.msra.gmra.mrb[10].mxu0 %vm177_vm1, %v730_v22  ;;  %1452 = vmatpush3.bf16.msra.mxu1 %v1449_v17 }
 0x586   : > { %1432 = vmatpush3.bf16.msra.mxu0 %v1429_v43 }
 0x587   : > { %1434 = vmatprep.subr.bf16.mxu0 %v1433_v46 }
 0x58a   : > { %1436 = vmatpush3.bf16.msra.mxu0 %v1433_v46 }
 0x658   : > { %v1342_v25 = vpop.f32.mrb[10].mxu0 }
 0x659   : > { %v817_v28 = vadd.f32 %v1342_v25, %v738_v24  ;;  %v811_v29 = vpop.f32.mrb[11].mxu0 }
 0x65a   : > { %v812_v31 = vadd.f32 %v811_v29, %v738_v24 }
 0x65b   : > { %v821_v26 = vadd.f32 %v817_v28, %v1637_v10 }
 0x65c   : > { %v820_v32 = vadd.f32 %v812_v31, %v1630_v8  ;;  %v962_v31 = vsub.s32 5, %v1641_v12 }
 0x65d   : > { %v825_v33 = vsel %vm177_vm1, %v821_v26, 0.0 }
 0x65e   : > { %826 = vadd.xlane.f32.xlu1 %v825_v33  ;;  %v822_v30 = vsel %vm177_vm1, %v820_v32, 0.0 }
 0x65f   : > { %823 = vadd.xlane.f32.xlu0 %v822_v30 }
 0x6eb   : > { %v827_v34 = vpop.xlane.xlu1 %826 }
 0x6ec   : > { %v830_v35 = vmul.f32 0.03125, %v827_v34  ;;  %v824_v27 = vpop.xlane.xlu0 %823 }
 0x6ed   : > { %v829_v36 = vmul.f32 0.03125, %v824_v27 }
 0x6ee   : > { %v832_v37 = vsub.f32 %v821_v26, %v830_v35  ;;  %v963_v26 = vrot.slane %v1645_v14, %v962_v31 }
 0x6ef   : > { %v831_v38 = vsub.f32 %v820_v32, %v829_v36 }
 0x6f0   : > { %v834_v10 = vmul.f32 %v832_v37, %v832_v37 }
 0x6f1   : > { %v833_v39 = vmul.f32 %v831_v38, %v831_v38 }
 0x6f2   : > { %v838_v40 = vsel %vm177_vm1, %v834_v10, 0.0 }
 0x6f3   : > { %v835_v8 = vsel %vm177_vm1, %v833_v39, 0.0 }
 0x6f4   : > { %836 = vadd.xlane.f32.xlu0 %v835_v8 }
 0x6f8   : > { %839 = vadd.xlane.f32.xlu0 %v838_v40 }
 0x781   : > { %v837_v55 = vpop.xlane.xlu0 %836 }
 0x782   : > { %v841_v56 = vmul.f32 0.03125, %v837_v55 }
 0x784   : > { %v843_v57 = vadd.f32 1e-05, %v841_v56  ;;  %v1082_v56 = vrot.slane %v1645_v14, %v1081_v52 }
 0x785   : > { %v840_v58 = vpop.xlane.xlu0 %839 }
 0x786   : > { %1542 = vrsqrt.f32 %v843_v57  ;;  %v842_v59 = vmul.f32 0.03125, %v840_v58 }
 0x788   : > { %v844_v60 = vadd.f32 1e-05, %v842_v59 }
 0x78a   : > { %1544 = vrsqrt.f32 %v844_v60 }
 0x790   : > { %v1543_v0 = vpop.eup %1542 }
 0x791   : > { %v847_v1 = vmul.f32 %v1543_v0, %v831_v38 }
 0x793   : > { %v853_v4 = vmul.f32 %v852_v63, %v847_v1 }
 0x794   : > { %v1545_v5 = vpop.eup %1544 }
 0x795   : > { %v848_v6 = vmul.f32 %v1545_v5, %v832_v37  ;;  %v859_v7 = vadd.f32 %v858_v3, %v853_v4 }
 0x797   : > { %v854_v9 = vmul.f32 %v852_v63, %v848_v6  ;;  %1351 = vmatprep.mubr.msk.f32.mxu0 %vm177_vm1, %v859_v7 }
 0x799   : > { %v860_v11 = vadd.f32 %v858_v3, %v854_v9 }
 0x79b   : > { %1352 = vmatmul.mubr.msk.f32.vlgmr.msra.gmra.mrb[12].mxu0 %vm177_vm1, %v860_v11 }
 0x86e   : > { %v1353_v20 = vpop.f32.mrb[12].mxu0 }
 0x86f   : > { %v947_v22 = vadd.f32 %v1353_v20, %v868_v19  ;;  %v941_v24 = vpop.f32.mrb[13].mxu0 }
 0x870   : > { %v942_v25 = vadd.f32 %v941_v24, %v868_v19 }
 0x871   : > { %v951_v29 = vmax.f32 %v947_v22, 0.0 }
 0x872   : > { %v950_v28 = vmax.f32 %v942_v25, 0.0 }
 0x874   : > { %1370 = vmatprep.mubr.msk.f32.mxu1 %vm457_vm4, %v950_v28 }
 0x875   : > { %1371 = vmatmul.mubr.msk.f32.vlgmr.msra.gmra.mrb[8].mxu1 %vm457_vm4, %v951_v29 }
 0x948   : > { %v1372_v32 = vpop.f32.mrb[8].mxu1 }
 0x949   : > { %v1042_v33 = vadd.f32 %v1372_v32, %v963_v26  ;;  %v1036_v30 = vpop.f32.mrb[9].mxu1 }
 0x94a   : > { %v1037_v34 = vadd.f32 %v1036_v30, %v963_v26 }
 0x94b   : > { %v1046_v35 = vadd.f32 %v1042_v33, %v860_v11 }
 0x94c   : > { %v1045_v27 = vadd.f32 %v1037_v34, %v859_v7 }
 0x94d   : > { %v1050_v36 = vsel %vm177_vm1, %v1046_v35, 0.0 }
 0x94e   : > { %1051 = vadd.xlane.f32.xlu0 %v1050_v36  ;;  %v1047_v37 = vsel %vm177_vm1, %v1045_v27, 0.0 }
 0x94f   : > { %1048 = vadd.xlane.f32.xlu1 %v1047_v37 }
 0x9db   : > { %v1052_v38 = vpop.xlane.xlu0 %1051 }
 0x9dc   : > { %v1054_v39 = vmul.f32 0.03125, %v1052_v38  ;;  %v1049_v8 = vpop.xlane.xlu1 %1048 }
 0x9dd   : > { %v1053_v10 = vmul.f32 0.03125, %v1049_v8 }
 0x9de   : > { %v1056_v40 = vsub.f32 %v1046_v35, %v1054_v39 }
 0x9df   : > { %v1055_v41 = vsub.f32 %v1045_v27, %v1053_v10 }
 0x9e0   : > { %v1058_v42 = vmul.f32 %v1056_v40, %v1056_v40 }
 0x9e1   : > { %v1057_v43 = vmul.f32 %v1055_v41, %v1055_v41 }
 0x9e2   : > { %v1062_v44 = vsel %vm177_vm1, %v1058_v42, 0.0 }
 0x9e3   : > { %1063 = vadd.xlane.f32.xlu0 %v1062_v44  ;;  %v1059_v45 = vsel %vm177_vm1, %v1057_v43, 0.0 }
 0x9e4   : > { %1060 = vadd.xlane.f32.xlu1 %v1059_v45 }
 0xa70   : > { %v1064_v46 = vpop.xlane.xlu0 %1063 }
 0xa71   : > { %v1066_v47 = vmul.f32 0.03125, %v1064_v46  ;;  %v1061_v48 = vpop.xlane.xlu1 %1060 }
 0xa72   : > { %v1065_v21 = vmul.f32 0.03125, %v1061_v48 }
 0xa73   : > { %v1068_v49 = vadd.f32 1e-05, %v1066_v47 }
 0xa74   : > { %v1067_v50 = vadd.f32 1e-05, %v1065_v21 }
 0xa75   : > { %1546 = vrsqrt.f32 %v1068_v49 }
 0xa76   : > { %1548 = vrsqrt.f32 %v1067_v50 }
 0xa7f   : > { %v1547_v54 = vpop.eup %1546  ;;  %1088 = sbr.rel (%p1201_p5) target bundleno = 2696 (0xa88), region = 40 }
 0xa80   : > { %v1549_v55 = vpop.eup %1548  ;;  %v1072_v57 = vmul.f32 %v1547_v54, %v1056_v40 }
 0xa81   : > { %v1071_v58 = vmul.f32 %v1549_v55, %v1055_v41 }
 0xa82   : > { %v1078_v59 = vmul.f32 %v1076_v53, %v1072_v57 }
 0xa83   : > { %v1077_v60 = vmul.f32 %v1076_v53, %v1071_v58 }
 0xa84   : > { %v1084_v61 = vadd.f32 %v1082_v56, %v1078_v59 }
 0xa85   : > { %v1083_v62 = vadd.f32 %v1082_v56, %v1077_v60 }
 0xa86   : > { %1090 = vst.msk [vmem:[%s1856_s3 + $0x8] sm:$0xff] %vm177_vm1, %v1084_v61 }
 0xa87   : > { %1089 = vst.msk [vmem:[%s1856_s3] sm:$0xff] %vm177_vm1, %v1083_v62 }
 0xa88 PF: > { %p1202_p6 = scmp.ne.s32.totalorder %s1596_s13, 1 }
 0xa89   : > { %v1095_v14 = vsel (!%p1202_p6), %vm177_vm1, %v1083_v62, 0.0  ;;  %v1098_v63 = vsel (!%p1202_p6), %vm177_vm1, %v1084_v61, 0.0  ;;  %v1124_v24 = vrot.slane (!%p1202_p6), %v1621_v2, %v175_v13  ;;  %v1130_v28 = vrot.slane (!%p1202_p6), %v1621_v2, %v737_v23 }
 0xa8a   : > { %1094 = sbr.rel (%p1202_p6) target bundleno = 3015 (0xbc7), region = 44  ;;  %1096 = vadd.xlane.f32.xlu0 (!%p1202_p6), %v1095_v14 }
 0xa8e   : > { %1099 = vadd.xlane.f32.xlu0 (!%p1202_p6), %v1098_v63 }
 0xb17   : > { %v1097_v0 = vpop.xlane.xlu0 %1096 }
 0xb18   : > { %v1101_v1 = vmul.f32 0.03125, %v1097_v0 }
 0xb1a   : > { %v1103_v3 = vsub.f32 %v1083_v62, %v1101_v1 }
 0xb1b   : > { %v1100_v4 = vpop.xlane.xlu0 %1099 }
 0xb1c   : > { %v1102_v5 = vmul.f32 0.03125, %v1100_v4  ;;  %v1105_v6 = vmul.f32 %v1103_v3, %v1103_v3 }
 0xb1e   : > { %v1104_v7 = vsub.f32 %v1084_v61, %v1102_v5  ;;  %v1107_v9 = vsel %vm177_vm1, %v1105_v6, 0.0 }
 0xb1f   : > { %1108 = vadd.xlane.f32.xlu1 %v1107_v9 }
 0xb20   : > { %v1106_v11 = vmul.f32 %v1104_v7, %v1104_v7 }
 0xb22   : > { %v1110_v15 = vsel %vm177_vm1, %v1106_v11, 0.0 }
 0xb23   : > { %1111 = vadd.xlane.f32.xlu1 %v1110_v15 }
 0xbac   : > { %v1109_v16 = vpop.xlane.xlu1 %1108 }
 0xbad   : > { %v1113_v17 = vmul.f32 0.03125, %v1109_v16 }
 0xbaf   : > { %v1115_v18 = vadd.f32 1e-05, %v1113_v17 }
 0xbb0   : > { %v1112_v19 = vpop.xlane.xlu1 %1111 }
 0xbb1   : > { %1550 = vrsqrt.f32 %v1115_v18  ;;  %v1114_v20 = vmul.f32 0.03125, %v1112_v19 }
 0xbb3   : > { %v1116_v22 = vadd.f32 1e-05, %v1114_v20 }
 0xbb5   : > { %1552 = vrsqrt.f32 %v1116_v22 }
 0xbbb   : > { %v1551_v25 = vpop.eup %1550 }
 0xbbc   : > { %v1119_v29 = vmul.f32 %v1551_v25, %v1103_v3 }
 0xbbe   : > { %v1125_v31 = vmul.f32 %v1124_v24, %v1119_v29 }
 0xbbf   : > { %v1553_v26 = vpop.eup %1552 }
 0xbc0   : > { %v1131_v32 = vadd.f32 %v1130_v28, %v1125_v31  ;;  %v1120_v33 = vmul.f32 %v1553_v26, %v1104_v7 }
 0xbc2   : > { %1133 = vst.msk [vmem:[%s1856_s3] sm:$0xff] %vm177_vm1, %v1131_v32  ;;  %v1126_v30 = vmul.f32 %v1124_v24, %v1120_v33 }
 0xbc4   : > { %v1132_v34 = vadd.f32 %v1130_v28, %v1126_v30 }
 0xbc6   : > { %1134 = vst.msk [vmem:[%s1856_s3 + $0x8] sm:$0xff] %vm177_vm1, %v1132_v34 }
 0xbc7 PF: > { %s13_s12 = sadd.s32 1, %s1560_s12  }
 0xbc8   : > { %p10_p7 = scmp.ge.s32.totalorder %s13_s12, 4  }
 0xbca   :  { %12 = sbr.rel (!%p10_p7) target bundleno = 1 (0x1), region = 70 }

// kernel: gvp_transformer_encoder_forward.2
= control target key start
LH: loop header
LB: loop body
LE: loop exit
PB: predicated region body
PF: predicated region fallthrough
CT: control target
= control target key end

     0   :  { %vm39_vm0 = vcmask 1042432   ;;  %vm26_vm1 = vcmask 23552   ;;  %s4498_s11 = smov 120   ;;  %s4499_s12 = smov 112   ;;  %vm259_vm2 = vcmask 1046528   ;;  %vm166_vm5 = vcmask 64512   ;;  %s5190_s0 = inlined_call_operand.vmem [shape: f32[16,160], index: 0, kind: input, shape index: {}]   ;;  %s5191_s1 = inlined_call_operand.vmem [shape: f32[552,32], index: 1, kind: input, shape index: {}]   ;;  %s5192_s2 = inlined_call_operand.vmem [shape: f32[16,192], index: 2, kind: output, shape index: {}]  }
   0x1   :  { %v13_v0 = vld [vmem:[%s5190_s0 + $0x8] sm:$0xff]  ;;  %v25_v1 = vld [vmem:[%s5191_s1] sm:$0x7]  ;;  %v14_v2 = vld [vmem:[%s5190_s0 + $0x18] sm:$0xff]  ;;  %s4500_s21 = smov 16   ;;  %vm254_vm8 = vcmask 56320  }
   0x2   :  { %17 = vrot.lane.b32.xlu0 %v13_v0, %s4498_s11  ;;  %21 = vrot.lane.b32.xlu1 %v13_v0, %s4499_s12  ;;  %v4548_v3 = vld [vmem:[%s5190_s0] sm:$0xff]  ;;  %v4553_v4 = vld [vmem:[%s5190_s0 + $0x10] sm:$0xff]  ;;  %vm466_vm9 = vcmask 130048   ;;  %s4503_s10 = smov 8   ;;  %s4515_s17 = smov 32  }
   0x3   :  { %4021 = vmatprep.subr.msk.mxu0 %vm39_vm0, %v25_v1  ;;  %4023 = vmatprep.mubr.msk.f32.mxu0 %vm26_vm1, %v13_v0  ;;  %v165_v9 = vld [vmem:[%s5191_s1 + $0x18] sm:$0xff]  ;;  %v164_v12 = vld [vmem:[%s5191_s1 + $0x10] sm:$0x7f]  ;;  %v459_v13 = vld [vmem:[%s5191_s1 + $0x28] sm:$0xff]  ;;  %s4516_s18 = smov 48   ;;  %s4518_s27 = smov 96  }
   0x4   :  { %4022 = vmatpush3.msk.msra.mxu0 %vm39_vm0, %v25_v1  ;;  %4032 = vmatprep.subr.mxu1 %v165_v9  ;;  %v460_v14 = vld [vmem:[%s5191_s1 + $0x30] sm:$0xff]  ;;  %v345_v43 = vld [vmem:[%s5191_s1 + $0x8] sm:$0xff]  ;;  %v3760_v45 = vld [vmem:[%s5191_s1 + $0x20] ss:$0 sm:$0xff] }
   0x5   :  { %4024 = vmatmul.mubr.msk.f32.vlgmr.msra.gmra.mrb[0].mxu0 %vm26_vm1, %v14_v2  ;;  %4033 = vmatpush3.msra.mxu1 %v165_v9  ;;  %v4263_v15 = vpack.c.bf16 %v460_v14, %v459_v13  ;;  %v3767_v56 = vld [vmem:[%s5191_s1 + $0x38] ss:$0 sm:$0xff] }
   0x6   :  { %19 = vrot.lane.b32.xlu0 %v14_v2, %s4498_s11  ;;  %23 = vrot.lane.b32.xlu1 %v14_v2, %s4499_s12  ;;  %s4502_s12 = smov 64   ;;  %s4513_s11 = smov 24  }
   0x7   :  { %4037 = vmatprep.subr.msk.mxu1 %vm259_vm2, %v164_v12  ;;  %4264 = vmatprep.subr.bf16.mxu0 %v4263_v15 }
   0x8   :  { %4266 = vmatpush3.bf16.msra.mxu0 %v4263_v15 }
   0xa   :  { %250 = vrot.lane.b32.xlu0 %v4548_v3, %s4500_s21  ;;  %252 = vrot.lane.b32.xlu1 %v4553_v4, %s4500_s21 }
  0x74   :  { %v18_v5 = vpop.permute.xlu0 %17  ;;  %v22_v6 = vpop.permute.xlu1 %21 }
  0x75   :  { %4026 = vmatprep.mubr.msk.f32.mxu0 %vm26_vm1, %v18_v5 }
  0x78   :  { %v20_v7 = vpop.permute.xlu0 %19  ;;  %v24_v8 = vpop.permute.xlu1 %23 }
  0x79   :  { %4027 = vmatmul.mubr.msk.f32.gmra.mrb[2].mxu0 %vm26_vm1, %v20_v7 }
  0x7a   :  { %4029 = vmatprep.mubr.msk.f32.mxu0 %vm26_vm1, %v22_v6 }
  0x7c   :  { %v251_v41 = vpop.permute.xlu0 %250  ;;  %v253_v44 = vpop.permute.xlu1 %252 }
  0x7d   :  { %4030 = vmatmul.mubr.msk.f32.gmra.mrb[4].mxu0 %vm26_vm1, %v24_v8 }
  0xd8   :  { %v4025_v10 = vpop.f32.mrb[0].mxu0 }
  0xd9   :  { %v109_v11 = vpop.f32.mrb[1].mxu0  ;;  %v139_v17 = vmul.f32 %v4025_v10, %v4025_v10 }
  0xda   :  { %v138_v20 = vmul.f32 %v109_v11, %v109_v11 }
 0x14c   :  { %v4028_v16 = vpop.f32.mrb[2].mxu0 }
 0x14d   :  { %v141_v18 = vmul.f32 %v4028_v16, %v4028_v16  ;;  %v119_v19 = vpop.f32.mrb[3].mxu0 }
 0x14e   :  { %v140_v21 = vmul.f32 %v119_v19, %v119_v19 }
 0x14f   :  { %v143_v22 = vadd.f32 %v141_v18, %v139_v17 }
 0x150   :  { %v142_v23 = vadd.f32 %v140_v21, %v138_v20  ;;  %v4031_v24 = vpop.f32.mrb[4].mxu0 }
 0x151   :  { %v145_v25 = vmul.f32 %v4031_v24, %v4031_v24  ;;  %v129_v26 = vpop.f32.mrb[5].mxu0 }
 0x152   :  { %v144_v27 = vmul.f32 %v129_v26, %v129_v26 }
 0x153   :  { %v147_v28 = vadd.f32 %v145_v25, %v143_v22 }
 0x154   :  { %v146_v29 = vadd.f32 %v144_v27, %v142_v23  ;;  %v4501_v27 = vmov 0  }
 0x155   :  { %v149_v30 = vmax.f32 %v147_v28, 1e-08  ;;  %4353 = vset.pattern.permute.xlu1 %v4501_v27  ;;  %4352 = vset.pattern.permute.xlu0 %v4501_v27 }
 0x156   :  { %v148_v31 = vmax.f32 %v146_v29, 1e-08 }
 0x157   :  { %4374 = vrsqrt.f32 %v149_v30  ;;  %vm159_vm3 = vcmp.eq.f32.partialorder %v149_v30, inf  ;;  %v162_v39 = vand.u32 2147483648, %v149_v30  ;;  %vm161_vm7 = vcmp.eq.f32.partialorder %v149_v30, 0.0 }
 0x158   :  { %4376 = vrsqrt.f32 %v148_v31  ;;  %vm152_vm4 = vcmp.eq.f32.partialorder %v148_v31, inf  ;;  %v155_v36 = vand.u32 2147483648, %v148_v31  ;;  %vm154_vm6 = vcmp.eq.f32.partialorder %v148_v31, 0.0 }
 0x161   :  { %v4375_v32 = vpop.eup %4374 }
 0x162   :  { %v4377_v33 = vpop.eup %4376  ;;  %v158_v34 = vmul.f32 %v4375_v32, %v149_v30 }
 0x163   :  { %v151_v35 = vmul.f32 %v4377_v33, %v148_v31 }
 0x164   :  { %v160_v37 = vsel %vm159_vm3, %v149_v30, %v158_v34 }
 0x165   :  { %v153_v38 = vsel %vm152_vm4, %v148_v31, %v151_v35  ;;  %v163_v42 = vsel %vm161_vm7, %v162_v39, %v160_v37 }
 0x166   :  { %v156_v40 = vsel %vm154_vm6, %v155_v36, %v153_v38 }
 0x167   :  { %4034 = vmatprep.mubr.msk.f32.mxu1 %vm166_vm5, %v156_v40 }
 0x168   :  { %4035 = vmatmul.mubr.msk.f32.vlgmr.msra.gmra.mrb[0].mxu1 %vm166_vm5, %v163_v42 }
 0x169   :  { %4038 = vmatpush3.msk.msra.mxu1 %vm259_vm2, %v164_v12  ;;  %4039 = vmatprep.mubr.msk.f32.mxu1 %vm254_vm8, %v251_v41 }
 0x16a   :  { %4042 = vmatprep.subr.mxu1 %v345_v43 }
 0x170   :  { %4040 = vmatmul.mubr.msk.f32.vlgmr.msra.gmra.mrb[0].mxu1 %vm254_vm8, %v253_v44 }
 0x171   :  { %4044 = vmatprep.mubr.msk.f32.mxu1 %vm166_vm5, %v109_v11  ;;  %4043 = vmatpush3.msra.mxu1 %v345_v43 }
 0x174   :  { %4045 = vmatmul.mubr.msk.f32.vlgmr.msra.gmra.mrb[2].mxu1 %vm166_vm5, %v4025_v10 }
 0x175   :  { %4047 = vmatprep.mubr.msk.f32.mxu1 %vm166_vm5, %v119_v19 }
 0x178   :  { %4048 = vmatmul.mubr.msk.f32.gmra.mrb[4].mxu1 %vm166_vm5, %v4028_v16 }
 0x179   :  { %4050 = vmatprep.mubr.msk.f32.mxu1 %vm166_vm5, %v129_v26 }
 0x17c   :  { %4051 = vmatmul.mubr.msk.f32.gmra.mrb[6].mxu1 %vm166_vm5, %v4031_v24 }
 0x243   :  { %v4041_v46 = vpop.f32.mrb[0].mxu1 }
 0x244   :  { %v329_v47 = vpop.f32.mrb[1].mxu1  ;;  %v4593_v49 = vadd.f32 %v4041_v46, %v3760_v45  ;;  %v662_v46 = vld [vmem:[%s5191_s1 + $0x50] sm:$0xff] }
 0x245   :  { %v4591_v48 = vadd.f32 %v3760_v45, %v329_v47  ;;  %v663_v47 = vld [vmem:[%s5191_s1 + $0x58] sm:$0xff] }
 0x247   :  { %v4046_v50 = vpop.f32.mrb[2].mxu1  ;;  %4057 = vmatprep.mubr.msk.f32.mxu0 %vm466_vm9, %v4591_v48 }
 0x248   :  { %v430_v51 = vpop.f32.mrb[3].mxu1  ;;  %4058 = vmatmul.mubr.msk.f32.vlgmr.msra.gmra.mrb[6].mxu0 %vm466_vm9, %v4593_v49 }
 0x24b   :  { %v4049_v52 = vpop.f32.mrb[4].mxu1 }
 0x24c   :  { %v440_v53 = vpop.f32.mrb[5].mxu1 }
 0x24f   :  { %v4052_v54 = vpop.f32.mrb[6].mxu1 }
 0x250   :  { %v450_v55 = vpop.f32.mrb[7].mxu1 }
 0x31b   :  { %v4059_v57 = vpop.f32.mrb[6].mxu0 }
 0x31c   :  { %v545_v58 = vadd.f32 %v4059_v57, %v3767_v56  ;;  %v539_v59 = vpop.f32.mrb[7].mxu0 }
 0x31d   :  { %v540_v60 = vadd.f32 %v3767_v56, %v539_v59 }
 0x31e   :  { %v549_v61 = vsub.f32 0.0, %v545_v58 }
 0x31f   :  { %v548_v62 = vsub.f32 0.0, %v540_v60 }
 0x320   :  { %v552_v63 = vmul.f32 1.442695, %v549_v61 }
 0x321   :  { %v550_v0 = vmul.f32 1.442695, %v548_v62 }
 0x322   :  { %4378 = vpow2.f32 %v552_v63 }
 0x323   :  { %4380 = vpow2.f32 %v550_v0 }
 0x32c   :  { %v4379_v1 = vpop.eup %4378 }
 0x32d   :  { %v4381_v2 = vpop.eup %4380  ;;  %v555_v5 = vadd.f32 1.0, %v4379_v1 }
 0x32e   :  { %v554_v6 = vadd.f32 1.0, %v4381_v2 }
 0x32f   :  { %4382 = vrcp.f32 %v555_v5 }
 0x330   :  { %4384 = vrcp.f32 %v554_v6 }
 0x339   :  { %v4383_v7 = vpop.eup %4382 }
 0x33a   :  { %v4385_v8 = vpop.eup %4384  ;;  %v4602_v9 = vmul.f32 %v4383_v7, %v4046_v50  ;;  %v4604_v10 = vmul.f32 %v4383_v7, %v4049_v52  ;;  %v4606_v11 = vmul.f32 %v4383_v7, %v4052_v54  ;;  %v4267_v50 = vpack.c.bf16 %v663_v47, %v662_v46 }
 0x33b   :  { %v4608_v12 = vmul.f32 %v4385_v8, %v430_v51  ;;  %v4610_v13 = vmul.f32 %v4385_v8, %v440_v53  ;;  %v4612_v14 = vmul.f32 %v4385_v8, %v450_v55  ;;  %v756_v51 = vld [vmem:[%s5191_s1 + $0x68] sm:$0xff]  ;;  %v571_v52 = vsel %vm466_vm9, %v4593_v49, 0.0 }
 0x33c   :  { %v608_v15 = vmul.f32 %v4602_v9, %v4602_v9  ;;  %v610_v16 = vmul.f32 %v4604_v10, %v4604_v10  ;;  %v614_v20 = vmul.f32 %v4606_v11, %v4606_v11  ;;  %4268 = vmatprep.subr.bf16.mxu0 %v4267_v50  ;;  %v568_v53 = vsel %vm466_vm9, %v4591_v48, 0.0 }
 0x33d   :  { %v607_v17 = vmul.f32 %v4608_v12, %v4608_v12  ;;  %v609_v18 = vmul.f32 %v4610_v13, %v4610_v13  ;;  %v613_v22 = vmul.f32 %v4612_v14, %v4612_v14  ;;  %4270 = vmatpush3.bf16.msra.mxu0 %v4267_v50 }
 0x33e   :  { %v612_v19 = vadd.f32 %v610_v16, %v608_v15  ;;  %4067 = vmatprep.subr.mxu0 %v756_v51 }
 0x33f   :  { %v611_v21 = vadd.f32 %v609_v18, %v607_v17 }
 0x340   :  { %v616_v23 = vadd.f32 %v614_v20, %v612_v19 }
 0x341   :  { %v615_v24 = vadd.f32 %v613_v22, %v611_v21 }
 0x342   :  { %v620_v25 = vsel %vm166_vm5, %v616_v23, 0.0 }
 0x343   :  { %621 = vadd.xlane.f32.xlu1 %v620_v25  ;;  %v617_v26 = vsel %vm166_vm5, %v615_v24, 0.0 }
 0x344   :  { %618 = vadd.xlane.f32.xlu0 %v617_v26 }
 0x3d0   :  { %v622_v28 = vpop.xlane.xlu1 %621 }
 0x3d1   :  { %v625_v29 = vmul.f32 0.125, %v622_v28  ;;  %v619_v30 = vpop.xlane.xlu0 %618 }
 0x3d2   :  { %v624_v31 = vmul.f32 0.125, %v619_v30 }
 0x3d3   :  { %v627_v32 = vadd.f32 0.0001, %v625_v29 }
 0x3d4   :  { %v626_v33 = vadd.f32 0.0001, %v624_v31 }
 0x3d5   :  { %4386 = vrsqrt.f32 %v627_v32  ;;  %vm637_vm10 = vcmp.eq.f32.partialorder %v627_v32, inf  ;;  %v640_v37 = vand.u32 2147483648, %v627_v32  ;;  %vm639_vm11 = vcmp.eq.f32.partialorder %v627_v32, 0.0 }
 0x3d6   :  { %4388 = vrsqrt.f32 %v626_v33  ;;  %vm630_vm12 = vcmp.eq.f32.partialorder %v626_v33, inf  ;;  %v633_v40 = vand.u32 2147483648, %v626_v33  ;;  %vm632_vm13 = vcmp.eq.f32.partialorder %v626_v33, 0.0 }
 0x3df   :  { %v4387_v34 = vpop.eup %4386 }
 0x3e0   :  { %v4389_v35 = vpop.eup %4388  ;;  %v636_v36 = vmul.f32 %v4387_v34, %v627_v32 }
 0x3e1   :  { %v629_v38 = vmul.f32 %v4389_v35, %v626_v33 }
 0x3e2   :  { %v638_v39 = vsel %vm637_vm10, %v627_v32, %v636_v36 }
 0x3e3   :  { %v641_v41 = vsel %vm639_vm11, %v640_v37, %v638_v39  ;;  %v631_v42 = vsel %vm630_vm12, %v626_v33, %v629_v38 }
 0x3e4   :  { %4390 = vrcp.f32 %v641_v41  ;;  %v634_v43 = vsel %vm632_vm13, %v633_v40, %v631_v42  ;;  %v3770_v41 = vld [vmem:[%s5191_s1 + $0x40] ss:$0 sm:$0xff] }
 0x3e5   :  { %4392 = vrcp.f32 %v634_v43 }
 0x3ee   :  { %v4391_v44 = vpop.eup %4390 }
 0x3ef   :  { %v4393_v45 = vpop.eup %4392  ;;  %653 = vperm.xlu1 %4353, %v4391_v44   ;;  %v3771_v44 = vld [vmem:[%s5191_s1 + $0x48] ss:$0 sm:$0xff] }
 0x3f0   :  { %648 = vperm.xlu0 %4352, %v4393_v45  }
 0x3f3   :  { %664 = vrot.lane.b32.xlu1 %v4548_v3, %s4502_s12 }
 0x3f7   :  { %666 = vrot.lane.b32.xlu1 %v4553_v4, %s4502_s12 }
 0x40f   :  { %572 = vadd.xlane.f32.xlu0 %v571_v52 }
 0x41b   :  { %569 = vadd.xlane.f32.xlu1 %v568_v53 }
 0x46e   :  { %v654_v54 = vpop.permute.xlu1 %653 }
 0x46f   :  { %v649_v55 = vpop.permute.xlu0 %648  ;;  %v4661_v4 = vmul.f32 %v654_v54, %v4602_v9  ;;  %v4671_v59 = vmul.f32 %v654_v54, %v4604_v10  ;;  %v4681_v61 = vmul.f32 %v654_v54, %v4606_v11  ;;  %v898_v10 = vld [vmem:[%s5191_s1 + $0x88] sm:$0xff] }
 0x470   :  { %v4652_v56 = vmul.f32 %v649_v55, %v4608_v12  ;;  %v4664_v58 = vmul.f32 %v649_v55, %v4610_v13  ;;  %v4674_v60 = vmul.f32 %v649_v55, %v4612_v14  ;;  %4078 = vmatprep.subr.mxu1 %v898_v10  ;;  %v3774_v55 = vld [vmem:[%s5191_s1 + $0x60] ss:$0 sm:$0xff] }
 0x471   :  { %4079 = vmatpush3.msra.mxu1 %v898_v10 }
 0x472   :  { %v4647_v3 = vpop.permute.xlu1 %664 }
 0x473   :  { %4064 = vmatprep.mubr.msk.f32.mxu0 %vm466_vm9, %v4647_v3 }
 0x476   :  { %v4654_v57 = vpop.permute.xlu1 %666 }
 0x477   :  { %4065 = vmatmul.mubr.msk.f32.vlgmr.msra.gmra.mrb[8].mxu0 %vm466_vm9, %v4654_v57 }
 0x478   :  { %4068 = vmatpush3.msra.mxu0 %v756_v51  ;;  %4069 = vmatprep.mubr.msk.f32.mxu0 %vm166_vm5, %v4652_v56 }
 0x47b   :  { %4070 = vmatmul.mubr.msk.f32.vlgmr.msra.gmra.mrb[10].mxu0 %vm166_vm5, %v4661_v4 }
 0x47c   :  { %4072 = vmatprep.mubr.msk.f32.mxu0 %vm166_vm5, %v4664_v58 }
 0x47f   :  { %4073 = vmatmul.mubr.msk.f32.gmra.mrb[12].mxu0 %vm166_vm5, %v4671_v59 }
 0x480   :  { %4075 = vmatprep.mubr.msk.f32.mxu0 %vm166_vm5, %v4674_v60 }
 0x483   :  { %4076 = vmatmul.mubr.msk.f32.gmra.mrb[14].mxu0 %vm166_vm5, %v4681_v61 }
 0x49c   :  { %v573_v62 = vpop.xlane.xlu0 %572 }
 0x49d   :  { %v576_v63 = vmul.f32 0.0625, %v573_v62 }
 0x49f   :  { %v578_v2 = vsub.f32 %v4593_v49, %v576_v63  ;;  %v896_v49 = vld [vmem:[%s5191_s1 + $0x78] sm:$0xff] }
 0x4a1   :  { %v580_v8 = vmul.f32 %v578_v2, %v578_v2 }
 0x4a3   :  { %v584_v9 = vsel %vm466_vm9, %v580_v8, 0.0  ;;  %v1068_v8 = vld [vmem:[%s5191_s1 + $0x70] sm:$0xff] }
 0x4a8   :  { %v570_v0 = vpop.xlane.xlu1 %569 }
 0x4a9   :  { %v575_v1 = vmul.f32 0.0625, %v570_v0 }
 0x4ab   :  { %v577_v5 = vsub.f32 %v4591_v48, %v575_v1  ;;  %v897_v48 = vld [vmem:[%s5191_s1 + $0x80] sm:$0xff] }
 0x4ac   :  { %v4271_v11 = vpack.c.bf16 %v897_v48, %v896_v49  ;;  %v1194_v49 = vld [vmem:[%s5191_s1 + $0x98] sm:$0xff]  ;;  %v1195_v48 = vld [vmem:[%s5191_s1 + $0xa0] sm:$0xff] }
 0x4ad   :  { %v579_v6 = vmul.f32 %v577_v5, %v577_v5 }
 0x4ae   :  { %4272 = vmatprep.subr.bf16.mxu1 %v4271_v11 }
 0x4af   :  { %v581_v7 = vsel %vm466_vm9, %v579_v6, 0.0 }
 0x4b0   :  { %582 = vadd.xlane.f32.xlu1 %v581_v7 }
 0x4b4   :  { %585 = vadd.xlane.f32.xlu1 %v584_v9 }
 0x53d   :  { %v583_v12 = vpop.xlane.xlu1 %582 }
 0x53e   :  { %v587_v13 = vmul.f32 0.0625, %v583_v12  ;;  %v3785_v12 = vld [vmem:[%s5191_s1 + $0x90] ss:$0 sm:$0xff] }
 0x540   :  { %v589_v16 = vadd.f32 0.0001, %v587_v13 }
 0x541   :  { %v586_v17 = vpop.xlane.xlu1 %585 }
 0x542   :  { %v588_v19 = vmul.f32 0.0625, %v586_v17  ;;  %4394 = vrsqrt.f32 %v589_v16 }
 0x544   :  { %v590_v22 = vadd.f32 0.0001, %v588_v19 }
 0x546   :  { %4396 = vrsqrt.f32 %v590_v22 }
 0x54a   :  { %v4066_v14 = vpop.f32.mrb[8].mxu0 }
 0x54b   :  { %v738_v15 = vpop.f32.mrb[9].mxu0 }
 0x54c   :  { %v4395_v36 = vpop.eup %4394 }
 0x54d   :  { %v593_v40 = vmul.f32 %v4395_v36, %v577_v5 }
 0x54e   :  { %v4071_v18 = vpop.f32.mrb[10].mxu0 }
 0x54f   :  { %v841_v20 = vpop.f32.mrb[11].mxu0  ;;  %v871_v23 = vmul.f32 %v4071_v18, %v4071_v18  ;;  %v599_v43 = vmul.f32 %v3770_v41, %v593_v40 }
 0x550   :  { %v870_v26 = vmul.f32 %v841_v20, %v841_v20  ;;  %v4397_v42 = vpop.eup %4396 }
 0x551   :  { %v594_v45 = vmul.f32 %v4397_v42, %v578_v2  ;;  %v605_v46 = vadd.f32 %v3771_v44, %v599_v43 }
 0x552   :  { %v4074_v21 = vpop.f32.mrb[12].mxu0 }
 0x553   :  { %v873_v24 = vmul.f32 %v4074_v21, %v4074_v21  ;;  %v851_v25 = vpop.f32.mrb[13].mxu0  ;;  %v600_v51 = vmul.f32 %v3770_v41, %v594_v45  ;;  %v747_v53 = vadd.f32 %v738_v15, %v605_v46 }
 0x554   :  { %v872_v28 = vmul.f32 %v851_v25, %v851_v25 }
 0x555   :  { %v875_v29 = vadd.f32 %v873_v24, %v871_v23  ;;  %v606_v5 = vadd.f32 %v3771_v44, %v600_v51  ;;  %v4707_v6 = vadd.f32 %v3774_v55, %v747_v53 }
 0x556   :  { %v874_v30 = vadd.f32 %v872_v28, %v870_v26  ;;  %v4077_v31 = vpop.f32.mrb[14].mxu0 }
 0x557   :  { %v877_v32 = vmul.f32 %v4077_v31, %v4077_v31  ;;  %v861_v33 = vpop.f32.mrb[15].mxu0  ;;  %v748_v9 = vadd.f32 %v4066_v14, %v606_v5  ;;  %v1442_v5 = vld [vmem:[%s5191_s1 + $0xc0] sm:$0xff] }
 0x558   :  { %v876_v34 = vmul.f32 %v861_v33, %v861_v33 }
 0x559   :  { %v879_v35 = vadd.f32 %v877_v32, %v875_v29  ;;  %v4716_v10 = vadd.f32 %v3774_v55, %v748_v9 }
 0x55a   :  { %v878_v37 = vadd.f32 %v876_v34, %v874_v30  ;;  %v1302_v34 = vld [vmem:[%s5191_s1 + $0xb0] sm:$0xff] }
 0x55b   :  { %v881_v38 = vmax.f32 %v879_v35, 1e-08  ;;  %v3792_v35 = vld [vmem:[%s5191_s1 + $0xa8] ss:$0 sm:$0xff] }
 0x55c   :  { %v880_v39 = vmax.f32 %v878_v37, 1e-08 }
 0x55d   :  { %4398 = vrsqrt.f32 %v881_v38  ;;  %vm891_vm14 = vcmp.eq.f32.partialorder %v881_v38, inf  ;;  %v894_v1 = vand.u32 2147483648, %v881_v38  ;;  %vm893_vm1 = vcmp.eq.f32.partialorder %v881_v38, 0.0 }
 0x55e   :  { %4400 = vrsqrt.f32 %v880_v39  ;;  %vm884_vm15 = vcmp.eq.f32.partialorder %v880_v39, inf  ;;  %v887_v62 = vand.u32 2147483648, %v880_v39  ;;  %vm886_vm0 = vcmp.eq.f32.partialorder %v880_v39, 0.0 }
 0x567   :  { %v4399_v47 = vpop.eup %4398 }
 0x568   :  { %v4401_v50 = vpop.eup %4400  ;;  %v890_v52 = vmul.f32 %v4399_v47, %v881_v38 }
 0x569   :  { %v883_v54 = vmul.f32 %v4401_v50, %v880_v39 }
 0x56a   :  { %v892_v63 = vsel %vm891_vm14, %v881_v38, %v890_v52 }
 0x56b   :  { %v885_v0 = vsel %vm884_vm15, %v880_v39, %v883_v54  ;;  %v895_v7 = vsel %vm893_vm1, %v894_v1, %v892_v63  ;;  %v1444_v1 = vld [vmem:[%s5191_s1 + $0xd0] sm:$0xff] }
 0x56c   :  { %v888_v2 = vsel %vm886_vm0, %v887_v62, %v885_v0  ;;  %v1614_v0 = vld [vmem:[%s5191_s1 + $0xb8] sm:$0xff] }
 0x56d   :  { %4080 = vmatprep.mubr.msk.f32.mxu1 %vm166_vm5, %v888_v2  ;;  %v1443_v2 = vld [vmem:[%s5191_s1 + $0xc8] sm:$0xff] }
 0x56e   :  { %4081 = vmatmul.mubr.msk.f32.vlgmr.msra.gmra.mrb[8].mxu1 %vm166_vm5, %v895_v7  ;;  %v4279_v7 = vpack.c.bf16 %v1443_v2, %v1442_v5 }
 0x56f   :  { %4274 = vmatpush3.bf16.msra.mxu1 %v4271_v11  ;;  %4087 = vmatprep.mubr.msk.f32.mxu1 %vm466_vm9, %v4707_v6  ;;  %v4275_v11 = vpack.c.bf16 %v1195_v48, %v1194_v49 }
 0x570   :  { %4090 = vmatprep.subr.mxu1 %v1068_v8 }
 0x571   :  { %4276 = vmatprep.subr.bf16.mxu0 %v4275_v11 }
 0x572   :  { %4278 = vmatpush3.bf16.msra.mxu0 %v4275_v11 }
 0x573   :  { %4108 = vmatprep.subr.mxu0 %v1302_v34 }
 0x576   :  { %4088 = vmatmul.mubr.msk.f32.vlgmr.msra.gmra.mrb[8].mxu1 %vm466_vm9, %v4716_v10 }
 0x577   :  { %4092 = vmatprep.mubr.msk.f32.mxu1 %vm166_vm5, %v841_v20  ;;  %4091 = vmatpush3.msra.mxu1 %v1068_v8 }
 0x578   :  { %4119 = vmatprep.subr.mxu1 %v1444_v1 }
 0x57a   :  { %4093 = vmatmul.mubr.msk.f32.vlgmr.msra.gmra.mrb[10].mxu1 %vm166_vm5, %v4071_v18 }
 0x57b   :  { %4095 = vmatprep.mubr.msk.f32.mxu1 %vm166_vm5, %v851_v25  ;;  %4120 = vmatpush3.msra.mxu1 %v1444_v1 }
 0x57c   :  { %4280 = vmatprep.subr.bf16.mxu1 %v4279_v7 }
 0x57e   :  { %4096 = vmatmul.mubr.msk.f32.gmra.mrb[12].mxu1 %vm166_vm5, %v4074_v21 }
 0x57f   :  { %4098 = vmatprep.mubr.msk.f32.mxu1 %vm166_vm5, %v861_v33 }
 0x582   :  { %4099 = vmatmul.mubr.msk.f32.gmra.mrb[14].mxu1 %vm166_vm5, %v4077_v31 }
 0x649   :  { %v4089_v13 = vpop.f32.mrb[8].mxu1 }
 0x64a   :  { %v4735_v14 = vadd.f32 %v4089_v13, %v3785_v12  ;;  %v1052_v15 = vpop.f32.mrb[9].mxu1 }
 0x64b   :  { %v4737_v16 = vadd.f32 %v3785_v12, %v1052_v15 }
 0x64c   :  { %v1183_v17 = vsub.f32 0.0, %v4735_v14 }
 0x64d   :  { %v1182_v18 = vsub.f32 0.0, %v4737_v16  ;;  %v4094_v19 = vpop.f32.mrb[10].mxu1 }
 0x64e   :  { %v1186_v20 = vmul.f32 1.442695, %v1183_v17  ;;  %v1153_v21 = vpop.f32.mrb[11].mxu1 }
 0x64f   :  { %v1184_v22 = vmul.f32 1.442695, %v1182_v18 }
 0x650   :  { %4402 = vpow2.f32 %v1186_v20 }
 0x651   :  { %4404 = vpow2.f32 %v1184_v22  ;;  %v4097_v23 = vpop.f32.mrb[12].mxu1 }
 0x652   :  { %v1163_v24 = vpop.f32.mrb[13].mxu1 }
 0x655   :  { %v4100_v25 = vpop.f32.mrb[14].mxu1 }
 0x656   :  { %v1173_v26 = vpop.f32.mrb[15].mxu1 }
 0x65a   :  { %v4403_v28 = vpop.eup %4402 }
 0x65b   :  { %v4405_v29 = vpop.eup %4404  ;;  %v1189_v30 = vadd.f32 1.0, %v4403_v28 }
 0x65c   :  { %v1188_v31 = vadd.f32 1.0, %v4405_v29 }
 0x65e   :  { %4406 = vrcp.f32 %v1188_v31 }
 0x65f   :  { %4408 = vrcp.f32 %v1189_v30 }
 0x668   :  { %v4407_v32 = vpop.eup %4406 }
 0x669   :  { %v4409_v33 = vpop.eup %4408  ;;  %4105 = vmatprep.mubr.msk.f32.mxu0 %vm466_vm9, %v4407_v32 }
 0x66a   :  { %4106 = vmatmul.mubr.msk.f32.vlgmr.msra.gmra.mrb[16].mxu0 %vm466_vm9, %v4409_v33 }
 0x66b   :  { %4109 = vmatpush3.msra.mxu0 %v1302_v34 }
 0x66c   :  { %4131 = vmatprep.subr.mxu0 %v1614_v0 }
 0x73d   :  { %v4107_v36 = vpop.f32.mrb[16].mxu0 }
 0x73e   :  { %v1279_v37 = vadd.f32 %v4107_v36, %v3792_v35  ;;  %v1273_v38 = vpop.f32.mrb[17].mxu0 }
 0x73f   :  { %v1274_v39 = vadd.f32 %v3792_v35, %v1273_v38 }
 0x740   :  { %v1283_v40 = vsub.f32 0.0, %v1279_v37  ;;  %v1300_v37 = vmax.f32 %v4737_v16, 0.0  ;;  %v1729_v16 = vld [vmem:[%s5191_s1 + $0xe8] sm:$0xff] }
 0x741   :  { %v1282_v41 = vsub.f32 0.0, %v1274_v39  ;;  %v1301_v39 = vmax.f32 %v4735_v14, 0.0  ;;  %v3805_v14 = vld [vmem:[%s5191_s1 + $0xd8] ss:$0 sm:$0xff] }
 0x742   :  { %v1286_v42 = vmul.f32 1.442695, %v1283_v40  ;;  %v1728_v40 = vld [vmem:[%s5191_s1 + $0xe0] sm:$0xff] }
 0x743   :  { %v1284_v43 = vmul.f32 1.442695, %v1282_v41  ;;  %v4283_v41 = vpack.c.bf16 %v1729_v16, %v1728_v40 }
 0x744   :  { %4410 = vpow2.f32 %v1286_v42 }
 0x745   :  { %4412 = vpow2.f32 %v1284_v43 }
 0x74e   :  { %v4411_v44 = vpop.eup %4410 }
 0x74f   :  { %v4413_v45 = vpop.eup %4412  ;;  %v1289_v46 = vadd.f32 1.0, %v4411_v44 }
 0x750   :  { %v1288_v47 = vadd.f32 1.0, %v4413_v45 }
 0x751   :  { %4414 = vrcp.f32 %v1289_v46 }
 0x752   :  { %4416 = vrcp.f32 %v1288_v47 }
 0x75b   :  { %v4415_v50 = vpop.eup %4414 }
 0x75c   :  { %v4417_v51 = vpop.eup %4416  ;;  %v1295_v52 = vmul.f32 %v4415_v50, %v4094_v19  ;;  %v1297_v53 = vmul.f32 %v4415_v50, %v4097_v23  ;;  %v1299_v54 = vmul.f32 %v4415_v50, %v4100_v25 }
 0x75d   :  { %v1294_v55 = vmul.f32 %v4417_v51, %v1153_v21  ;;  %v1296_v62 = vmul.f32 %v4417_v51, %v1163_v24  ;;  %v1298_v63 = vmul.f32 %v4417_v51, %v1173_v26 }
 0x75f   :  { %4110 = vmatprep.mubr.msk.f32.mxu0 %vm166_vm5, %v1294_v55 }
 0x760   :  { %4111 = vmatmul.mubr.msk.f32.vlgmr.msra.gmra.mrb[18].mxu0 %vm166_vm5, %v1295_v52 }
 0x761   :  { %4113 = vmatprep.mubr.msk.f32.mxu0 %vm166_vm5, %v1296_v62  ;;  %4132 = vmatpush3.msra.mxu0 %v1614_v0 }
 0x764   :  { %4114 = vmatmul.mubr.msk.f32.gmra.mrb[20].mxu0 %vm166_vm5, %v1297_v53 }
 0x765   :  { %4116 = vmatprep.mubr.msk.f32.mxu0 %vm166_vm5, %v1298_v63 }
 0x768   :  { %4117 = vmatmul.mubr.msk.f32.gmra.mrb[22].mxu0 %vm166_vm5, %v1299_v54  ;;  %v3812_v54 = vld [vmem:[%s5191_s1 + $0xf0] ss:$0 sm:$0xff] }
 0x833   :  { %v4112_v8 = vpop.f32.mrb[18].mxu0 }
 0x834   :  { %v1387_v9 = vpop.f32.mrb[19].mxu0  ;;  %v1417_v48 = vmul.f32 %v4112_v8, %v4112_v8 }
 0x835   :  { %4133 = vmatprep.mubr.msk.f32.mxu0 %vm166_vm5, %v1387_v9  ;;  %v1416_v13 = vmul.f32 %v1387_v9, %v1387_v9 }
 0x836   :  { %4134 = vmatmul.mubr.msk.f32.vlgmr.msra.gmra.mrb[24].mxu0 %vm166_vm5, %v4112_v8 }
 0x837   :  { %v4115_v49 = vpop.f32.mrb[20].mxu0 }
 0x838   :  { %v1419_v11 = vmul.f32 %v4115_v49, %v4115_v49  ;;  %v1397_v12 = vpop.f32.mrb[21].mxu0 }
 0x839   :  { %v1418_v15 = vmul.f32 %v1397_v12, %v1397_v12  ;;  %4136 = vmatprep.mubr.msk.f32.mxu0 %vm166_vm5, %v1397_v12 }
 0x83a   :  { %v1421_v17 = vadd.f32 %v1419_v11, %v1417_v48  ;;  %4137 = vmatmul.mubr.msk.f32.gmra.mrb[26].mxu0 %vm166_vm5, %v4115_v49 }
 0x83b   :  { %v1420_v18 = vadd.f32 %v1418_v15, %v1416_v13  ;;  %v4118_v19 = vpop.f32.mrb[22].mxu0 }
 0x83c   :  { %v1423_v20 = vmul.f32 %v4118_v19, %v4118_v19  ;;  %v1407_v21 = vpop.f32.mrb[23].mxu0 }
 0x83d   :  { %v1422_v22 = vmul.f32 %v1407_v21, %v1407_v21  ;;  %4139 = vmatprep.mubr.msk.f32.mxu0 %vm166_vm5, %v1407_v21 }
 0x83e   :  { %v1425_v23 = vadd.f32 %v1423_v20, %v1421_v17  ;;  %4140 = vmatmul.mubr.msk.f32.gmra.mrb[28].mxu0 %vm166_vm5, %v4118_v19 }
 0x83f   :  { %v1424_v24 = vadd.f32 %v1422_v22, %v1420_v18 }
 0x840   :  { %v1427_v25 = vmax.f32 %v1425_v23, 1e-08 }
 0x841   :  { %v1426_v26 = vmax.f32 %v1424_v24, 1e-08 }
 0x842   :  { %4418 = vrsqrt.f32 %v1427_v25  ;;  %vm1437_vm3 = vcmp.eq.f32.partialorder %v1427_v25, inf  ;;  %v1440_v35 = vand.u32 2147483648, %v1427_v25  ;;  %vm1439_vm7 = vcmp.eq.f32.partialorder %v1427_v25, 0.0 }
 0x843   :  { %4420 = vrsqrt.f32 %v1426_v26  ;;  %vm1430_vm4 = vcmp.eq.f32.partialorder %v1426_v26, inf  ;;  %v1433_v32 = vand.u32 2147483648, %v1426_v26  ;;  %vm1432_vm6 = vcmp.eq.f32.partialorder %v1426_v26, 0.0 }
 0x84c   :  { %v4419_v28 = vpop.eup %4418 }
 0x84d   :  { %v4421_v29 = vpop.eup %4420  ;;  %v1436_v30 = vmul.f32 %v4419_v28, %v1427_v25 }
 0x84e   :  { %v1429_v31 = vmul.f32 %v4421_v29, %v1426_v26 }
 0x84f   :  { %v1438_v33 = vsel %vm1437_vm3, %v1427_v25, %v1436_v30 }
 0x850   :  { %v1431_v34 = vsel %vm1430_vm4, %v1426_v26, %v1429_v31  ;;  %v1441_v38 = vsel %vm1439_vm7, %v1440_v35, %v1438_v33  ;;  %vm3267_vm7 = vcmask 1045504  }
 0x851   :  { %v1434_v36 = vsel %vm1432_vm6, %v1433_v32, %v1431_v34 }
 0x852   :  { %4121 = vmatprep.mubr.msk.f32.mxu1 %vm166_vm5, %v1434_v36 }
 0x853   :  { %4122 = vmatmul.mubr.msk.f32.vlgmr.msra.gmra.mrb[16].mxu1 %vm166_vm5, %v1441_v38 }
 0x854   :  { %4282 = vmatpush3.bf16.msra.mxu1 %v4279_v7  ;;  %4128 = vmatprep.mubr.msk.f32.mxu1 %vm466_vm9, %v1300_v37 }
 0x855   :  { %4284 = vmatprep.subr.bf16.mxu1 %v4283_v41 }
 0x85b   :  { %4129 = vmatmul.mubr.msk.f32.vlgmr.msra.gmra.mrb[16].mxu1 %vm466_vm9, %v1301_v39 }
 0x85c   :  { %4286 = vmatpush3.bf16.msra.mxu1 %v4283_v41 }
 0x909   :  { %v4135_v42 = vpop.f32.mrb[24].mxu0 }
 0x90a   :  { %v1699_v43 = vpop.f32.mrb[25].mxu0 }
 0x90d   :  { %v4138_v44 = vpop.f32.mrb[26].mxu0 }
 0x90e   :  { %v1709_v45 = vpop.f32.mrb[27].mxu0 }
 0x911   :  { %v4141_v46 = vpop.f32.mrb[28].mxu0 }
 0x912   :  { %v1719_v47 = vpop.f32.mrb[29].mxu0 }
 0x92e   :  { %v4130_v50 = vpop.f32.mrb[16].mxu1 }
 0x92f   :  { %v1598_v51 = vpop.f32.mrb[17].mxu1  ;;  %v4790_v53 = vadd.f32 %v4130_v50, %v3805_v14 }
 0x930   :  { %v4788_v52 = vadd.f32 %v3805_v14, %v1598_v51 }
 0x932   :  { %4146 = vmatprep.mubr.msk.f32.mxu1 %vm466_vm9, %v4788_v52 }
 0x933   :  { %4147 = vmatmul.mubr.msk.f32.vlgmr.msra.gmra.mrb[18].mxu1 %vm466_vm9, %v4790_v53 }
 0xa06   :  { %v4148_v55 = vpop.f32.mrb[18].mxu1 }
 0xa07   :  { %v1813_v62 = vadd.f32 %v4148_v55, %v3812_v54  ;;  %v1807_v63 = vpop.f32.mrb[19].mxu1  ;;  %v1835_v55 = vadd.f32 %v4790_v53, %v4716_v10 }
 0xa08   :  { %v1808_v0 = vadd.f32 %v3812_v54, %v1807_v63  ;;  %v1834_v63 = vadd.f32 %v4788_v52, %v4707_v6 }
 0xa09   :  { %v1817_v1 = vsub.f32 0.0, %v1813_v62  ;;  %v1847_v62 = vsel %vm466_vm9, %v1835_v55, 0.0 }
 0xa0a   :  { %v1816_v5 = vsub.f32 0.0, %v1808_v0  ;;  %v1844_v0 = vsel %vm466_vm9, %v1834_v63, 0.0 }
 0xa0b   :  { %v1820_v2 = vmul.f32 1.442695, %v1817_v1 }
 0xa0c   :  { %v1818_v7 = vmul.f32 1.442695, %v1816_v5 }
 0xa0d   :  { %4422 = vpow2.f32 %v1820_v2 }
 0xa0e   :  { %4424 = vpow2.f32 %v1818_v7 }
 0xa17   :  { %v4423_v8 = vpop.eup %4422 }
 0xa18   :  { %v4425_v9 = vpop.eup %4424  ;;  %v1823_v49 = vadd.f32 1.0, %v4423_v8 }
 0xa19   :  { %v1822_v48 = vadd.f32 1.0, %v4425_v9 }
 0xa1a   :  { %4426 = vrcp.f32 %v1823_v49 }
 0xa1b   :  { %4428 = vrcp.f32 %v1822_v48 }
 0xa24   :  { %v4427_v11 = vpop.eup %4426 }
 0xa25   :  { %v4429_v12 = vpop.eup %4428  ;;  %v1829_v13 = vmul.f32 %v4427_v11, %v4135_v42  ;;  %v1831_v15 = vmul.f32 %v4427_v11, %v4138_v44  ;;  %v1833_v17 = vmul.f32 %v4427_v11, %v4141_v46 }
 0xa26   :  { %v1828_v18 = vmul.f32 %v4429_v12, %v1699_v43  ;;  %v1830_v19 = vmul.f32 %v4429_v12, %v1709_v45  ;;  %v1832_v20 = vmul.f32 %v4429_v12, %v1719_v47 }
 0xa27   :  { %v1837_v21 = vadd.f32 %v1829_v13, %v4661_v4  ;;  %v4801_v22 = vadd.f32 %v1831_v15, %v4671_v59  ;;  %v4804_v23 = vadd.f32 %v1833_v17, %v4681_v61 }
 0xa28   :  { %v1836_v24 = vadd.f32 %v1828_v18, %v4652_v56  ;;  %v1838_v25 = vadd.f32 %v1830_v19, %v4664_v58  ;;  %v1840_v26 = vadd.f32 %v1832_v20, %v4674_v60  ;;  %v1936_v60 = vld [vmem:[%s5191_s1 + $0x108] sm:$0xff]  ;;  %v2248_v19 = vld [vmem:[%s5191_s1 + $0x110] sm:$0xff] }
 0xa29   :  { %v1883_v28 = vmul.f32 %v1837_v21, %v1837_v21  ;;  %v1885_v29 = vmul.f32 %v4801_v22, %v4801_v22  ;;  %v1889_v4 = vmul.f32 %v4804_v23, %v4804_v23  ;;  %4149 = vmatprep.subr.mxu1 %v1936_v60  ;;  %v2078_v20 = vld [vmem:[%s5191_s1 + $0x128] sm:$0xff] }
 0xa2a   :  { %v1882_v30 = vmul.f32 %v1836_v24, %v1836_v24  ;;  %v1884_v31 = vmul.f32 %v1838_v25, %v1838_v25  ;;  %v1888_v33 = vmul.f32 %v1840_v26, %v1840_v26  ;;  %4150 = vmatpush3.msra.mxu1 %v1936_v60  ;;  %4160 = vmatprep.subr.mxu0 %v2078_v20 }
 0xa2b   :  { %v1887_v32 = vadd.f32 %v1885_v29, %v1883_v28  ;;  %4172 = vmatprep.subr.mxu1 %v2248_v19  ;;  %4161 = vmatpush3.msra.mxu0 %v2078_v20 }
 0xa2c   :  { %v1886_v59 = vadd.f32 %v1884_v31, %v1882_v30 }
 0xa2d   :  { %v1891_v61 = vadd.f32 %v1889_v4, %v1887_v32 }
 0xa2e   :  { %v1890_v34 = vadd.f32 %v1888_v33, %v1886_v59 }
 0xa2f   :  { %v1895_v56 = vsel %vm166_vm5, %v1891_v61, 0.0 }
 0xa30   :  { %1896 = vadd.xlane.f32.xlu0 %v1895_v56  ;;  %v1892_v58 = vsel %vm166_vm5, %v1890_v34, 0.0 }
 0xa31   :  { %1893 = vadd.xlane.f32.xlu1 %v1892_v58 }
 0xabd   :  { %v1897_v35 = vpop.xlane.xlu0 %1896 }
 0xabe   :  { %v1899_v36 = vmul.f32 0.125, %v1897_v35  ;;  %v1894_v37 = vpop.xlane.xlu1 %1893 }
 0xabf   :  { %v1898_v38 = vmul.f32 0.125, %v1894_v37 }
 0xac0   :  { %v1901_v39 = vadd.f32 0.0001, %v1899_v36 }
 0xac1   :  { %v1900_v40 = vadd.f32 0.0001, %v1898_v38 }
 0xac2   :  { %4430 = vrsqrt.f32 %v1901_v39  ;;  %vm1911_vm8 = vcmp.eq.f32.partialorder %v1901_v39, inf  ;;  %v1914_v43 = vand.u32 2147483648, %v1901_v39  ;;  %vm1913_vm10 = vcmp.eq.f32.partialorder %v1901_v39, 0.0 }
 0xac3   :  { %4432 = vrsqrt.f32 %v1900_v40  ;;  %vm1904_vm11 = vcmp.eq.f32.partialorder %v1900_v40, inf  ;;  %v1907_v46 = vand.u32 2147483648, %v1900_v40  ;;  %vm1906_vm12 = vcmp.eq.f32.partialorder %v1900_v40, 0.0 }
 0xacc   :  { %v4431_v16 = vpop.eup %4430 }
 0xacd   :  { %v4433_v41 = vpop.eup %4432  ;;  %v1910_v42 = vmul.f32 %v4431_v16, %v1901_v39 }
 0xace   :  { %v1903_v44 = vmul.f32 %v4433_v41, %v1900_v40 }
 0xacf   :  { %v1912_v45 = vsel %vm1911_vm8, %v1901_v39, %v1910_v42  ;;  %vm3262_vm8 = vcmask 48128  }
 0xad0   :  { %v1915_v47 = vsel %vm1913_vm10, %v1914_v43, %v1912_v45  ;;  %v1905_v14 = vsel %vm1904_vm11, %v1900_v40, %v1903_v44 }
 0xad1   :  { %4434 = vrcp.f32 %v1915_v47  ;;  %v1908_v50 = vsel %vm1906_vm12, %v1907_v46, %v1905_v14  ;;  %v3815_v47 = vld [vmem:[%s5191_s1 + $0xf8] ss:$0 sm:$0xff] }
 0xad2   :  { %4436 = vrcp.f32 %v1908_v50 }
 0xadb   :  { %v4435_v51 = vpop.eup %4434 }
 0xadc   :  { %v4437_v54 = vpop.eup %4436  ;;  %1927 = vperm.xlu0 %4352, %v4435_v51  }
 0xadd   :  { %1922 = vperm.xlu1 %4353, %v4437_v54  }
 0xafb   :  { %1848 = vadd.xlane.f32.xlu0 %v1847_v62 }
 0xb01   :  { %1845 = vadd.xlane.f32.xlu1 %v1844_v0 }
 0xb5b   :  { %v1928_v1 = vpop.permute.xlu0 %1927 }
 0xb5c   :  { %v1923_v5 = vpop.permute.xlu1 %1922  ;;  %v4826_v7 = vmul.f32 %v1928_v1, %v1837_v21  ;;  %v4837_v6 = vmul.f32 %v1928_v1, %v4801_v22  ;;  %v4846_v52 = vmul.f32 %v1928_v1, %v4804_v23  ;;  %v2076_v21 = vld [vmem:[%s5191_s1 + $0x118] sm:$0xff]  ;;  %v2077_v22 = vld [vmem:[%s5191_s1 + $0x120] sm:$0xff] }
 0xb5d   :  { %v4824_v2 = vmul.f32 %v1923_v5, %v1836_v24  ;;  %v4828_v8 = vmul.f32 %v1923_v5, %v1838_v25  ;;  %v4839_v10 = vmul.f32 %v1923_v5, %v1840_v26  ;;  %v4287_v23 = vpack.c.bf16 %v2077_v22, %v2076_v21  ;;  %v3816_v5 = vld [vmem:[%s5191_s1 + $0x100] ss:$0 sm:$0xff]  ;;  %v3827_v22 = vld [vmem:[%s5191_s1 + $0x130] ss:$0 sm:$0xff] }
 0xb5f   :  { %4151 = vmatprep.mubr.msk.f32.mxu1 %vm166_vm5, %v4824_v2  ;;  %4288 = vmatprep.subr.bf16.mxu0 %v4287_v23 }
 0xb60   :  { %4152 = vmatmul.mubr.msk.f32.vlgmr.msra.gmra.mrb[20].mxu1 %vm166_vm5, %v4826_v7 }
 0xb61   :  { %4154 = vmatprep.mubr.msk.f32.mxu1 %vm166_vm5, %v4828_v8  ;;  %4173 = vmatpush3.msra.mxu1 %v2248_v19 }
 0xb64   :  { %4155 = vmatmul.mubr.msk.f32.gmra.mrb[22].mxu1 %vm166_vm5, %v4837_v6 }
 0xb65   :  { %4157 = vmatprep.mubr.msk.f32.mxu1 %vm166_vm5, %v4839_v10 }
 0xb68   :  { %4158 = vmatmul.mubr.msk.f32.gmra.mrb[24].mxu1 %vm166_vm5, %v4846_v52 }
 0xb88   :  { %v1849_v53 = vpop.xlane.xlu0 %1848 }
 0xb89   :  { %v1851_v9 = vmul.f32 0.0625, %v1849_v53 }
 0xb8b   :  { %v4850_v49 = vsub.f32 %v1835_v55, %v1851_v9 }
 0xb8d   :  { %v1855_v48 = vmul.f32 %v4850_v49, %v4850_v49 }
 0xb8e   :  { %v1846_v11 = vpop.xlane.xlu1 %1845 }
 0xb8f   :  { %v1850_v12 = vmul.f32 0.0625, %v1846_v11  ;;  %v1859_v13 = vsel %vm466_vm9, %v1855_v48, 0.0 }
 0xb90   :  { %1860 = vadd.xlane.f32.xlu0 %v1859_v13 }
 0xb91   :  { %v1852_v15 = vsub.f32 %v1834_v63, %v1850_v12  ;;  %v2375_v12 = vld [vmem:[%s5191_s1 + $0x140] sm:$0xff] }
 0xb93   :  { %v1854_v17 = vmul.f32 %v1852_v15, %v1852_v15 }
 0xb95   :  { %v1856_v18 = vsel %vm466_vm9, %v1854_v17, 0.0 }
 0xb96   :  { %1857 = vadd.xlane.f32.xlu1 %v1856_v18 }
 0xc1d   :  { %v1861_v4 = vpop.xlane.xlu0 %1860 }
 0xc1e   :  { %v1863_v60 = vmul.f32 0.0625, %v1861_v4 }
 0xc20   :  { %v1865_v40 = vadd.f32 0.0001, %v1863_v60 }
 0xc23   :  { %v1858_v24 = vpop.xlane.xlu1 %1857 }
 0xc24   :  { %v1862_v28 = vmul.f32 0.0625, %v1858_v24 }
 0xc26   :  { %v1864_v59 = vadd.f32 0.0001, %v1862_v28 }
 0xc28   :  { %4438 = vrsqrt.f32 %v1864_v59 }
 0xc32   :  { %v4439_v42 = vpop.eup %4438 }
 0xc33   :  { %v4153_v25 = vpop.f32.mrb[20].mxu1  ;;  %v1868_v43 = vmul.f32 %v4439_v42, %v1852_v15 }
 0xc34   :  { %v2021_v26 = vpop.f32.mrb[21].mxu1  ;;  %v2051_v30 = vmul.f32 %v4153_v25, %v4153_v25 }
 0xc35   :  { %4174 = vmatprep.mubr.msk.f32.mxu1 %vm166_vm5, %v2021_v26  ;;  %v2050_v33 = vmul.f32 %v2021_v26, %v2021_v26  ;;  %v1874_v51 = vmul.f32 %v3815_v47, %v1868_v43 }
 0xc36   :  { %4175 = vmatmul.mubr.msk.f32.vlgmr.msra.gmra.mrb[26].mxu1 %vm166_vm5, %v4153_v25 }
 0xc37   :  { %v4156_v29 = vpop.f32.mrb[22].mxu1  ;;  %v4882_v9 = vadd.f32 %v3816_v5, %v1874_v51 }
 0xc38   :  { %v2053_v31 = vmul.f32 %v4156_v29, %v4156_v29  ;;  %v2031_v32 = vpop.f32.mrb[23].mxu1 }
 0xc39   :  { %v2052_v61 = vmul.f32 %v2031_v32, %v2031_v32  ;;  %4177 = vmatprep.mubr.msk.f32.mxu1 %vm166_vm5, %v2031_v32 }
 0xc3a   :  { %v2055_v34 = vadd.f32 %v2053_v31, %v2051_v30  ;;  %4178 = vmatmul.mubr.msk.f32.gmra.mrb[28].mxu1 %vm166_vm5, %v4156_v29 }
 0xc3b   :  { %v2054_v56 = vadd.f32 %v2052_v61, %v2050_v33  ;;  %v4159_v58 = vpop.f32.mrb[24].mxu1 }
 0xc3c   :  { %v2057_v35 = vmul.f32 %v4159_v58, %v4159_v58  ;;  %v2041_v36 = vpop.f32.mrb[25].mxu1 }
 0xc3d   :  { %v2056_v37 = vmul.f32 %v2041_v36, %v2041_v36  ;;  %4180 = vmatprep.mubr.msk.f32.mxu1 %vm166_vm5, %v2041_v36 }
 0xc3e   :  { %v2059_v38 = vadd.f32 %v2057_v35, %v2055_v34  ;;  %4181 = vmatmul.mubr.msk.f32.gmra.mrb[30].mxu1 %vm166_vm5, %v4159_v58  ;;  %v3834_v58 = vld [vmem:[%s5191_s1 + $0x148] ss:$0 sm:$0xff] }
 0xc3f   :  { %v2058_v39 = vadd.f32 %v2056_v37, %v2054_v56  ;;  %v2482_v56 = vld [vmem:[%s5191_s1 + $0x150] sm:$0xff] }
 0xc40   :  { %v2061_v16 = vmax.f32 %v2059_v38, 1e-08 }
 0xc41   :  { %v2060_v41 = vmax.f32 %v2058_v39, 1e-08 }
 0xc42   :  { %4440 = vrsqrt.f32 %v2061_v16  ;;  %vm2071_vm13 = vcmp.eq.f32.partialorder %v2061_v16, inf  ;;  %v2074_v63 = vand.u32 2147483648, %v2061_v16  ;;  %vm2073_vm0 = vcmp.eq.f32.partialorder %v2061_v16, 0.0 }
 0xc43   :  { %4442 = vrsqrt.f32 %v2060_v41  ;;  %vm2064_vm14 = vcmp.eq.f32.partialorder %v2060_v41, inf  ;;  %v2067_v54 = vand.u32 2147483648, %v2060_v41  ;;  %vm2066_vm15 = vcmp.eq.f32.partialorder %v2060_v41, 0.0 }
 0xc44   :  { %4444 = vrsqrt.f32 %v1865_v40 }
 0xc4c   :  { %v4441_v44 = vpop.eup %4440 }
 0xc4d   :  { %v4443_v45 = vpop.eup %4442  ;;  %v2070_v46 = vmul.f32 %v4441_v44, %v2061_v16 }
 0xc4e   :  { %v4445_v14 = vpop.eup %4444  ;;  %v2063_v50 = vmul.f32 %v4443_v45, %v2060_v41 }
 0xc4f   :  { %v2072_v55 = vsel %vm2071_vm13, %v2061_v16, %v2070_v46  ;;  %v1869_v0 = vmul.f32 %v4445_v14, %v4850_v49  ;;  %v2374_v49 = vld [vmem:[%s5191_s1 + $0x138] sm:$0xff]  ;;  %vm4514_vm13 = vmmov 1  }
 0xc50   :  { %v2065_v62 = vsel %vm2064_vm14, %v2060_v41, %v2063_v50  ;;  %v2075_v53 = vsel %vm2073_vm0, %v2074_v63, %v2072_v55  ;;  %v4291_v13 = vpack.c.bf16 %v2375_v12, %v2374_v49  ;;  %v2624_v63 = vld [vmem:[%s5191_s1 + $0x170] sm:$0xff]  ;;  %vm4316_vm14 = vmpackc.low %vm259_vm2, %vm4514_vm13  ;;  %vm3247_vm2 = vcmask 261120  }
 0xc51   :  { %v2068_v1 = vsel %vm2066_vm15, %v2067_v54, %v2065_v62  ;;  %v1875_v48 = vmul.f32 %v3815_v47, %v1869_v0  ;;  %v2794_v62 = vld [vmem:[%s5191_s1 + $0x158] sm:$0xff]  ;;  %4201 = vmatprep.subr.mxu1 %v2624_v63  ;;  %v2622_v0 = vld [vmem:[%s5191_s1 + $0x160] sm:$0xff]  ;;  %vm3589_vm15 = vcmask 121856   ;;  %vm3244_vm0 = vcmask 195584  }
 0xc52   :  { %4162 = vmatprep.mubr.msk.f32.mxu0 %vm166_vm5, %v2068_v1  ;;  %4202 = vmatpush3.msra.mxu1 %v2624_v63  ;;  %v2623_v1 = vld [vmem:[%s5191_s1 + $0x168] sm:$0xff] }
 0xc53   :  { %4163 = vmatmul.mubr.msk.f32.vlgmr.msra.gmra.mrb[30].mxu0 %vm166_vm5, %v2075_v53  ;;  %v4887_v11 = vadd.f32 %v3816_v5, %v1875_v48  ;;  %v4295_v5 = vpack.c.bf16 %v2623_v1, %v2622_v0  ;;  %v4935_v53 = vld [vmem:[%s5190_s0] sm:$0xff]  ;;  %v4941_v48 = vld [vmem:[%s5190_s0 + $0x10] sm:$0xff] }
 0xc54   :  { %4290 = vmatpush3.bf16.msra.mxu0 %v4287_v23  ;;  %4169 = vmatprep.mubr.msk.f32.mxu0 %vm466_vm9, %v4882_v9 }
 0xc55   :  { %4292 = vmatprep.subr.bf16.mxu0 %v4291_v13  ;;  %4296 = vmatprep.subr.bf16.mxu1 %v4295_v5 }
 0xc56   :  { %3258 = vrot.lane.b32.xlu1 %v4935_v53, %s4503_s10  ;;  %3260 = vrot.lane.b32.xlu0 %v4941_v48, %s4503_s10 }
 0xc5b   :  { %4170 = vmatmul.mubr.msk.f32.vlgmr.msra.gmra.mrb[30].mxu0 %vm466_vm9, %v4887_v11 }
 0xc5c   :  { %4294 = vmatpush3.bf16.msra.mxu0 %v4291_v13 }
 0xc5d   :  { %4190 = vmatprep.subr.mxu0 %v2482_v56 }
 0xcc8   :  { %v3259_v63 = vpop.permute.xlu1 %3258  ;;  %v3261_v1 = vpop.permute.xlu0 %3260 }
 0xd09   :  { %v4176_v15 = vpop.f32.mrb[26].mxu1 }
 0xd0a   :  { %v2333_v17 = vpop.f32.mrb[27].mxu1 }
 0xd0d   :  { %v4179_v18 = vpop.f32.mrb[28].mxu1 }
 0xd0e   :  { %v2343_v19 = vpop.f32.mrb[29].mxu1 }
 0xd11   :  { %v4182_v20 = vpop.f32.mrb[30].mxu1 }
 0xd12   :  { %v2353_v21 = vpop.f32.mrb[31].mxu1 }
 0xd2e   :  { %v4171_v23 = vpop.f32.mrb[30].mxu0 }
 0xd2f   :  { %v4900_v24 = vadd.f32 %v4171_v23, %v3827_v22  ;;  %v2232_v25 = vpop.f32.mrb[31].mxu0 }
 0xd30   :  { %v4902_v26 = vadd.f32 %v3827_v22, %v2232_v25 }
 0xd31   :  { %v2363_v28 = vsub.f32 0.0, %v4900_v24 }
 0xd32   :  { %v2362_v29 = vsub.f32 0.0, %v4902_v26 }
 0xd33   :  { %v2366_v30 = vmul.f32 1.442695, %v2363_v28 }
 0xd34   :  { %v2364_v31 = vmul.f32 1.442695, %v2362_v29 }
 0xd35   :  { %4446 = vpow2.f32 %v2366_v30 }
 0xd36   :  { %4448 = vpow2.f32 %v2364_v31 }
 0xd3f   :  { %v4447_v32 = vpop.eup %4446 }
 0xd40   :  { %v4449_v4 = vpop.eup %4448  ;;  %v2369_v59 = vadd.f32 1.0, %v4447_v32 }
 0xd41   :  { %v2368_v33 = vadd.f32 1.0, %v4449_v4 }
 0xd43   :  { %4450 = vrcp.f32 %v2368_v33 }
 0xd44   :  { %4452 = vrcp.f32 %v2369_v59 }
 0xd4d   :  { %v4451_v61 = vpop.eup %4450 }
 0xd4e   :  { %v4453_v34 = vpop.eup %4452  ;;  %4187 = vmatprep.mubr.msk.f32.mxu0 %vm466_vm9, %v4451_v61 }
 0xd4f   :  { %4188 = vmatmul.mubr.msk.f32.vlgmr.msra.gmra.mrb[32].mxu0 %vm466_vm9, %v4453_v34 }
 0xd50   :  { %4191 = vmatpush3.msra.mxu0 %v2482_v56 }
 0xd51   :  { %4213 = vmatprep.subr.mxu0 %v2794_v62 }
 0xe22   :  { %v4189_v60 = vpop.f32.mrb[32].mxu0 }
 0xe23   :  { %v2459_v35 = vadd.f32 %v4189_v60, %v3834_v58  ;;  %v2453_v36 = vpop.f32.mrb[33].mxu0 }
 0xe24   :  { %v2454_v37 = vadd.f32 %v3834_v58, %v2453_v36 }
 0xe25   :  { %v2463_v38 = vsub.f32 0.0, %v2459_v35 }
 0xe26   :  { %v2462_v39 = vsub.f32 0.0, %v2454_v37  ;;  %v2480_v37 = vmax.f32 %v4902_v26, 0.0  ;;  %v2909_v26 = vld [vmem:[%s5191_s1 + $0x188] sm:$0xff] }
 0xe27   :  { %v2466_v40 = vmul.f32 1.442695, %v2463_v38 }
 0xe28   :  { %v2464_v16 = vmul.f32 1.442695, %v2462_v39  ;;  %v2481_v39 = vmax.f32 %v4900_v24, 0.0 }
 0xe29   :  { %4454 = vpow2.f32 %v2466_v40  ;;  %v2908_v40 = vld [vmem:[%s5191_s1 + $0x180] sm:$0xff] }
 0xe2a   :  { %4456 = vpow2.f32 %v2464_v16  ;;  %v4299_v16 = vpack.c.bf16 %v2909_v26, %v2908_v40 }
 0xe33   :  { %v4455_v41 = vpop.eup %4454 }
 0xe34   :  { %v4457_v42 = vpop.eup %4456  ;;  %v2469_v43 = vadd.f32 1.0, %v4455_v41  ;;  %v3252_v41 = vld [vmem:[%s5191_s1 + $0x1a8] sm:$0x3f] }
 0xe35   :  { %v2468_v44 = vadd.f32 1.0, %v4457_v42 }
 0xe36   :  { %4458 = vrcp.f32 %v2469_v43 }
 0xe37   :  { %4460 = vrcp.f32 %v2468_v44 }
 0xe40   :  { %v4459_v45 = vpop.eup %4458 }
 0xe41   :  { %v4461_v46 = vpop.eup %4460  ;;  %v2475_v47 = vmul.f32 %v4459_v45, %v4176_v15  ;;  %v2477_v14 = vmul.f32 %v4459_v45, %v4179_v18  ;;  %v2479_v50 = vmul.f32 %v4459_v45, %v4182_v20 }
 0xe42   :  { %v2474_v51 = vmul.f32 %v4461_v46, %v2333_v17  ;;  %v2476_v54 = vmul.f32 %v4461_v46, %v2343_v19  ;;  %v2478_v55 = vmul.f32 %v4461_v46, %v2353_v21 }
 0xe44   :  { %4192 = vmatprep.mubr.msk.f32.mxu0 %vm166_vm5, %v2474_v51  ;;  %v3497_v51 = vld [vmem:[%s5191_s1 + $0x200] sm:$0xff] }
 0xe45   :  { %4193 = vmatmul.mubr.msk.f32.vlgmr.msra.gmra.mrb[34].mxu0 %vm166_vm5, %v2475_v47  ;;  %v3847_v47 = vld [vmem:[%s5191_s1 + $0x178] ss:$0 sm:$0xff] }
 0xe46   :  { %4195 = vmatprep.mubr.msk.f32.mxu0 %vm166_vm5, %v2476_v54  ;;  %4214 = vmatpush3.msra.mxu0 %v2794_v62 }
 0xe49   :  { %4196 = vmatmul.mubr.msk.f32.gmra.mrb[36].mxu0 %vm166_vm5, %v2477_v14 }
 0xe4a   :  { %4198 = vmatprep.mubr.msk.f32.mxu0 %vm166_vm5, %v2478_v55 }
 0xe4d   :  { %4199 = vmatmul.mubr.msk.f32.gmra.mrb[38].mxu0 %vm166_vm5, %v2479_v50  ;;  %v3496_v50 = vld [vmem:[%s5191_s1 + $0x1f8] sm:$0xff] }
 0xe4e   :  { %v4311_v0 = vpack.c.bf16 %v3497_v51, %v3496_v50  ;;  %v4510_v50 = vmov 102   ;;  %v4511_v51 = vmov 101  }
 0xf18   :  { %v4194_v49 = vpop.f32.mrb[34].mxu0 }
 0xf19   :  { %v2567_v12 = vpop.f32.mrb[35].mxu0  ;;  %v2597_v15 = vmul.f32 %v4194_v49, %v4194_v49 }
 0xf1a   :  { %4215 = vmatprep.mubr.msk.f32.mxu0 %vm166_vm5, %v2567_v12  ;;  %v2596_v19 = vmul.f32 %v2567_v12, %v2567_v12 }
 0xf1b   :  { %4216 = vmatmul.mubr.msk.f32.vlgmr.msra.gmra.mrb[40].mxu0 %vm166_vm5, %v4194_v49  ;;  %v3854_v49 = vld [vmem:[%s5191_s1 + $0x190] ss:$0 sm:$0xff] }
 0xf1c   :  { %v4197_v13 = vpop.f32.mrb[36].mxu0 }
 0xf1d   :  { %v2599_v17 = vmul.f32 %v4197_v13, %v4197_v13  ;;  %v2577_v18 = vpop.f32.mrb[37].mxu0 }
 0xf1e   :  { %v2598_v20 = vmul.f32 %v2577_v18, %v2577_v18  ;;  %4218 = vmatprep.mubr.msk.f32.mxu0 %vm166_vm5, %v2577_v18 }
 0xf1f   :  { %v2601_v21 = vadd.f32 %v2599_v17, %v2597_v15  ;;  %4219 = vmatmul.mubr.msk.f32.gmra.mrb[42].mxu0 %vm166_vm5, %v4197_v13 }
 0xf20   :  { %v2600_v22 = vadd.f32 %v2598_v20, %v2596_v19  ;;  %v4200_v23 = vpop.f32.mrb[38].mxu0 }
 0xf21   :  { %v2603_v25 = vmul.f32 %v4200_v23, %v4200_v23  ;;  %v2587_v28 = vpop.f32.mrb[39].mxu0 }
 0xf22   :  { %v2602_v29 = vmul.f32 %v2587_v28, %v2587_v28  ;;  %4221 = vmatprep.mubr.msk.f32.mxu0 %vm166_vm5, %v2587_v28 }
 0xf23   :  { %v2605_v30 = vadd.f32 %v2603_v25, %v2601_v21  ;;  %4222 = vmatmul.mubr.msk.f32.gmra.mrb[44].mxu0 %vm166_vm5, %v4200_v23 }
 0xf24   :  { %v2604_v31 = vadd.f32 %v2602_v29, %v2600_v22 }
 0xf25   :  { %v2607_v32 = vmax.f32 %v2605_v30, 1e-08 }
 0xf26   :  { %v2606_v4 = vmax.f32 %v2604_v31, 1e-08 }
 0xf27   :  { %4462 = vrsqrt.f32 %v2607_v32  ;;  %vm2617_vm1 = vcmp.eq.f32.partialorder %v2607_v32, inf  ;;  %v2620_v35 = vand.u32 2147483648, %v2607_v32  ;;  %vm2619_vm6 = vcmp.eq.f32.partialorder %v2607_v32, 0.0 }
 0xf28   :  { %4464 = vrsqrt.f32 %v2606_v4  ;;  %vm2610_vm3 = vcmp.eq.f32.partialorder %v2606_v4, inf  ;;  %v2613_v56 = vand.u32 2147483648, %v2606_v4  ;;  %vm2612_vm4 = vcmp.eq.f32.partialorder %v2606_v4, 0.0 }
 0xf31   :  { %v4463_v59 = vpop.eup %4462 }
 0xf32   :  { %v4465_v33 = vpop.eup %4464  ;;  %v2616_v61 = vmul.f32 %v4463_v59, %v2607_v32 }
 0xf33   :  { %v2609_v34 = vmul.f32 %v4465_v33, %v2606_v4 }
 0xf34   :  { %v2618_v58 = vsel %vm2617_vm1, %v2607_v32, %v2616_v61  ;;  %vm3414_vm1 = vcmask 326656  }
 0xf35   :  { %v2611_v60 = vsel %vm2610_vm3, %v2606_v4, %v2609_v34  ;;  %v2621_v38 = vsel %vm2619_vm6, %v2620_v35, %v2618_v58 }
 0xf36   :  { %v2614_v36 = vsel %vm2612_vm4, %v2613_v56, %v2611_v60 }
 0xf37   :  { %4203 = vmatprep.mubr.msk.f32.mxu1 %vm166_vm5, %v2614_v36 }
 0xf38   :  { %4204 = vmatmul.mubr.msk.f32.vlgmr.msra.gmra.mrb[32].mxu1 %vm166_vm5, %v2621_v38 }
 0xf39   :  { %4298 = vmatpush3.bf16.msra.mxu1 %v4295_v5  ;;  %4210 = vmatprep.mubr.msk.f32.mxu1 %vm466_vm9, %v2480_v37  ;;  %v4504_v5 = vmov 96  }
 0xf3a   :  { %4300 = vmatprep.subr.bf16.mxu1 %v4299_v16  ;;  %4354 = vset.pattern.permute.xlu1 %v4504_v5 }
 0xf3b   :  { %4356 = vset.pattern.permute.xlu0 %v4504_v5 }
 0xf40   :  { %4211 = vmatmul.mubr.msk.f32.vlgmr.msra.gmra.mrb[32].mxu1 %vm466_vm9, %v2481_v39 }
 0xf41   :  { %4302 = vmatpush3.bf16.msra.mxu1 %v4299_v16 }
 0xf42   :  { %4231 = vmatprep.subr.msk.mxu1 %vm3267_vm7, %v3252_v41 }
 0xfee   :  { %v4217_v24 = vpop.f32.mrb[40].mxu0 }
 0xfef   :  { %v2879_v42 = vpop.f32.mrb[41].mxu0 }
 0xff2   :  { %v4220_v43 = vpop.f32.mrb[42].mxu0 }
 0xff3   :  { %v2889_v44 = vpop.f32.mrb[43].mxu0 }
 0xff6   :  { %v4223_v45 = vpop.f32.mrb[44].mxu0 }
 0xff7   :  { %v2899_v46 = vpop.f32.mrb[45].mxu0 }
0x1013   :  { %v4212_v14 = vpop.f32.mrb[32].mxu1 }
0x1014   :  { %v2778_v54 = vpop.f32.mrb[33].mxu1  ;;  %v4977_v62 = vadd.f32 %v4212_v14, %v3847_v47  ;;  %v4509_v14 = vmov 98  }
0x1015   :  { %v4975_v55 = vadd.f32 %v3847_v47, %v2778_v54  ;;  %v4508_v47 = vmov 103  }
0x1017   :  { %4228 = vmatprep.mubr.msk.f32.mxu1 %vm466_vm9, %v4975_v55 }
0x1018   :  { %4229 = vmatmul.mubr.msk.f32.vlgmr.msra.gmra.mrb[34].mxu1 %vm466_vm9, %v4977_v62 }
0x1019   :  { %4232 = vmatpush3.msk.msra.mxu1 %vm3267_vm7, %v3252_v41  ;;  %4233 = vmatprep.mubr.msk.f32.mxu1 %vm3262_vm8, %v3259_v63  ;;  %vm3732_vm7 = vcmask 523264  }
0x101a   :  { %4312 = vmatprep.subr.bf16.mxu1 %v4311_v0 }
0x101c   :  { %4234 = vmatmul.mubr.msk.f32.vlgmr.msra.gmra.mrb[36].mxu1 %vm3262_vm8, %v3261_v1  ;;  %vm3735_vm8 = vcmask 785408  }
0x101d   :  { %4314 = vmatpush3.bf16.msra.mxu1 %v4311_v0  ;;  %4253 = vmatprep.mubr.msk.f32.mxu1 %vm466_vm9, %v4647_v3 }
0x1020   :  { %4254 = vmatmul.mubr.msk.f32.vlgmr.msra.gmra.mrb[38].mxu1 %vm466_vm9, %v4654_v57 }
0x10eb   :  { %v4230_v12 = vpop.f32.mrb[34].mxu1 }
0x10ec   :  { %v2993_v13 = vadd.f32 %v4230_v12, %v3854_v49  ;;  %v2987_v15 = vpop.f32.mrb[35].mxu1 }
0x10ed   :  { %v2988_v17 = vadd.f32 %v3854_v49, %v2987_v15 }
0x10ee   :  { %v2997_v18 = vsub.f32 0.0, %v2993_v13 }
0x10ef   :  { %v2996_v19 = vsub.f32 0.0, %v2988_v17  ;;  %v4991_v20 = vpop.f32.mrb[36].mxu1 }
0x10f0   :  { %v3000_v21 = vmul.f32 1.442695, %v2997_v18  ;;  %v4993_v3 = vpop.f32.mrb[37].mxu1 }
0x10f1   :  { %v2998_v22 = vmul.f32 1.442695, %v2996_v19 }
0x10f2   :  { %4466 = vpow2.f32 %v3000_v21 }
0x10f3   :  { %4468 = vpow2.f32 %v2998_v22  ;;  %v4995_v57 = vpop.f32.mrb[38].mxu1 }
0x10f4   :  { %v4997_v23 = vpop.f32.mrb[39].mxu1 }
0x10fc   :  { %v4467_v25 = vpop.eup %4466 }
0x10fd   :  { %v4469_v28 = vpop.eup %4468  ;;  %v3003_v29 = vadd.f32 1.0, %v4467_v25 }
0x10fe   :  { %v3002_v30 = vadd.f32 1.0, %v4469_v28  ;;  %v4512_v28 = vmov 104  }
0x10ff   :  { %4470 = vrcp.f32 %v3003_v29 }
0x1100   :  { %4472 = vrcp.f32 %v3002_v30 }
0x1109   :  { %v4471_v31 = vpop.eup %4470 }
0x110a   :  { %v4473_v32 = vpop.eup %4472  ;;  %v3009_v4 = vmul.f32 %v4471_v31, %v4217_v24  ;;  %v3011_v59 = vmul.f32 %v4471_v31, %v4220_v43  ;;  %v3013_v33 = vmul.f32 %v4471_v31, %v4223_v45  ;;  %v5032_v24 = vadd.f32 %v4977_v62, %v4887_v11 }
0x110b   :  { %v3008_v61 = vmul.f32 %v4473_v32, %v2879_v42  ;;  %v3010_v34 = vmul.f32 %v4473_v32, %v2889_v44  ;;  %v3012_v56 = vmul.f32 %v4473_v32, %v2899_v46  ;;  %v5037_v43 = vadd.f32 %v4975_v55, %v4882_v9 }
0x110c   :  { %v5000_v58 = vadd.f32 %v3009_v4, %v4826_v7  ;;  %v5003_v60 = vadd.f32 %v3011_v59, %v4837_v6  ;;  %v5006_v35 = vadd.f32 %v3013_v33, %v4846_v52  ;;  %v3027_v44 = vsel %vm466_vm9, %v5032_v24, 0.0 }
0x110d   :  { %v5009_v36 = vadd.f32 %v3008_v61, %v4824_v2  ;;  %v5012_v37 = vadd.f32 %v3010_v34, %v4828_v8  ;;  %v5015_v38 = vadd.f32 %v3012_v56, %v4839_v10  ;;  %v3024_v45 = vsel %vm466_vm9, %v5037_v43, 0.0 }
0x110e   :  { %v3063_v39 = vmul.f32 %v5000_v58, %v5000_v58  ;;  %v3065_v7 = vmul.f32 %v5003_v60, %v5003_v60  ;;  %v3069_v8 = vmul.f32 %v5006_v35, %v5006_v35  ;;  %v4505_v11 = vmov 97  }
0x110f   :  { %v3062_v6 = vmul.f32 %v5009_v36, %v5009_v36  ;;  %v3064_v52 = vmul.f32 %v5012_v37, %v5012_v37  ;;  %v3068_v10 = vmul.f32 %v5015_v38, %v5015_v38  ;;  %v4506_v46 = vmov 100  }
0x1110   :  { %v3067_v2 = vadd.f32 %v3065_v7, %v3063_v39  ;;  %v4507_v9 = vmov 99  }
0x1111   :  { %v3066_v40 = vadd.f32 %v3064_v52, %v3062_v6 }
0x1112   :  { %v3071_v26 = vadd.f32 %v3069_v8, %v3067_v2 }
0x1113   :  { %v3070_v16 = vadd.f32 %v3068_v10, %v3066_v40 }
0x1114   :  { %v3075_v41 = vsel %vm166_vm5, %v3071_v26, 0.0 }
0x1115   :  { %3076 = vadd.xlane.f32.xlu0 %v3075_v41  ;;  %v3072_v42 = vsel %vm166_vm5, %v3070_v16, 0.0 }
0x1116   :  { %3073 = vadd.xlane.f32.xlu1 %v3072_v42 }
0x1119   :  { %3028 = vadd.xlane.f32.xlu0 %v3027_v44 }
0x111a   :  { %3025 = vadd.xlane.f32.xlu1 %v3024_v45  ;;  %v3404_v45 = vld [vmem:[%s5191_s1 + $0x1c8] sm:$0xff] }
0x112b   :  { %3117 = vperm.xlu1 %4354, %v4935_v53  }
0x112f   :  { %4355 = vset.pattern.permute.xlu1 %v4505_v11  ;;  %3121 = vperm.xlu0 %4356, %v4941_v48   ;;  %v3405_v11 = vld [vmem:[%s5191_s1 + $0x1d0] sm:$0xff] }
0x1130   :  { %3127 = vperm.xlu1 %4355, %v4935_v53  }
0x1133   :  { %4358 = vset.pattern.permute.xlu0 %v4506_v46 }
0x1134   :  { %3131 = vperm.xlu1 %4355, %v4941_v48   ;;  %3161 = vperm.xlu0 %4358, %v4935_v53  }
0x1138   :  { %4357 = vset.pattern.permute.xlu1 %v4507_v9  ;;  %3165 = vperm.xlu0 %4358, %v4941_v48  }
0x1139   :  { %3151 = vperm.xlu1 %4357, %v4935_v53  }
0x113c   :  { %4362 = vset.pattern.permute.xlu0 %v4508_v47 }
0x113d   :  { %4359 = vset.pattern.permute.xlu1 %v4509_v14  ;;  %3195 = vperm.xlu0 %4362, %v4935_v53  }
0x113e   :  { %3139 = vperm.xlu1 %4359, %v4935_v53  }
0x1141   :  { %4365 = vset.pattern.permute.xlu0 %v4510_v50 }
0x1142   :  { %4360 = vset.pattern.permute.xlu1 %v4507_v9  ;;  %3189 = vperm.xlu0 %4365, %v4941_v48   ;;  %v4303_v9 = vpack.c.bf16 %v3405_v11, %v3404_v45  ;;  %v4517_v45 = vmov 24  }
0x1143   :  { %3155 = vperm.xlu1 %4360, %v4941_v48  }
0x1144   :  { %4304 = vmatprep.subr.bf16.mxu0 %v4303_v9 }
0x1145   :  { %4306 = vmatpush3.bf16.msra.mxu0 %v4303_v9 }
0x1146   :  { %4367 = vset.pattern.permute.xlu0 %v4501_v27 }
0x1147   :  { %4361 = vset.pattern.permute.xlu1 %v4510_v50 }
0x1148   :  { %3185 = vperm.xlu1 %4361, %v4935_v53  }
0x114c   :  { %4363 = vset.pattern.permute.xlu1 %v4509_v14 }
0x114d   :  { %3143 = vperm.xlu1 %4363, %v4941_v48  }
0x1151   :  { %4364 = vset.pattern.permute.xlu1 %v4511_v51 }
0x1152   :  { %3173 = vperm.xlu1 %4364, %v4935_v53  }
0x1156   :  { %4366 = vset.pattern.permute.xlu1 %v4508_v47 }
0x1157   :  { %3199 = vperm.xlu1 %4366, %v4941_v48  }
0x115b   :  { %4368 = vset.pattern.permute.xlu1 %v4501_v27 }
0x11a2   :  { %v3077_v54 = vpop.xlane.xlu0 %3076 }
0x11a3   :  { %v3079_v55 = vmul.f32 0.125, %v3077_v54  ;;  %v3074_v62 = vpop.xlane.xlu1 %3073 }
0x11a4   :  { %v3078_v63 = vmul.f32 0.125, %v3074_v62 }
0x11a5   :  { %v3081_v0 = vadd.f32 0.0001, %v3079_v55 }
0x11a6   :  { %v3080_v1 = vadd.f32 0.0001, %v3078_v63  ;;  %v3029_v29 = vpop.xlane.xlu0 %3028 }
0x11a7   :  { %4474 = vrsqrt.f32 %v3081_v0  ;;  %vm3091_vm5 = vcmp.eq.f32.partialorder %v3081_v0, inf  ;;  %v3094_v13 = vand.u32 2147483648, %v3081_v0  ;;  %vm3093_vm10 = vcmp.eq.f32.partialorder %v3081_v0, 0.0  ;;  %v3026_v32 = vpop.xlane.xlu1 %3025 }
0x11a8   :  { %4476 = vrsqrt.f32 %v3080_v1  ;;  %vm3084_vm11 = vcmp.eq.f32.partialorder %v3080_v1, inf  ;;  %v3087_v18 = vand.u32 2147483648, %v3080_v1  ;;  %vm3086_vm12 = vcmp.eq.f32.partialorder %v3080_v1, 0.0 }
0x11a9   :  { %v3031_v30 = vmul.f32 0.0625, %v3029_v29  ;;  %v3030_v59 = vmul.f32 0.0625, %v3026_v32 }
0x11ab   :  { %v5064_v31 = vsub.f32 %v5032_v24, %v3031_v30  ;;  %v5070_v61 = vsub.f32 %v5037_v43, %v3030_v59  ;;  %v3118_v39 = vpop.permute.xlu1 %3117 }
0x11ad   :  { %v3035_v4 = vmul.f32 %v5064_v31, %v5064_v31  ;;  %v3034_v34 = vmul.f32 %v5070_v61, %v5070_v61 }
0x11ae   :  { %v3122_v40 = vpop.permute.xlu0 %3121 }
0x11af   :  { %v3039_v33 = vsel %vm466_vm9, %v3035_v4, 0.0  ;;  %v3036_v56 = vsel %vm466_vm9, %v3034_v34, 0.0  ;;  %v3128_v7 = vpop.permute.xlu1 %3127  ;;  %v3408_v4 = vld [vmem:[%s5191_s1 + $0x1e8] sm:$0xff] }
0x11b1   :  { %v4475_v5 = vpop.eup %4474 }
0x11b2   :  { %v4477_v49 = vpop.eup %4476  ;;  %v3090_v12 = vmul.f32 %v4475_v5, %v3081_v0 }
0x11b3   :  { %v3083_v15 = vmul.f32 %v4477_v49, %v3080_v1  ;;  %v3132_v6 = vpop.permute.xlu1 %3131  ;;  %v3162_v26 = vpop.permute.xlu0 %3161 }
0x11b4   :  { %v3092_v17 = vsel %vm3091_vm5, %v3081_v0, %v3090_v12 }
0x11b5   :  { %v3095_v19 = vsel %vm3093_vm10, %v3094_v13, %v3092_v17  ;;  %v3085_v27 = vsel %vm3084_vm11, %v3080_v1, %v3083_v15 }
0x11b6   :  { %4478 = vrcp.f32 %v3095_v19  ;;  %v3088_v21 = vsel %vm3086_vm12, %v3087_v18, %v3085_v27 }
0x11b7   :  { %4480 = vrcp.f32 %v3088_v21  ;;  %v3166_v41 = vpop.permute.xlu0 %3165 }
0x11b8   :  { %v3152_v52 = vpop.permute.xlu1 %3151 }
0x11bc   :  { %v3196_v24 = vpop.permute.xlu0 %3195 }
0x11bd   :  { %v5075_v2 = vpop.permute.xlu1 %3139 }
0x11c0   :  { %v4479_v22 = vpop.eup %4478 }
0x11c1   :  { %v4481_v25 = vpop.eup %4480  ;;  %3107 = vperm.xlu0 %4367, %v4479_v22   ;;  %v3190_v43 = vpop.permute.xlu0 %3189 }
0x11c2   :  { %3102 = vperm.xlu1 %4368, %v4481_v25   ;;  %v3156_v8 = vpop.permute.xlu1 %3155 }
0x11c5   :  { %4370 = vset.pattern.permute.xlu0 %v4512_v28 }
0x11c6   :  { %3207 = vperm.xlu0 %4370, %v4935_v53   ;;  %4369 = vset.pattern.permute.xlu1 %v4511_v51 }
0x11c7   :  { %3177 = vperm.xlu1 %4369, %v4941_v48   ;;  %v3186_v10 = vpop.permute.xlu1 %3185 }
0x11ca   :  { %4372 = vset.pattern.permute.xlu0 %v4517_v45 }
0x11cb   :  { %4371 = vset.pattern.permute.xlu1 %v4512_v28 }
0x11cc   :  { %3211 = vperm.xlu1 %4371, %v4941_v48   ;;  %v3144_v16 = vpop.permute.xlu1 %3143 }
0x11d0   :  { %4373 = vset.pattern.permute.xlu1 %v4517_v45 }
0x11d1   :  { %v3174_v42 = vpop.permute.xlu1 %3173 }
0x11d6   :  { %v3200_v44 = vpop.permute.xlu1 %3199 }
0x11e5   :  { %3040 = vadd.xlane.f32.xlu0 %v3039_v33 }
0x11f0   :  { %3037 = vadd.xlane.f32.xlu1 %v3036_v56 }
0x1240   :  { %v3108_v46 = vpop.permute.xlu0 %3107 }
0x1241   :  { %v3111_v47 = vmul.f32 %v3108_v46, %v5000_v58  ;;  %v3113_v14 = vmul.f32 %v3108_v46, %v5003_v60  ;;  %v3115_v50 = vmul.f32 %v3108_v46, %v5006_v35  ;;  %v3103_v51 = vpop.permute.xlu1 %3102  ;;  %v3406_v35 = vld [vmem:[%s5191_s1 + $0x1d8] sm:$0xff] }
0x1242   :  { %v3110_v54 = vmul.f32 %v3103_v51, %v5009_v36  ;;  %v3112_v55 = vmul.f32 %v3103_v51, %v5012_v37  ;;  %v3114_v5 = vmul.f32 %v3103_v51, %v5015_v38  ;;  %v3407_v36 = vld [vmem:[%s5191_s1 + $0x1e0] sm:$0xff] }
0x1243   :  { %v3159_v62 = vmul.f32 %v3156_v8, %v3111_v47  ;;  %v3169_v63 = vmul.f32 %v3166_v41, %v3113_v14  ;;  %v3125_v0 = vmul.f32 %v3122_v40, %v3111_v47  ;;  %v3135_v1 = vmul.f32 %v3132_v6, %v3113_v14  ;;  %v3578_v6 = vld [vmem:[%s5191_s1 + $0x210] sm:$0xff] }
0x1244   :  { %v3147_v12 = vmul.f32 %v3144_v16, %v3115_v50  ;;  %v3158_v58 = vmul.f32 %v3152_v52, %v3110_v54  ;;  %v3192_v13 = vmul.f32 %v3186_v10, %v3110_v54  ;;  %v3168_v15 = vmul.f32 %v3162_v26, %v3112_v55 }
0x1245   :  { %v3137_v49 = vadd.f32 %v3135_v1, %v3125_v0  ;;  %v3202_v37 = vmul.f32 %v3196_v24, %v3112_v55  ;;  %v3171_v17 = vadd.f32 %v3169_v63, %v3159_v62  ;;  %v3208_v27 = vpop.permute.xlu0 %3207  ;;  %v3193_v38 = vmul.f32 %v3190_v43, %v3111_v47  ;;  %v3859_v24 = vld [vmem:[%s5191_s1 + $0x1b0] ss:$0 sm:$0xff] }
0x1246   :  { %v3178_v60 = vpop.permute.xlu1 %3177  ;;  %v3203_v21 = vmul.f32 %v3200_v44, %v3113_v14  ;;  %v3170_v22 = vadd.f32 %v3168_v15, %v3158_v58  ;;  %v3180_v28 = vmul.f32 %v3174_v42, %v3114_v5  ;;  %v4307_v29 = vpack.c.bf16 %v3407_v36, %v3406_v35 }
0x1247   :  { %v3181_v18 = vmul.f32 %v3178_v60, %v3115_v50  ;;  %v3149_v19 = vadd.f32 %v3147_v12, %v3137_v49  ;;  %v3124_v30 = vmul.f32 %v3118_v39, %v3110_v54  ;;  %v3134_v32 = vmul.f32 %v3128_v7, %v3112_v55  ;;  %v3579_v39 = vld [vmem:[%s5191_s1 + $0x218] sm:$0x7f] }
0x1248   :  { %v3204_v59 = vadd.f32 %v3202_v37, %v3192_v13  ;;  %v3214_v33 = vmul.f32 %v3208_v27, %v3114_v5  ;;  %v3182_v56 = vadd.f32 %v3180_v28, %v3170_v22  ;;  %4308 = vmatprep.subr.bf16.mxu0 %v4307_v29  ;;  %v3205_v7 = vadd.f32 %v3203_v21, %v3193_v38  ;;  %v3857_v55 = vld [vmem:[%s5191_s1 + $0x198] ss:$0 sm:$0xff] }
0x1249   :  { %v3183_v25 = vadd.f32 %v3181_v18, %v3171_v17  ;;  %3222 = vrot.lane.b32.xlu1 %v3149_v19, %s4500_s21  ;;  %4310 = vmatpush3.bf16.msra.mxu0 %v4307_v29  ;;  %v4315_v8 = vpack.c.bf16 %v3579_v39, %v3578_v6  ;;  %v3136_v10 = vadd.f32 %v3134_v32, %v3124_v30 }
0x124a   :  { %4244 = vmatprep.subr.mxu0 %v3408_v4  ;;  %v3216_v26 = vadd.f32 %v3214_v33, %v3204_v59  ;;  %v3146_v16 = vmul.f32 %v5075_v2, %v3114_v5  ;;  %v3343_v42 = vadd.f32 %v4991_v20, %v3859_v24  ;;  %v3338_v2 = vadd.f32 %v3859_v24, %v4993_v3  ;;  %v3858_v5 = vld [vmem:[%s5191_s1 + $0x1a0] ss:$0 sm:$0xff]  ;;  %v4496_v59 = vld [vmem:[%s5190_s0 + $0x18] sm:$0xff]  ;;  %v4497_v33 = vld [vmem:[%s5190_s0 + $0x8] sm:$0xff] }
0x124b   :  { %3230 = vrot.lane.b32.xlu0 %v3183_v25, %s4513_s11  ;;  %v3212_v34 = vpop.permute.xlu1 %3211  ;;  %4317 = vmatprep.subr.msk.bf16.mxu1 %vm4316_vm14, %v4315_v8 }
0x124c   :  { %v3215_v52 = vmul.f32 %v3212_v34, %v3115_v50  ;;  %4320 = vmatpush3.bf16.msk.msra.mxu1 %vm4316_vm14, %v4315_v8  ;;  %v3148_v41 = vadd.f32 %v3146_v16, %v3136_v10  ;;  %v3351_v43 = vsel %vm3247_vm2, %v3343_v42, 0.0  ;;  %v3348_v44 = vsel %vm3247_vm2, %v3338_v2, 0.0 }
0x124d   :  { %3228 = vrot.lane.b32.xlu1 %v3182_v56, %s4513_s11  ;;  %4245 = vmatpush3.msra.mxu0 %v3408_v4  ;;  %v3250_v34 = vmul.f32 5.656854, %v4935_v53  ;;  %v3251_v56 = vmul.f32 5.656854, %v4941_v48 }
0x124e   :  { %v3217_v40 = vadd.f32 %v3215_v52, %v3205_v7 }
0x1250   :  { %3238 = vrot.lane.b32.xlu0 %v3217_v40, %s4515_s17  ;;  %v3865_v40 = vld [vmem:[%s5191_s1 + $0x1f0] ss:$0 sm:$0xff] }
0x1251   :  { %3236 = vrot.lane.b32.xlu1 %v3216_v26, %s4515_s17 }
0x1254   :  { %3220 = vrot.lane.b32.xlu0 %v3148_v41, %s4500_s21 }
0x1255   :  { %3585 = vrot.lane.b32.xlu1 %v4935_v53, %s4516_s18 }
0x1258   :  { %3587 = vrot.lane.b32.xlu0 %v4941_v48, %s4516_s18 }
0x1272   :  { %v3041_v11 = vpop.xlane.xlu0 %3040 }
0x1273   :  { %v3043_v9 = vmul.f32 0.0625, %v3041_v11 }
0x1275   :  { %v3045_v14 = vadd.f32 0.0001, %v3043_v9 }
0x1277   :  { %3352 = vadd.xlane.f32.xlu0 %v3351_v43  ;;  %4482 = vrsqrt.f32 %v3045_v14 }
0x1279   :  { %3349 = vadd.xlane.f32.xlu1 %v3348_v44 }
0x127d   :  { %v3038_v46 = vpop.xlane.xlu1 %3037 }
0x127e   :  { %v3042_v47 = vmul.f32 0.0625, %v3038_v46 }
0x1280   :  { %v3044_v50 = vadd.f32 0.0001, %v3042_v47 }
0x1281   :  { %v4483_v20 = vpop.eup %4482 }
0x1282   :  { %4484 = vrsqrt.f32 %v3044_v50  ;;  %v3049_v54 = vmul.f32 %v4483_v20, %v5064_v31 }
0x1284   :  { %v3055_v1 = vmul.f32 %v3857_v55, %v3049_v54 }
0x1286   :  { %v3061_v13 = vadd.f32 %v3858_v5, %v3055_v1 }
0x128c   :  { %v4485_v51 = vpop.eup %4484 }
0x128d   :  { %v3048_v63 = vmul.f32 %v4485_v51, %v5070_v61 }
0x128f   :  { %v3054_v49 = vmul.f32 %v3857_v55, %v3048_v63 }
0x1291   :  { %v3060_v60 = vadd.f32 %v3858_v5, %v3054_v49  ;;  %v3868_v49 = vld [vmem:[%s5191_s1 + $0x208] ss:$0 sm:$0xff] }
0x12bb   :  { %v3223_v3 = vpop.permute.xlu1 %3222 }
0x12bc   :  { %v3243_v31 = vsel %vm466_vm9, %v3061_v13, %v3223_v3  ;;  %v3863_v3 = vld [vmem:[%s5191_s1 + $0x1b8] ss:$0 sm:$0xff] }
0x12bd   :  { %v3231_v62 = vpop.permute.xlu0 %3230 }
0x12be   :  { %v3246_v37 = vsel %vm3244_vm0, %v3243_v31, %v3231_v62  ;;  %v3864_v62 = vld [vmem:[%s5191_s1 + $0x1c0] ss:$0 sm:$0xff]  ;;  %v3575_v31 = vadd.f32 %v4995_v57, %v3868_v49 }
0x12bf   :  { %v3229_v0 = vpop.permute.xlu1 %3228 }
0x12c2   :  { %v3239_v12 = vpop.permute.xlu0 %3238 }
0x12c3   :  { %v3237_v58 = vpop.permute.xlu1 %3236  ;;  %v3249_v18 = vsel %vm3247_vm2, %v3246_v37, %v3239_v12  ;;  %v3570_v37 = vadd.f32 %v3868_v49, %v4997_v23 }
0x12c6   :  { %v3221_v15 = vpop.permute.xlu0 %3220 }
0x12c7   :  { %v3242_v35 = vsel %vm466_vm9, %v3060_v60, %v3221_v15  ;;  %v3586_v36 = vpop.permute.xlu1 %3585 }
0x12c8   :  { %v3245_v61 = vsel %vm3244_vm0, %v3242_v35, %v3229_v0  ;;  %4260 = vmatprep.mubr.msk.f32.mxu1 %vm3589_vm15, %v3586_v36 }
0x12c9   :  { %v3248_v17 = vsel %vm3247_vm2, %v3245_v61, %v3237_v58 }
0x12ca   :  { %4246 = vmatprep.mubr.msk.f32.mxu0 %vm3414_vm1, %v3248_v17  ;;  %v3588_v19 = vpop.permute.xlu0 %3587 }
0x12cb   :  { %4247 = vmatmul.mubr.msk.f32.vlgmr.msra.gmra.mrb[46].mxu0 %vm3414_vm1, %v3249_v18  ;;  %4261 = vmatmul.mubr.msk.f32.vlgmr.msra.gmra.mrb[40].mxu1 %vm3589_vm15, %v3588_v19 }
0x1304   :  { %v3353_v27 = vpop.xlane.xlu0 %3352 }
0x1305   :  { %v3356_v38 = vmul.f32 0.03125, %v3353_v27 }
0x1306   :  { %v3350_v21 = vpop.xlane.xlu1 %3349 }
0x1307   :  { %v3358_v22 = vsub.f32 %v3343_v42, %v3356_v38  ;;  %v3355_v25 = vmul.f32 0.03125, %v3350_v21 }
0x1309   :  { %v3357_v28 = vsub.f32 %v3338_v2, %v3355_v25  ;;  %v3360_v29 = vmul.f32 %v3358_v22, %v3358_v22  ;;  %v3375_v54 = vmul.f32 %v3863_v3, %v3358_v22 }
0x130b   :  { %v3364_v30 = vsel %vm3247_vm2, %v3360_v29, 0.0  ;;  %v3359_v32 = vmul.f32 %v3357_v28, %v3357_v28  ;;  %v3374_v0 = vmul.f32 %v3863_v3, %v3357_v28 }
0x130c   :  { %3365 = vadd.xlane.f32.xlu1 %v3364_v30 }
0x130d   :  { %v3361_v4 = vsel %vm3247_vm2, %v3359_v32, 0.0 }
0x130e   :  { %3362 = vadd.xlane.f32.xlu0 %v3361_v4 }
0x131d   :  { %3693 = vperm.xlu1 %4373, %v4496_v59  }
0x1321   :  { %3680 = vrot.lane.b32.xlu1 %v4935_v53, %s4518_s27 }
0x1324   :  { %3689 = vperm.xlu0 %4372, %v4497_v33  }
0x1325   :  { %3682 = vrot.lane.b32.xlu1 %v4941_v48, %s4518_s27  ;;  %v3871_v48 = vld [vmem:[%s5191_s1 + $0x220] ss:$0 sm:$0xff] }
0x1329   :  { %3700 = vrot.lane.b32.xlu1 %v3250_v34, %s4515_s17 }
0x132d   :  { %3702 = vrot.lane.b32.xlu1 %v3251_v56, %s4515_s17 }
0x1399   :  { %v3366_v6 = vpop.xlane.xlu1 %3365 }
0x139a   :  { %v3369_v39 = vmul.f32 0.032258064, %v3366_v6 }
0x139b   :  { %v3363_v7 = vpop.xlane.xlu0 %3362 }
0x139c   :  { %v3377_v52 = vadd.f32 1e-06, %v3369_v39  ;;  %v3368_v8 = vmul.f32 0.032258064, %v3363_v7 }
0x139d   :  { %v3694_v21 = vpop.permute.xlu1 %3693 }
0x139e   :  { %4486 = vrsqrt.f32 %v3377_v52  ;;  %v4248_v10 = vpop.f32.mrb[46].mxu0  ;;  %v4262_v26 = vpop.f32.mrb[40].mxu1  ;;  %v3376_v16 = vadd.f32 1e-06, %v3368_v8  ;;  %vm3387_vm9 = vcmp.eq.f32.partialorder %v3377_v52, inf  ;;  %v3390_v44 = vand.u32 2147483648, %v3377_v52 }
0x139f   :  { %v3487_v53 = vpop.f32.mrb[47].mxu0  ;;  %v3663_v41 = vpop.f32.mrb[41].mxu1  ;;  %vm3389_vm3 = vcmp.eq.f32.partialorder %v3377_v52, 0.0  ;;  %v3493_v58 = vadd.f32 %v4248_v10, %v3865_v40  ;;  %v3669_v36 = vadd.f32 %v4262_v26, %v3871_v48 }
0x13a0   :  { %v3488_v24 = vadd.f32 %v3865_v40, %v3487_v53  ;;  %4488 = vrsqrt.f32 %v3376_v16  ;;  %v3664_v42 = vadd.f32 %v3871_v48, %v3663_v41  ;;  %vm3380_vm4 = vcmp.eq.f32.partialorder %v3376_v16, inf }
0x13a1   :  { %v3383_v47 = vand.u32 2147483648, %v3376_v16  ;;  %vm3382_vm6 = vcmp.eq.f32.partialorder %v3376_v16, 0.0  ;;  %v3681_v23 = vpop.permute.xlu1 %3680 }
0x13a2   :  { %3716 = vrot.lane.b32.xlu0 %v3488_v24, %s4518_s27 }
0x13a3   :  { %v3690_v38 = vpop.permute.xlu0 %3689 }
0x13a5   :  { %v3683_v28 = vpop.permute.xlu1 %3682 }
0x13a6   :  { %3724 = vrot.lane.b32.xlu0 %v3664_v42, %s4515_s17 }
0x13a8   :  { %v4487_v2 = vpop.eup %4486 }
0x13a9   :  { %v3386_v43 = vmul.f32 %v4487_v2, %v3377_v52  ;;  %v3701_v29 = vpop.permute.xlu1 %3700 }
0x13aa   :  { %v4489_v45 = vpop.eup %4488 }
0x13ab   :  { %v3388_v11 = vsel %vm3387_vm9, %v3377_v52, %v3386_v43  ;;  %v3379_v46 = vmul.f32 %v4489_v45, %v3376_v16 }
0x13ac   :  { %v3391_v9 = vsel %vm3389_vm3, %v3390_v44, %v3388_v11 }
0x13ad   :  { %v3393_v14 = vadd.f32 1e-06, %v3391_v9  ;;  %v3381_v50 = vsel %vm3380_vm4, %v3376_v16, %v3379_v46  ;;  %v3703_v4 = vpop.permute.xlu1 %3702 }
0x13ae   :  { %v3384_v20 = vsel %vm3382_vm6, %v3383_v47, %v3381_v50 }
0x13af   :  { %4490 = vrcp.f32 %v3393_v14  ;;  %v3392_v51 = vadd.f32 1e-06, %v3384_v20 }
0x13b1   :  { %4492 = vrcp.f32 %v3392_v51 }
0x13b9   :  { %v4491_v55 = vpop.eup %4490 }
0x13ba   :  { %v3397_v63 = vmul.f32 %v4491_v55, %v3375_v54 }
0x13bb   :  { %v4493_v1 = vpop.eup %4492 }
0x13bc   :  { %v3403_v5 = vadd.f32 %v3864_v62, %v3397_v63  ;;  %v3395_v12 = vmul.f32 %v4493_v1, %v3374_v0 }
0x13be   :  { %v3673_v13 = vadd.f32 %v3403_v5, %v3251_v56  ;;  %v3402_v60 = vadd.f32 %v3864_v62, %v3395_v12 }
0x13c0   :  { %v3675_v15 = vadd.f32 %v3673_v13, %v3493_v58  ;;  %v3672_v35 = vadd.f32 %v3402_v60, %v3250_v34  ;;  %3708 = vrot.lane.b32.xlu1 %v3402_v60, %s4502_s12 }
0x13c2   :  { %v3677_v61 = vadd.f32 %v3675_v15, %v3575_v31  ;;  %v3674_v17 = vadd.f32 %v3672_v35, %v3488_v24 }
0x13c4   :  { %v3679_v18 = vadd.f32 %v3677_v61, %v3669_v36  ;;  %v3676_v19 = vadd.f32 %v3674_v17, %v3570_v37  ;;  %3710 = vrot.lane.b32.xlu1 %v3403_v5, %s4502_s12 }
0x13c6   :  { %v3678_v27 = vadd.f32 %v3676_v19, %v3664_v42  ;;  %v3687_v59 = vadd.f32 %v3683_v28, %v3679_v18 }
0x13c8   :  { %3718 = vrot.lane.b32.xlu1 %v3493_v58, %s4518_s27  ;;  %v3686_v30 = vadd.f32 %v3681_v23, %v3678_v27  ;;  %v3697_v39 = vmul.f32 %v3694_v21, %v3687_v59 }
0x13ca   :  { %v3696_v32 = vmul.f32 %v3690_v38, %v3686_v30  ;;  %v3731_v52 = vsel %vm3247_vm2, %v3697_v39, %v3703_v4 }
0x13cc   :  { %3726 = vrot.lane.b32.xlu1 %v3669_v36, %s4515_s17  ;;  %v3730_v34 = vsel %vm3247_vm2, %v3696_v32, %v3701_v29 }
0x1414   :  { %v3717_v57 = vpop.permute.xlu0 %3716 }
0x1418   :  { %v3725_v22 = vpop.permute.xlu0 %3724 }
0x1419   :  { %v3738_v25 = vsel %vm3247_vm2, %v3570_v37, %v3725_v22 }
0x141a   :  { %3741 = vst.msk [vmem:[%s5192_s2 + $0x8] sm:$0xff] %vm3732_vm7, %v3738_v25 }
0x1432   :  { %v3709_v33 = vpop.permute.xlu1 %3708 }
0x1433   :  { %v3733_v56 = vsel %vm3732_vm7, %v3730_v34, %v3709_v33 }
0x1434   :  { %v3736_v6 = vsel %vm3735_vm8, %v3733_v56, %v3717_v57 }
0x1435   :  { %3740 = vst [vmem:[%s5192_s2] sm:$0xff] %v3736_v6 }
0x1436   :  { %v3711_v7 = vpop.permute.xlu1 %3710 }
0x1437   :  { %v3734_v8 = vsel %vm3732_vm7, %v3731_v52, %v3711_v7 }
0x143a   :  { %v3719_v40 = vpop.permute.xlu1 %3718 }
0x143b   :  { %v3737_v10 = vsel %vm3735_vm8, %v3734_v8, %v3719_v40 }
0x143c   :  { %3742 = vst [vmem:[%s5192_s2 + $0x10] sm:$0xff] %v3737_v10 }
0x143e   :  { %v3727_v26 = vpop.permute.xlu1 %3726 }
0x143f   :  { %v3739_v16 = vsel %vm3247_vm2, %v3575_v31, %v3727_v26 }
0x1440   :  { %3743 = vst.msk [vmem:[%s5192_s2 + $0x18] sm:$0xff] %vm3732_vm7, %v3739_v16 }

</bundles_post_ra>
